<compile_context>
chip_gen: v6e
topology: v6e:2x2x1
jax: 0.10.0
libtpu: 0.0.40
codegen_flags: <defaults>
</compile_context>

<pallas_src>
import jax
import jax.numpy as jnp
from jax import lax
from jax.experimental import pallas as pl
from jax.experimental.pallas import tpu as pltpu


def _round_up(n, m):
    return ((n + m - 1) // m) * m


def _pick_batch_tile(bs):
    # Split the batch across v7x's two TensorCores when it is big enough and the
    # tile stays (8,128)-legal; otherwise keep the whole batch in one tile.
    if bs >= 16 and bs % 16 == 0:
        return bs // 2
    return bs


def _pick_time_chunk(x_len, tb, in_dim, hp, max_chunk=64,
                     stream_budget_bytes=8 * 1024 * 1024):
    """Largest chunk <= max_chunk that divides x_len and fits the VMEM stream budget."""
    bytes_per_step = 2 * 4 * tb * (in_dim + hp + 1)  # double-buffered f32 streams
    t = max(1, min(x_len, max_chunk, stream_budget_bytes // bytes_per_step))
    while x_len % t != 0:
        t -= 1
    return t


def _pick_unroll(t_chunk, max_unroll=8):
    u = min(t_chunk, max_unroll)
    while t_chunk % u != 0:
        u -= 1
    return u


def _make_layer_kernel(hp, t_chunk, unroll, matmul_dtype, act_dtype):
    def kernel(x_ref, h0_ref, c0_ref, skip0_ref, du0_ref,
               wih_ref, whh_ref, b_ref, wlin_ref, blin_ref,
               hseq_ref, buseq_ref, hlast_ref, clast_ref, skiplast_ref, dulast_ref,
               h_s, c_s, u_s, skip_s, du_s):
        chunk = pl.program_id(1)
        tb = h_s.shape[0]

        # ---- init recurrent state at the first chunk of each batch tile -------
        @pl.when(chunk == 0)
        def _():
            h_s[...] = h0_ref[...]
            c_s[...] = c0_ref[...]
            u_s[...] = jnp.ones_like(u_s)          # u = ones per layer
            skip_s[...] = skip0_ref[...]
            du_s[...] = du0_ref[...]

        # Hoisted once per chunk (JAX does not CSE broadcast_in_dim).
        wih = wih_ref[...]                                     # (in_dim, 4*hp)
        whh = whh_ref[...]                                     # (hp, 4*hp)
        b_b = jnp.broadcast_to(b_ref[...], (tb, 4 * hp))       # fused bih + bhh
        wlin_b = jnp.broadcast_to(wlin_ref[...], (tb, hp))     # delta_u head row
        blin = blin_ref[...]                                   # (1, 1)
        lane_ids = lax.broadcasted_iota(jnp.int32, (tb, t_chunk), 1)

        def step_fn(step, carry):
            h, c, u, s, du, bu_acc = carry
            x = x_ref[step]                              # (tb, in_dim)

            # STE binarizer (forward = round).
            bu = jnp.round(u)                            # (tb, 1)
            bu_b = jnp.broadcast_to(bu, (tb, hp))
            one_minus_bu_b = 1.0 - bu_b

            # ---- LSTM gates: x @ Wih + h @ Whh + b (no lane concat) ----------
            gates = (jnp.dot(x.astype(matmul_dtype), wih,
                             preferred_element_type=jnp.float32)
                     + jnp.dot(h.astype(matmul_dtype), whh,
                               preferred_element_type=jnp.float32)
                     + b_b)
            ga = gates.astype(act_dtype)                 # 128-lane-aligned slices
            i_g = jax.nn.sigmoid(ga[:, 0 * hp:1 * hp]).astype(jnp.float32)
            f_g = jax.nn.sigmoid(ga[:, 1 * hp:2 * hp]).astype(jnp.float32)
            g_g = jnp.tanh(ga[:, 2 * hp:3 * hp]).astype(jnp.float32)
            o_g = jax.nn.sigmoid(ga[:, 3 * hp:4 * hp]).astype(jnp.float32)
            c_lstm = f_g * c + i_g * g_g
            h_lstm = o_g * jnp.tanh(c_lstm)

            # ---- no-skip branch (state gated by bu, as in the reference) -----
            h_n = h_lstm * bu_b
            c_n = c_lstm * bu_b
            # delta_u head as VPU mul + lane reduction (no 1-lane-wide matmul)
            du_n = jax.nn.sigmoid(
                jnp.sum(c_n * wlin_b, axis=-1, keepdims=True) + blin)
            u_n = du_n * bu

            # ---- skip branch --------------------------------------------------
            h_sk = h * one_minus_bu_b
            c_sk = c * one_minus_bu_b
            u_sk = jnp.clip(u + du, 0.0, 1.0) * (1.0 - bu)

            is_skip = s > 0.5                            # (tb, 1)
            is_skip_b = jnp.broadcast_to(is_skip, (tb, hp))
            new_h = jnp.where(is_skip_b, h_sk, h_n)
            new_c = jnp.where(is_skip_b, c_sk, c_n)
            new_u = jnp.where(is_skip, u_sk, u_n)
            new_du = jnp.where(is_skip, du, du_n)
            # ceil(0.5/new_u) - 1 > 0  <=>  new_u < 0.5  (new_u in [0, 1])
            new_skip = (new_u < 0.5).astype(jnp.float32)

            # h_seq: dense 128-lane store into the chunk-resident output block.
            hseq_ref[step] = new_h
            # binarized_u: packed lane-dense (time on lanes) via iota+select,
            # written back once per chunk (no per-step masked stores).
            bu_acc = jnp.where(lane_ids == step, bu, bu_acc)
            return (new_h, new_c, new_u, new_skip, new_du, bu_acc)

        carry0 = (h_s[...], c_s[...], u_s[...], skip_s[...], du_s[...],
                  jnp.zeros((tb, t_chunk), jnp.float32))
        h, c, u, s, du, bu_acc = lax.fori_loop(0, t_chunk, step_fn, carry0,
                                               unroll=unroll)

        buseq_ref[0] = bu_acc          # one dense (tb, t_chunk) store per chunk

        # Carry recurrent state across chunks.
        h_s[...] = h
        c_s[...] = c
        u_s[...] = u
        skip_s[...] = s
        du_s[...] = du

        # Last-state outputs written only once, on the final chunk.
        @pl.when(chunk == pl.num_programs(1) - 1)
        def _():
            hlast_ref[...] = h
            clast_ref[...] = c
            skiplast_ref[...] = s
            dulast_ref[...] = du

    return kernel


def skip_lstm_layer(x_seq, h0, c0, skip0, du0, params, *, hp,
                    max_chunk=64, matmul_dtype=jnp.float32,
                    act_dtype=jnp.float32,
                    vmem_limit_bytes=32 * 1024 * 1024):
    """Run one SkipLSTM layer over the full sequence with a single pallas_call."""
    x_len, bs, in_dim = x_seq.shape
    tb = _pick_batch_tile(bs)
    n_btiles = bs // tb
    t_chunk = _pick_time_chunk(x_len, tb, in_dim, hp, max_chunk=max_chunk)
    n_chunks = x_len // t_chunk
    unroll = _pick_unroll(t_chunk)

    wih = params["wih"].astype(matmul_dtype)     # (in_dim, 4*hp), gate-padded
    whh = params["whh"].astype(matmul_dtype)     # (hp, 4*hp)
    b = params["b"]                              # (1, 4*hp)  fused bih + bhh
    wlin = params["wlin"]                        # (1, hp)
    blin = params["blin"]                        # (1, 1)

    const2 = lambda bt, t: (0, 0)

    grid_spec = pltpu.PrefetchScalarGridSpec(
        num_scalar_prefetch=0,
        grid=(n_btiles, n_chunks),               # batch tiles parallel, time serial
        in_specs=[
            pl.BlockSpec((t_chunk, tb, in_dim), lambda bt, t: (t, bt, 0)),  # x
            pl.BlockSpec((tb, hp), lambda bt, t: (bt, 0)),                  # h0
            pl.BlockSpec((tb, hp), lambda bt, t: (bt, 0)),                  # c0
            pl.BlockSpec((tb, 1), lambda bt, t: (bt, 0)),                   # skip0
            pl.BlockSpec((tb, 1), lambda bt, t: (bt, 0)),                   # du0
            pl.BlockSpec((in_dim, 4 * hp), const2),                         # Wih
            pl.BlockSpec((hp, 4 * hp), const2),                             # Whh
            pl.BlockSpec((1, 4 * hp), const2),                              # bias
            pl.BlockSpec((1, hp), const2),                                  # wlin
            pl.BlockSpec((1, 1), const2),                                   # blin
        ],
        out_specs=[
            pl.BlockSpec((t_chunk, tb, hp), lambda bt, t: (t, bt, 0)),      # h_seq
            pl.BlockSpec((1, tb, t_chunk), lambda bt, t: (t, bt, 0)),       # bu (lane-dense)
            pl.BlockSpec((tb, hp), lambda bt, t: (bt, 0)),                  # h_last
            pl.BlockSpec((tb, hp), lambda bt, t: (bt, 0)),                  # c_last
            pl.BlockSpec((tb, 1), lambda bt, t: (bt, 0)),                   # skip_out
            pl.BlockSpec((tb, 1), lambda bt, t: (bt, 0)),                   # delta_u_out
        ],
        scratch_shapes=[
            pltpu.VMEM((tb, hp), jnp.float32),   # h state
            pltpu.VMEM((tb, hp), jnp.float32),   # c state
            pltpu.VMEM((tb, 1), jnp.float32),    # u state
            pltpu.VMEM((tb, 1), jnp.float32),    # skip state
            pltpu.VMEM((tb, 1), jnp.float32),    # delta_u state
        ],
    )

    out_shapes = (
        jax.ShapeDtypeStruct((x_len, bs, hp), jnp.float32),
        jax.ShapeDtypeStruct((n_chunks, bs, t_chunk), jnp.float32),
        jax.ShapeDtypeStruct((bs, hp), jnp.float32),
        jax.ShapeDtypeStruct((bs, hp), jnp.float32),
        jax.ShapeDtypeStruct((bs, 1), jnp.float32),
        jax.ShapeDtypeStruct((bs, 1), jnp.float32),
    )

    return pl.pallas_call(
        _make_layer_kernel(hp, t_chunk, unroll, matmul_dtype, act_dtype),
        out_shape=out_shapes,
        grid_spec=grid_spec,
        compiler_params=pltpu.CompilerParams(
            dimension_semantics=("parallel", "arbitrary"),
            vmem_limit_bytes=vmem_limit_bytes),
    )(x_seq, h0, c0, skip0, du0, wih, whh, b, wlin, blin)


def init_params(key, ic, hc, layer_num):
    """Deterministic init mirroring the PyTorch module; weights pre-fused,
    pre-transposed and padded to hp = round_up(hc, 128) per gate block."""
    hp = _round_up(hc, 128)
    params = []
    in_dim = ic
    for layer in range(layer_num):
        in_dim_p = ic if layer == 0 else hp
        key, k1, k2, k3, k4, k5 = jax.random.split(key, 6)
        std = 1.0 / float(hc) ** 0.5
        wih = jax.random.uniform(k1, (4 * hc, in_dim), jnp.float32, -std, std)
        whh = jax.random.uniform(k2, (4 * hc, hc), jnp.float32, -std, std)
        bih = jax.random.uniform(k3, (4 * hc,), jnp.float32, -std, std)
        bhh = jax.random.uniform(k4, (4 * hc,), jnp.float32, -std, std)
        # xavier_normal_ for the (1, hc) linear; bias filled with 1.
        wlin = jax.random.normal(k5, (1, hc), jnp.float32) * (2.0 / (1 + hc)) ** 0.5
        blin = jnp.ones((1, 1), jnp.float32)

        wih_p = jnp.zeros((in_dim_p, 4 * hp), jnp.float32)
        whh_p = jnp.zeros((hp, 4 * hp), jnp.float32)
        b_p = jnp.zeros((1, 4 * hp), jnp.float32)
        wlin_p = jnp.zeros((1, hp), jnp.float32).at[0, :hc].set(wlin[0])
        for g in range(4):   # gate order i, f, g, o (torch.nn.LSTMCell)
            wih_p = wih_p.at[:in_dim, g * hp:g * hp + hc].set(
                wih[g * hc:(g + 1) * hc, :].T)
            whh_p = whh_p.at[:hc, g * hp:g * hp + hc].set(
                whh[g * hc:(g + 1) * hc, :].T)
            b_p = b_p.at[0, g * hp:g * hp + hc].set(
                bih[g * hc:(g + 1) * hc] + bhh[g * hc:(g + 1) * hc])
        params.append(dict(hp=hp, wih=wih_p, whh=whh_p, b=b_p,
                           wlin=wlin_p, blin=blin))
        in_dim = hc
    return params


def skip_lstm_forward(x, params, hc, layer_num, return_total_u=False,
                      matmul_dtype=jnp.float32, act_dtype=jnp.float32):
    x_len, bs, _ = x.shape
    hp = params[0]["hp"]
    # learn_init=False -> zero initial hiddens (padded lanes stay zero forever).
    h0 = jnp.zeros((bs, hp), jnp.float32)
    c0 = jnp.zeros((bs, hp), jnp.float32)
    # skip / delta_u carry across layers exactly like in the PyTorch loop.
    skip = jnp.zeros((bs, 1), jnp.float32)
    du = jnp.zeros((bs, 1), jnp.float32)

    lstm_input = x
    hs, cs, bus = [], [], []
    for i in range(layer_num):
        h_seq, bu_seq, h_last, c_last, skip, du = skip_lstm_layer(
            lstm_input, h0, c0, skip, du, params[i], hp=hp,
            matmul_dtype=matmul_dtype, act_dtype=act_dtype)
        lstm_input = h_seq                     # padded (x_len, bs, hp); fed as-is
        hs.append(h_last[:, :hc])
        cs.append(c_last[:, :hc])
        bus.append(bu_seq)                     # (n_chunks, bs, t_chunk)

    out = lstm_input[..., :hc]                 # (x_len, bs, hc)
    hs = jnp.stack(hs, axis=0)                 # (layer_num, bs, hc)
    cs = jnp.stack(cs, axis=0)
    if return_total_u:
        # cat(binarized_us, dim=1): layer-major, time-major within a layer.
        total_u = jnp.concatenate(
            [jnp.transpose(b, (1, 0, 2)).reshape(bs, -1) for b in bus], axis=1)
        return out, (hs, cs), total_u
    return out, (hs, cs)


if __name__ == "__main__":
    ic, hc, layer_num = 4, 32, 2
    x_len, bs = 8, 2

    key = jax.random.PRNGKey(0)
    kx, kp = jax.random.split(key)
    x = jax.random.normal(kx, (x_len, bs, ic), jnp.float32)
    params = init_params(kp, ic, hc, layer_num)

    # On v6e/v7x pass matmul_dtype=jnp.bfloat16 (and act_dtype=jnp.bfloat16) for
    # faster EUP/VPU + halved weight VMEM; on v5e bf16 matmul inputs are fine but
    # keep act_dtype=f32.  f32 here keeps exact reference semantics.
    out, (hs, cs), total_u = skip_lstm_forward(
        x, params, hc, layer_num, return_total_u=True,
        matmul_dtype=jnp.float32, act_dtype=jnp.float32)
    jax.block_until_ready((out, hs, cs, total_u))

    assert out.shape == (x_len, bs, hc)
    assert hs.shape == (layer_num, bs, hc)
    assert cs.shape == (layer_num, bs, hc)
    assert total_u.shape == (bs, layer_num * x_len)
    assert bool(jnp.all(jnp.isfinite(out)))
    assert bool(jnp.all(jnp.isfinite(hs)))
    assert bool(jnp.all(jnp.isfinite(cs)))
    assert bool(jnp.all((total_u == 0.0) | (total_u == 1.0)))
    print("KERNEL_OK")
</pallas_src>

<mosaic_0001>
module attributes {stable_mosaic.version = 11 : i64} {
  func.func @kernel(%arg0: i32, %arg1: i32, %arg2: memref<8x2x4xf32, #tpu.memory_space<vmem>>, %arg3: memref<2x128xf32, #tpu.memory_space<vmem>>, %arg4: memref<2x128xf32, #tpu.memory_space<vmem>>, %arg5: memref<2x1xf32, #tpu.memory_space<vmem>>, %arg6: memref<2x1xf32, #tpu.memory_space<vmem>>, %arg7: memref<4x512xf32, #tpu.memory_space<vmem>>, %arg8: memref<128x512xf32, #tpu.memory_space<vmem>>, %arg9: memref<1x512xf32, #tpu.memory_space<vmem>>, %arg10: memref<1x128xf32, #tpu.memory_space<vmem>>, %arg11: memref<1x1xf32, #tpu.memory_space<vmem>>, %arg12: memref<8x2x128xf32, #tpu.memory_space<vmem>>, %arg13: memref<1x2x8xf32, #tpu.memory_space<vmem>>, %arg14: memref<2x128xf32, #tpu.memory_space<vmem>>, %arg15: memref<2x128xf32, #tpu.memory_space<vmem>>, %arg16: memref<2x1xf32, #tpu.memory_space<vmem>>, %arg17: memref<2x1xf32, #tpu.memory_space<vmem>>, %arg18: memref<2x128xf32, #tpu.memory_space<vmem>>, %arg19: memref<2x128xf32, #tpu.memory_space<vmem>>, %arg20: memref<2x1xf32, #tpu.memory_space<vmem>>, %arg21: memref<2x1xf32, #tpu.memory_space<vmem>>, %arg22: memref<2x1xf32, #tpu.memory_space<vmem>>) attributes {dimension_semantics = [#tpu.dimension_semantics<parallel>, #tpu.dimension_semantics<arbitrary>], iteration_bounds = array<i64: 1, 1>, scalar_prefetch = 0 : i64, scratch_operands = 5 : i64, tpu.core_type = #tpu.core_type<tc>, window_params = [{transform_indices = @transform_0, window_bounds = array<i64: 8, 2, 4>}, {transform_indices = @transform_1, window_bounds = array<i64: 2, 128>}, {transform_indices = @transform_2, window_bounds = array<i64: 2, 128>}, {transform_indices = @transform_3, window_bounds = array<i64: 2, 1>}, {transform_indices = @transform_4, window_bounds = array<i64: 2, 1>}, {pipeline_mode = #tpu.pipeline_mode<synchronous>, transform_indices = @transform_5, window_bounds = array<i64: 4, 512>}, {pipeline_mode = #tpu.pipeline_mode<synchronous>, transform_indices = @transform_6, window_bounds = array<i64: 128, 512>}, {pipeline_mode = #tpu.pipeline_mode<synchronous>, transform_indices = @transform_7, window_bounds = array<i64: 1, 512>}, {pipeline_mode = #tpu.pipeline_mode<synchronous>, transform_indices = @transform_8, window_bounds = array<i64: 1, 128>}, {pipeline_mode = #tpu.pipeline_mode<synchronous>, transform_indices = @transform_9, window_bounds = array<i64: 1, 1>}, {transform_indices = @transform_10, window_bounds = array<i64: 8, 2, 128>}, {transform_indices = @transform_11, window_bounds = array<i64: 1, 2, 8>}, {transform_indices = @transform_12, window_bounds = array<i64: 2, 128>}, {transform_indices = @transform_13, window_bounds = array<i64: 2, 128>}, {transform_indices = @transform_14, window_bounds = array<i64: 2, 1>}, {transform_indices = @transform_15, window_bounds = array<i64: 2, 1>}]} {
    %c0_i32 = arith.constant 0 : i32
    %0 = arith.cmpi eq, %arg1, %c0_i32 : i32
    %1 = arith.extui %0 : i1 to i32
    %c0_i32_0 = arith.constant 0 : i32
    %2 = arith.cmpi ne, %1, %c0_i32_0 : i32
    scf.if %2 {
      %c0_172 = arith.constant 0 : index
      %c0_173 = arith.constant 0 : index
      %678 = vector.load %arg3[%c0_172, %c0_173] : memref<2x128xf32, #tpu.memory_space<vmem>>, vector<2x128xf32>
      %c0_174 = arith.constant 0 : index
      %c0_175 = arith.constant 0 : index
      %679 = vector.load %arg18[%c0_174, %c0_175] : memref<2x128xf32, #tpu.memory_space<vmem>>, vector<2x128xf32>
      tpu.vector_store %arg18[%c0_174, %c0_175], %678 {strides = array<i32>} : memref<2x128xf32, #tpu.memory_space<vmem>>, vector<2x128xf32>,
      %c0_176 = arith.constant 0 : index
      %c0_177 = arith.constant 0 : index
      %680 = vector.load %arg4[%c0_176, %c0_177] : memref<2x128xf32, #tpu.memory_space<vmem>>, vector<2x128xf32>
      %c0_178 = arith.constant 0 : index
      %c0_179 = arith.constant 0 : index
      %681 = vector.load %arg19[%c0_178, %c0_179] : memref<2x128xf32, #tpu.memory_space<vmem>>, vector<2x128xf32>
      tpu.vector_store %arg19[%c0_178, %c0_179], %680 {strides = array<i32>} : memref<2x128xf32, #tpu.memory_space<vmem>>, vector<2x128xf32>,
      %cst_180 = arith.constant 1.000000e+00 : f32
      %682 = vector.broadcast %cst_180 : f32 to vector<2x1xf32>
      %c0_181 = arith.constant 0 : index
      %c0_182 = arith.constant 0 : index
      %683 = vector.load %arg20[%c0_181, %c0_182] : memref<2x1xf32, #tpu.memory_space<vmem>>, vector<2x1xf32>
      tpu.vector_store %arg20[%c0_181, %c0_182], %682 {strides = array<i32>} : memref<2x1xf32, #tpu.memory_space<vmem>>, vector<2x1xf32>,
      %c0_183 = arith.constant 0 : index
      %c0_184 = arith.constant 0 : index
      %684 = vector.load %arg5[%c0_183, %c0_184] : memref<2x1xf32, #tpu.memory_space<vmem>>, vector<2x1xf32>
      %c0_185 = arith.constant 0 : index
      %c0_186 = arith.constant 0 : index
      %685 = vector.load %arg21[%c0_185, %c0_186] : memref<2x1xf32, #tpu.memory_space<vmem>>, vector<2x1xf32>
      tpu.vector_store %arg21[%c0_185, %c0_186], %684 {strides = array<i32>} : memref<2x1xf32, #tpu.memory_space<vmem>>, vector<2x1xf32>,
      %c0_187 = arith.constant 0 : index
      %c0_188 = arith.constant 0 : index
      %686 = vector.load %arg6[%c0_187, %c0_188] : memref<2x1xf32, #tpu.memory_space<vmem>>, vector<2x1xf32>
      %c0_189 = arith.constant 0 : index
      %c0_190 = arith.constant 0 : index
      %687 = vector.load %arg22[%c0_189, %c0_190] : memref<2x1xf32, #tpu.memory_space<vmem>>, vector<2x1xf32>
      tpu.vector_store %arg22[%c0_189, %c0_190], %686 {strides = array<i32>} : memref<2x1xf32, #tpu.memory_space<vmem>>, vector<2x1xf32>,
    } else {
    }
    %c0 = arith.constant 0 : index
    %c0_1 = arith.constant 0 : index
    %3 = vector.load %arg7[%c0, %c0_1] : memref<4x512xf32, #tpu.memory_space<vmem>>, vector<4x512xf32>
    %c0_2 = arith.constant 0 : index
    %c0_3 = arith.constant 0 : index
    %4 = vector.load %arg8[%c0_2, %c0_3] : memref<128x512xf32, #tpu.memory_space<vmem>>, vector<128x512xf32>
    %c0_4 = arith.constant 0 : index
    %c0_5 = arith.constant 0 : index
    %5 = vector.load %arg9[%c0_4, %c0_5] : memref<1x512xf32, #tpu.memory_space<vmem>>, vector<1x512xf32>
    %6 = vector.shape_cast %5 : vector<1x512xf32> to vector<1x512xf32>
    %7 = vector.broadcast %6 : vector<1x512xf32> to vector<2x512xf32>
    %c0_6 = arith.constant 0 : index
    %c0_7 = arith.constant 0 : index
    %8 = vector.load %arg10[%c0_6, %c0_7] : memref<1x128xf32, #tpu.memory_space<vmem>>, vector<1x128xf32>
    %9 = vector.shape_cast %8 : vector<1x128xf32> to vector<1x128xf32>
    %10 = vector.broadcast %9 : vector<1x128xf32> to vector<2x128xf32>
    %c0_8 = arith.constant 0 : index
    %c0_9 = arith.constant 0 : index
    %11 = vector.load %arg11[%c0_8, %c0_9] : memref<1x1xf32, #tpu.memory_space<vmem>>, vector<1x1xf32>
    %12 = tpu.iota {dimensions = array<i32: 1>} : vector<2x8xi32>
    %c0_10 = arith.constant 0 : index
    %c0_11 = arith.constant 0 : index
    %13 = vector.load %arg18[%c0_10, %c0_11] : memref<2x128xf32, #tpu.memory_space<vmem>>, vector<2x128xf32>
    %c0_12 = arith.constant 0 : index
    %c0_13 = arith.constant 0 : index
    %14 = vector.load %arg19[%c0_12, %c0_13] : memref<2x128xf32, #tpu.memory_space<vmem>>, vector<2x128xf32>
    %c0_14 = arith.constant 0 : index
    %c0_15 = arith.constant 0 : index
    %15 = vector.load %arg20[%c0_14, %c0_15] : memref<2x1xf32, #tpu.memory_space<vmem>>, vector<2x1xf32>
    %c0_16 = arith.constant 0 : index
    %c0_17 = arith.constant 0 : index
    %16 = vector.load %arg21[%c0_16, %c0_17] : memref<2x1xf32, #tpu.memory_space<vmem>>, vector<2x1xf32>
    %c0_18 = arith.constant 0 : index
    %c0_19 = arith.constant 0 : index
    %17 = vector.load %arg22[%c0_18, %c0_19] : memref<2x1xf32, #tpu.memory_space<vmem>>, vector<2x1xf32>
    %cst = arith.constant 0.000000e+00 : f32
    %18 = vector.broadcast %cst : f32 to vector<2x8xf32>
    %c0_i32_20 = arith.constant 0 : i32
    %19 = arith.index_cast %c0_i32_20 : i32 to index
    %c0_21 = arith.constant 0 : index
    %c0_22 = arith.constant 0 : index
    %20 = vector.load %arg2[%19, %c0_21, %c0_22] : memref<8x2x4xf32, #tpu.memory_space<vmem>>, vector<1x2x4xf32>
    %21 = vector.shape_cast %20 : vector<1x2x4xf32> to vector<2x4xf32>
    %22 = math.roundeven %15 : vector<2x1xf32>
    %23 = vector.shape_cast %22 : vector<2x1xf32> to vector<2x1xf32>
    %24 = vector.broadcast %23 : vector<2x1xf32> to vector<2x128xf32>
    %cst_23 = arith.constant 1.000000e+00 : f32
    %25 = vector.broadcast %cst_23 : f32 to vector<2x128xf32>
    %26 = arith.subf %25, %24 : vector<2x128xf32>
    %cst_24 = arith.constant dense<0.000000e+00> : vector<2x512xf32>
    %27 = tpu.matmul %21, %3, %cst_24 {dimension_numbers = #tpu.dot_dimension_numbers<[1], [0], [0], [1], [0, 0, 1, 1], [], []>} : vector<2x4xf32>, vector<4x512xf32>, vector<2x512xf32> -> vector<2x512xf32>
    %cst_25 = arith.constant dense<0.000000e+00> : vector<2x512xf32>
    %28 = tpu.matmul %13, %4, %cst_25 {dimension_numbers = #tpu.dot_dimension_numbers<[1], [0], [0], [1], [0, 0, 1, 1], [], []>} : vector<2x128xf32>, vector<128x512xf32>, vector<2x512xf32> -> vector<2x512xf32>
    %29 = arith.addf %27, %28 : vector<2x512xf32>
    %30 = arith.addf %29, %7 : vector<2x512xf32>
    %31 = vector.extract_strided_slice %30 {offsets = [0, 0], sizes = [2, 128], strides = [1, 1]} : vector<2x512xf32> to vector<2x128xf32>
    %32 = arith.negf %31 : vector<2x128xf32>
    %33 = math.exp %32 : vector<2x128xf32>
    %cst_26 = arith.constant 1.000000e+00 : f32
    %34 = vector.broadcast %cst_26 : f32 to vector<2x128xf32>
    %35 = arith.addf %34, %33 : vector<2x128xf32>
    %36 = arith.divf %34, %35 : vector<2x128xf32>
    %37 = vector.extract_strided_slice %30 {offsets = [0, 128], sizes = [2, 128], strides = [1, 1]} : vector<2x512xf32> to vector<2x128xf32>
    %38 = arith.negf %37 : vector<2x128xf32>
    %39 = math.exp %38 : vector<2x128xf32>
    %cst_27 = arith.constant 1.000000e+00 : f32
    %40 = vector.broadcast %cst_27 : f32 to vector<2x128xf32>
    %41 = arith.addf %40, %39 : vector<2x128xf32>
    %42 = arith.divf %40, %41 : vector<2x128xf32>
    %43 = vector.extract_strided_slice %30 {offsets = [0, 256], sizes = [2, 128], strides = [1, 1]} : vector<2x512xf32> to vector<2x128xf32>
    %44 = math.tanh %43 : vector<2x128xf32>
    %45 = vector.extract_strided_slice %30 {offsets = [0, 384], sizes = [2, 128], strides = [1, 1]} : vector<2x512xf32> to vector<2x128xf32>
    %46 = arith.negf %45 : vector<2x128xf32>
    %47 = math.exp %46 : vector<2x128xf32>
    %cst_28 = arith.constant 1.000000e+00 : f32
    %48 = vector.broadcast %cst_28 : f32 to vector<2x128xf32>
    %49 = arith.addf %48, %47 : vector<2x128xf32>
    %50 = arith.divf %48, %49 : vector<2x128xf32>
    %51 = arith.mulf %42, %14 : vector<2x128xf32>
    %52 = arith.mulf %36, %44 : vector<2x128xf32>
    %53 = arith.addf %51, %52 : vector<2x128xf32>
    %54 = math.tanh %53 : vector<2x128xf32>
    %55 = arith.mulf %50, %54 : vector<2x128xf32>
    %56 = arith.mulf %55, %24 : vector<2x128xf32>
    %57 = arith.mulf %53, %24 : vector<2x128xf32>
    %58 = arith.mulf %57, %10 : vector<2x128xf32>
    %cst_29 = arith.constant dense<0.000000e+00> : vector<2xf32>
    %59 = vector.multi_reduction <add>, %58, %cst_29 [1] : vector<2x128xf32> to vector<2xf32>
    %60 = vector.shape_cast %59 : vector<2xf32> to vector<2x1xf32>
    %61 = vector.broadcast %11 : vector<1x1xf32> to vector<2x1xf32>
    %62 = arith.addf %60, %61 : vector<2x1xf32>
    %63 = arith.negf %62 : vector<2x1xf32>
    %64 = math.exp %63 : vector<2x1xf32>
    %cst_30 = arith.constant 1.000000e+00 : f32
    %65 = vector.broadcast %cst_30 : f32 to vector<2x1xf32>
    %66 = arith.addf %65, %64 : vector<2x1xf32>
    %67 = arith.divf %65, %66 : vector<2x1xf32>
    %68 = arith.mulf %67, %22 : vector<2x1xf32>
    %69 = arith.mulf %13, %26 : vector<2x128xf32>
    %70 = arith.mulf %14, %26 : vector<2x128xf32>
    %71 = arith.addf %15, %17 : vector<2x1xf32>
    %cst_31 = arith.constant 0.000000e+00 : f32
    %cst_32 = arith.constant 1.000000e+00 : f32
    %72 = vector.broadcast %cst_31 : f32 to vector<2x1xf32>
    %73 = arith.maximumf %72, %71 : vector<2x1xf32>
    %74 = vector.broadcast %cst_32 : f32 to vector<2x1xf32>
    %75 = arith.minimumf %74, %73 : vector<2x1xf32>
    %cst_33 = arith.constant 1.000000e+00 : f32
    %76 = vector.broadcast %cst_33 : f32 to vector<2x1xf32>
    %77 = arith.subf %76, %22 : vector<2x1xf32>
    %78 = arith.mulf %75, %77 : vector<2x1xf32>
    %cst_34 = arith.constant 5.000000e-01 : f32
    %79 = vector.broadcast %cst_34 : f32 to vector<2x1xf32>
    %80 = arith.cmpf ogt, %16, %79 : vector<2x1xf32>
    %81 = vector.shape_cast %80 : vector<2x1xi1> to vector<2x1xi1>
    %82 = vector.broadcast %81 : vector<2x1xi1> to vector<2x128xi1>
    %83 = arith.select %82, %69, %56 : vector<2x128xi1>, vector<2x128xf32>
    %84 = arith.select %82, %70, %57 : vector<2x128xi1>, vector<2x128xf32>
    %85 = arith.select %80, %78, %68 : vector<2x1xi1>, vector<2x1xf32>
    %86 = arith.select %80, %17, %67 : vector<2x1xi1>, vector<2x1xf32>
    %cst_35 = arith.constant 5.000000e-01 : f32
    %87 = vector.broadcast %cst_35 : f32 to vector<2x1xf32>
    %88 = arith.cmpf olt, %85, %87 : vector<2x1xf32>
    %89 = arith.extui %88 : vector<2x1xi1> to vector<2x1xi32>
    %90 = arith.sitofp %89 : vector<2x1xi32> to vector<2x1xf32>
    %91 = arith.index_cast %c0_i32_20 : i32 to index
    %c0_36 = arith.constant 0 : index
    %c0_37 = arith.constant 0 : index
    %92 = vector.load %arg12[%91, %c0_36, %c0_37] : memref<8x2x128xf32, #tpu.memory_space<vmem>>, vector<1x2x128xf32>
    %93 = vector.shape_cast %92 : vector<1x2x128xf32> to vector<2x128xf32>
    %94 = vector.shape_cast %83 : vector<2x128xf32> to vector<1x2x128xf32>
    tpu.vector_store %arg12[%91, %c0_36, %c0_37], %94 {strides = array<i32>} : memref<8x2x128xf32, #tpu.memory_space<vmem>>, vector<1x2x128xf32>,
    %95 = vector.broadcast %c0_i32_20 : i32 to vector<2x8xi32>
    %96 = arith.cmpi eq, %12, %95 : vector<2x8xi32>
    %97 = vector.shape_cast %22 : vector<2x1xf32> to vector<2x1xf32>
    %98 = vector.broadcast %97 : vector<2x1xf32> to vector<2x8xf32>
    %99 = arith.select %96, %98, %18 : vector<2x8xi1>, vector<2x8xf32>
    %c1_i32 = arith.constant 1 : i32
    %100 = arith.index_cast %c1_i32 : i32 to index
    %c0_38 = arith.constant 0 : index
    %c0_39 = arith.constant 0 : index
    %101 = vector.load %arg2[%100, %c0_38, %c0_39] : memref<8x2x4xf32, #tpu.memory_space<vmem>>, vector<1x2x4xf32>
    %102 = vector.shape_cast %101 : vector<1x2x4xf32> to vector<2x4xf32>
    %103 = math.roundeven %85 : vector<2x1xf32>
    %104 = vector.shape_cast %103 : vector<2x1xf32> to vector<2x1xf32>
    %105 = vector.broadcast %104 : vector<2x1xf32> to vector<2x128xf32>
    %cst_40 = arith.constant 1.000000e+00 : f32
    %106 = vector.broadcast %cst_40 : f32 to vector<2x128xf32>
    %107 = arith.subf %106, %105 : vector<2x128xf32>
    %cst_41 = arith.constant dense<0.000000e+00> : vector<2x512xf32>
    %108 = tpu.matmul %102, %3, %cst_41 {dimension_numbers = #tpu.dot_dimension_numbers<[1], [0], [0], [1], [0, 0, 1, 1], [], []>} : vector<2x4xf32>, vector<4x512xf32>, vector<2x512xf32> -> vector<2x512xf32>
    %cst_42 = arith.constant dense<0.000000e+00> : vector<2x512xf32>
    %109 = tpu.matmul %83, %4, %cst_42 {dimension_numbers = #tpu.dot_dimension_numbers<[1], [0], [0], [1], [0, 0, 1, 1], [], []>} : vector<2x128xf32>, vector<128x512xf32>, vector<2x512xf32> -> vector<2x512xf32>
    %110 = arith.addf %108, %109 : vector<2x512xf32>
    %111 = arith.addf %110, %7 : vector<2x512xf32>
    %112 = vector.extract_strided_slice %111 {offsets = [0, 0], sizes = [2, 128], strides = [1, 1]} : vector<2x512xf32> to vector<2x128xf32>
    %113 = arith.negf %112 : vector<2x128xf32>
    %114 = math.exp %113 : vector<2x128xf32>
    %cst_43 = arith.constant 1.000000e+00 : f32
    %115 = vector.broadcast %cst_43 : f32 to vector<2x128xf32>
    %116 = arith.addf %115, %114 : vector<2x128xf32>
    %117 = arith.divf %115, %116 : vector<2x128xf32>
    %118 = vector.extract_strided_slice %111 {offsets = [0, 128], sizes = [2, 128], strides = [1, 1]} : vector<2x512xf32> to vector<2x128xf32>
    %119 = arith.negf %118 : vector<2x128xf32>
    %120 = math.exp %119 : vector<2x128xf32>
    %cst_44 = arith.constant 1.000000e+00 : f32
    %121 = vector.broadcast %cst_44 : f32 to vector<2x128xf32>
    %122 = arith.addf %121, %120 : vector<2x128xf32>
    %123 = arith.divf %121, %122 : vector<2x128xf32>
    %124 = vector.extract_strided_slice %111 {offsets = [0, 256], sizes = [2, 128], strides = [1, 1]} : vector<2x512xf32> to vector<2x128xf32>
    %125 = math.tanh %124 : vector<2x128xf32>
    %126 = vector.extract_strided_slice %111 {offsets = [0, 384], sizes = [2, 128], strides = [1, 1]} : vector<2x512xf32> to vector<2x128xf32>
    %127 = arith.negf %126 : vector<2x128xf32>
    %128 = math.exp %127 : vector<2x128xf32>
    %cst_45 = arith.constant 1.000000e+00 : f32
    %129 = vector.broadcast %cst_45 : f32 to vector<2x128xf32>
    %130 = arith.addf %129, %128 : vector<2x128xf32>
    %131 = arith.divf %129, %130 : vector<2x128xf32>
    %132 = arith.mulf %123, %84 : vector<2x128xf32>
    %133 = arith.mulf %117, %125 : vector<2x128xf32>
    %134 = arith.addf %132, %133 : vector<2x128xf32>
    %135 = math.tanh %134 : vector<2x128xf32>
    %136 = arith.mulf %131, %135 : vector<2x128xf32>
    %137 = arith.mulf %136, %105 : vector<2x128xf32>
    %138 = arith.mulf %134, %105 : vector<2x128xf32>
    %139 = arith.mulf %138, %10 : vector<2x128xf32>
    %cst_46 = arith.constant dense<0.000000e+00> : vector<2xf32>
    %140 = vector.multi_reduction <add>, %139, %cst_46 [1] : vector<2x128xf32> to vector<2xf32>
    %141 = vector.shape_cast %140 : vector<2xf32> to vector<2x1xf32>
    %142 = vector.broadcast %11 : vector<1x1xf32> to vector<2x1xf32>
    %143 = arith.addf %141, %142 : vector<2x1xf32>
    %144 = arith.negf %143 : vector<2x1xf32>
    %145 = math.exp %144 : vector<2x1xf32>
    %cst_47 = arith.constant 1.000000e+00 : f32
    %146 = vector.broadcast %cst_47 : f32 to vector<2x1xf32>
    %147 = arith.addf %146, %145 : vector<2x1xf32>
    %148 = arith.divf %146, %147 : vector<2x1xf32>
    %149 = arith.mulf %148, %103 : vector<2x1xf32>
    %150 = arith.mulf %83, %107 : vector<2x128xf32>
    %151 = arith.mulf %84, %107 : vector<2x128xf32>
    %152 = arith.addf %85, %86 : vector<2x1xf32>
    %cst_48 = arith.constant 0.000000e+00 : f32
    %cst_49 = arith.constant 1.000000e+00 : f32
    %153 = vector.broadcast %cst_48 : f32 to vector<2x1xf32>
    %154 = arith.maximumf %153, %152 : vector<2x1xf32>
    %155 = vector.broadcast %cst_49 : f32 to vector<2x1xf32>
    %156 = arith.minimumf %155, %154 : vector<2x1xf32>
    %cst_50 = arith.constant 1.000000e+00 : f32
    %157 = vector.broadcast %cst_50 : f32 to vector<2x1xf32>
    %158 = arith.subf %157, %103 : vector<2x1xf32>
    %159 = arith.mulf %156, %158 : vector<2x1xf32>
    %cst_51 = arith.constant 5.000000e-01 : f32
    %160 = vector.broadcast %cst_51 : f32 to vector<2x1xf32>
    %161 = arith.cmpf ogt, %90, %160 : vector<2x1xf32>
    %162 = vector.shape_cast %161 : vector<2x1xi1> to vector<2x1xi1>
    %163 = vector.broadcast %162 : vector<2x1xi1> to vector<2x128xi1>
    %164 = arith.select %163, %150, %137 : vector<2x128xi1>, vector<2x128xf32>
    %165 = arith.select %163, %151, %138 : vector<2x128xi1>, vector<2x128xf32>
    %166 = arith.select %161, %159, %149 : vector<2x1xi1>, vector<2x1xf32>
    %167 = arith.select %161, %86, %148 : vector<2x1xi1>, vector<2x1xf32>
    %cst_52 = arith.constant 5.000000e-01 : f32
    %168 = vector.broadcast %cst_52 : f32 to vector<2x1xf32>
    %169 = arith.cmpf olt, %166, %168 : vector<2x1xf32>
    %170 = arith.extui %169 : vector<2x1xi1> to vector<2x1xi32>
    %171 = arith.sitofp %170 : vector<2x1xi32> to vector<2x1xf32>
    %172 = arith.index_cast %c1_i32 : i32 to index
    %c0_53 = arith.constant 0 : index
    %c0_54 = arith.constant 0 : index
    %173 = vector.load %arg12[%172, %c0_53, %c0_54] : memref<8x2x128xf32, #tpu.memory_space<vmem>>, vector<1x2x128xf32>
    %174 = vector.shape_cast %173 : vector<1x2x128xf32> to vector<2x128xf32>
    %175 = vector.shape_cast %164 : vector<2x128xf32> to vector<1x2x128xf32>
    tpu.vector_store %arg12[%172, %c0_53, %c0_54], %175 {strides = array<i32>} : memref<8x2x128xf32, #tpu.memory_space<vmem>>, vector<1x2x128xf32>,
    %176 = vector.broadcast %c1_i32 : i32 to vector<2x8xi32>
    %177 = arith.cmpi eq, %12, %176 : vector<2x8xi32>
    %178 = vector.shape_cast %103 : vector<2x1xf32> to vector<2x1xf32>
    %179 = vector.broadcast %178 : vector<2x1xf32> to vector<2x8xf32>
    %180 = arith.select %177, %179, %99 : vector<2x8xi1>, vector<2x8xf32>
    %c2_i32 = arith.constant 2 : i32
    %181 = arith.index_cast %c2_i32 : i32 to index
    %c0_55 = arith.constant 0 : index
    %c0_56 = arith.constant 0 : index
    %182 = vector.load %arg2[%181, %c0_55, %c0_56] : memref<8x2x4xf32, #tpu.memory_space<vmem>>, vector<1x2x4xf32>
    %183 = vector.shape_cast %182 : vector<1x2x4xf32> to vector<2x4xf32>
    %184 = math.roundeven %166 : vector<2x1xf32>
    %185 = vector.shape_cast %184 : vector<2x1xf32> to vector<2x1xf32>
    %186 = vector.broadcast %185 : vector<2x1xf32> to vector<2x128xf32>
    %cst_57 = arith.constant 1.000000e+00 : f32
    %187 = vector.broadcast %cst_57 : f32 to vector<2x128xf32>
    %188 = arith.subf %187, %186 : vector<2x128xf32>
    %cst_58 = arith.constant dense<0.000000e+00> : vector<2x512xf32>
    %189 = tpu.matmul %183, %3, %cst_58 {dimension_numbers = #tpu.dot_dimension_numbers<[1], [0], [0], [1], [0, 0, 1, 1], [], []>} : vector<2x4xf32>, vector<4x512xf32>, vector<2x512xf32> -> vector<2x512xf32>
    %cst_59 = arith.constant dense<0.000000e+00> : vector<2x512xf32>
    %190 = tpu.matmul %164, %4, %cst_59 {dimension_numbers = #tpu.dot_dimension_numbers<[1], [0], [0], [1], [0, 0, 1, 1], [], []>} : vector<2x128xf32>, vector<128x512xf32>, vector<2x512xf32> -> vector<2x512xf32>
    %191 = arith.addf %189, %190 : vector<2x512xf32>
    %192 = arith.addf %191, %7 : vector<2x512xf32>
    %193 = vector.extract_strided_slice %192 {offsets = [0, 0], sizes = [2, 128], strides = [1, 1]} : vector<2x512xf32> to vector<2x128xf32>
    %194 = arith.negf %193 : vector<2x128xf32>
    %195 = math.exp %194 : vector<2x128xf32>
    %cst_60 = arith.constant 1.000000e+00 : f32
    %196 = vector.broadcast %cst_60 : f32 to vector<2x128xf32>
    %197 = arith.addf %196, %195 : vector<2x128xf32>
    %198 = arith.divf %196, %197 : vector<2x128xf32>
    %199 = vector.extract_strided_slice %192 {offsets = [0, 128], sizes = [2, 128], strides = [1, 1]} : vector<2x512xf32> to vector<2x128xf32>
    %200 = arith.negf %199 : vector<2x128xf32>
    %201 = math.exp %200 : vector<2x128xf32>
    %cst_61 = arith.constant 1.000000e+00 : f32
    %202 = vector.broadcast %cst_61 : f32 to vector<2x128xf32>
    %203 = arith.addf %202, %201 : vector<2x128xf32>
    %204 = arith.divf %202, %203 : vector<2x128xf32>
    %205 = vector.extract_strided_slice %192 {offsets = [0, 256], sizes = [2, 128], strides = [1, 1]} : vector<2x512xf32> to vector<2x128xf32>
    %206 = math.tanh %205 : vector<2x128xf32>
    %207 = vector.extract_strided_slice %192 {offsets = [0, 384], sizes = [2, 128], strides = [1, 1]} : vector<2x512xf32> to vector<2x128xf32>
    %208 = arith.negf %207 : vector<2x128xf32>
    %209 = math.exp %208 : vector<2x128xf32>
    %cst_62 = arith.constant 1.000000e+00 : f32
    %210 = vector.broadcast %cst_62 : f32 to vector<2x128xf32>
    %211 = arith.addf %210, %209 : vector<2x128xf32>
    %212 = arith.divf %210, %211 : vector<2x128xf32>
    %213 = arith.mulf %204, %165 : vector<2x128xf32>
    %214 = arith.mulf %198, %206 : vector<2x128xf32>
    %215 = arith.addf %213, %214 : vector<2x128xf32>
    %216 = math.tanh %215 : vector<2x128xf32>
    %217 = arith.mulf %212, %216 : vector<2x128xf32>
    %218 = arith.mulf %217, %186 : vector<2x128xf32>
    %219 = arith.mulf %215, %186 : vector<2x128xf32>
    %220 = arith.mulf %219, %10 : vector<2x128xf32>
    %cst_63 = arith.constant dense<0.000000e+00> : vector<2xf32>
    %221 = vector.multi_reduction <add>, %220, %cst_63 [1] : vector<2x128xf32> to vector<2xf32>
    %222 = vector.shape_cast %221 : vector<2xf32> to vector<2x1xf32>
    %223 = vector.broadcast %11 : vector<1x1xf32> to vector<2x1xf32>
    %224 = arith.addf %222, %223 : vector<2x1xf32>
    %225 = arith.negf %224 : vector<2x1xf32>
    %226 = math.exp %225 : vector<2x1xf32>
    %cst_64 = arith.constant 1.000000e+00 : f32
    %227 = vector.broadcast %cst_64 : f32 to vector<2x1xf32>
    %228 = arith.addf %227, %226 : vector<2x1xf32>
    %229 = arith.divf %227, %228 : vector<2x1xf32>
    %230 = arith.mulf %229, %184 : vector<2x1xf32>
    %231 = arith.mulf %164, %188 : vector<2x128xf32>
    %232 = arith.mulf %165, %188 : vector<2x128xf32>
    %233 = arith.addf %166, %167 : vector<2x1xf32>
    %cst_65 = arith.constant 0.000000e+00 : f32
    %cst_66 = arith.constant 1.000000e+00 : f32
    %234 = vector.broadcast %cst_65 : f32 to vector<2x1xf32>
    %235 = arith.maximumf %234, %233 : vector<2x1xf32>
    %236 = vector.broadcast %cst_66 : f32 to vector<2x1xf32>
    %237 = arith.minimumf %236, %235 : vector<2x1xf32>
    %cst_67 = arith.constant 1.000000e+00 : f32
    %238 = vector.broadcast %cst_67 : f32 to vector<2x1xf32>
    %239 = arith.subf %238, %184 : vector<2x1xf32>
    %240 = arith.mulf %237, %239 : vector<2x1xf32>
    %cst_68 = arith.constant 5.000000e-01 : f32
    %241 = vector.broadcast %cst_68 : f32 to vector<2x1xf32>
    %242 = arith.cmpf ogt, %171, %241 : vector<2x1xf32>
    %243 = vector.shape_cast %242 : vector<2x1xi1> to vector<2x1xi1>
    %244 = vector.broadcast %243 : vector<2x1xi1> to vector<2x128xi1>
    %245 = arith.select %244, %231, %218 : vector<2x128xi1>, vector<2x128xf32>
    %246 = arith.select %244, %232, %219 : vector<2x128xi1>, vector<2x128xf32>
    %247 = arith.select %242, %240, %230 : vector<2x1xi1>, vector<2x1xf32>
    %248 = arith.select %242, %167, %229 : vector<2x1xi1>, vector<2x1xf32>
    %cst_69 = arith.constant 5.000000e-01 : f32
    %249 = vector.broadcast %cst_69 : f32 to vector<2x1xf32>
    %250 = arith.cmpf olt, %247, %249 : vector<2x1xf32>
    %251 = arith.extui %250 : vector<2x1xi1> to vector<2x1xi32>
    %252 = arith.sitofp %251 : vector<2x1xi32> to vector<2x1xf32>
    %253 = arith.index_cast %c2_i32 : i32 to index
    %c0_70 = arith.constant 0 : index
    %c0_71 = arith.constant 0 : index
    %254 = vector.load %arg12[%253, %c0_70, %c0_71] : memref<8x2x128xf32, #tpu.memory_space<vmem>>, vector<1x2x128xf32>
    %255 = vector.shape_cast %254 : vector<1x2x128xf32> to vector<2x128xf32>
    %256 = vector.shape_cast %245 : vector<2x128xf32> to vector<1x2x128xf32>
    tpu.vector_store %arg12[%253, %c0_70, %c0_71], %256 {strides = array<i32>} : memref<8x2x128xf32, #tpu.memory_space<vmem>>, vector<1x2x128xf32>,
    %257 = vector.broadcast %c2_i32 : i32 to vector<2x8xi32>
    %258 = arith.cmpi eq, %12, %257 : vector<2x8xi32>
    %259 = vector.shape_cast %184 : vector<2x1xf32> to vector<2x1xf32>
    %260 = vector.broadcast %259 : vector<2x1xf32> to vector<2x8xf32>
    %261 = arith.select %258, %260, %180 : vector<2x8xi1>, vector<2x8xf32>
    %c3_i32 = arith.constant 3 : i32
    %262 = arith.index_cast %c3_i32 : i32 to index
    %c0_72 = arith.constant 0 : index
    %c0_73 = arith.constant 0 : index
    %263 = vector.load %arg2[%262, %c0_72, %c0_73] : memref<8x2x4xf32, #tpu.memory_space<vmem>>, vector<1x2x4xf32>
    %264 = vector.shape_cast %263 : vector<1x2x4xf32> to vector<2x4xf32>
    %265 = math.roundeven %247 : vector<2x1xf32>
    %266 = vector.shape_cast %265 : vector<2x1xf32> to vector<2x1xf32>
    %267 = vector.broadcast %266 : vector<2x1xf32> to vector<2x128xf32>
    %cst_74 = arith.constant 1.000000e+00 : f32
    %268 = vector.broadcast %cst_74 : f32 to vector<2x128xf32>
    %269 = arith.subf %268, %267 : vector<2x128xf32>
    %cst_75 = arith.constant dense<0.000000e+00> : vector<2x512xf32>
    %270 = tpu.matmul %264, %3, %cst_75 {dimension_numbers = #tpu.dot_dimension_numbers<[1], [0], [0], [1], [0, 0, 1, 1], [], []>} : vector<2x4xf32>, vector<4x512xf32>, vector<2x512xf32> -> vector<2x512xf32>
    %cst_76 = arith.constant dense<0.000000e+00> : vector<2x512xf32>
    %271 = tpu.matmul %245, %4, %cst_76 {dimension_numbers = #tpu.dot_dimension_numbers<[1], [0], [0], [1], [0, 0, 1, 1], [], []>} : vector<2x128xf32>, vector<128x512xf32>, vector<2x512xf32> -> vector<2x512xf32>
    %272 = arith.addf %270, %271 : vector<2x512xf32>
    %273 = arith.addf %272, %7 : vector<2x512xf32>
    %274 = vector.extract_strided_slice %273 {offsets = [0, 0], sizes = [2, 128], strides = [1, 1]} : vector<2x512xf32> to vector<2x128xf32>
    %275 = arith.negf %274 : vector<2x128xf32>
    %276 = math.exp %275 : vector<2x128xf32>
    %cst_77 = arith.constant 1.000000e+00 : f32
    %277 = vector.broadcast %cst_77 : f32 to vector<2x128xf32>
    %278 = arith.addf %277, %276 : vector<2x128xf32>
    %279 = arith.divf %277, %278 : vector<2x128xf32>
    %280 = vector.extract_strided_slice %273 {offsets = [0, 128], sizes = [2, 128], strides = [1, 1]} : vector<2x512xf32> to vector<2x128xf32>
    %281 = arith.negf %280 : vector<2x128xf32>
    %282 = math.exp %281 : vector<2x128xf32>
    %cst_78 = arith.constant 1.000000e+00 : f32
    %283 = vector.broadcast %cst_78 : f32 to vector<2x128xf32>
    %284 = arith.addf %283, %282 : vector<2x128xf32>
    %285 = arith.divf %283, %284 : vector<2x128xf32>
    %286 = vector.extract_strided_slice %273 {offsets = [0, 256], sizes = [2, 128], strides = [1, 1]} : vector<2x512xf32> to vector<2x128xf32>
    %287 = math.tanh %286 : vector<2x128xf32>
    %288 = vector.extract_strided_slice %273 {offsets = [0, 384], sizes = [2, 128], strides = [1, 1]} : vector<2x512xf32> to vector<2x128xf32>
    %289 = arith.negf %288 : vector<2x128xf32>
    %290 = math.exp %289 : vector<2x128xf32>
    %cst_79 = arith.constant 1.000000e+00 : f32
    %291 = vector.broadcast %cst_79 : f32 to vector<2x128xf32>
    %292 = arith.addf %291, %290 : vector<2x128xf32>
    %293 = arith.divf %291, %292 : vector<2x128xf32>
    %294 = arith.mulf %285, %246 : vector<2x128xf32>
    %295 = arith.mulf %279, %287 : vector<2x128xf32>
    %296 = arith.addf %294, %295 : vector<2x128xf32>
    %297 = math.tanh %296 : vector<2x128xf32>
    %298 = arith.mulf %293, %297 : vector<2x128xf32>
    %299 = arith.mulf %298, %267 : vector<2x128xf32>
    %300 = arith.mulf %296, %267 : vector<2x128xf32>
    %301 = arith.mulf %300, %10 : vector<2x128xf32>
    %cst_80 = arith.constant dense<0.000000e+00> : vector<2xf32>
    %302 = vector.multi_reduction <add>, %301, %cst_80 [1] : vector<2x128xf32> to vector<2xf32>
    %303 = vector.shape_cast %302 : vector<2xf32> to vector<2x1xf32>
    %304 = vector.broadcast %11 : vector<1x1xf32> to vector<2x1xf32>
    %305 = arith.addf %303, %304 : vector<2x1xf32>
    %306 = arith.negf %305 : vector<2x1xf32>
    %307 = math.exp %306 : vector<2x1xf32>
    %cst_81 = arith.constant 1.000000e+00 : f32
    %308 = vector.broadcast %cst_81 : f32 to vector<2x1xf32>
    %309 = arith.addf %308, %307 : vector<2x1xf32>
    %310 = arith.divf %308, %309 : vector<2x1xf32>
    %311 = arith.mulf %310, %265 : vector<2x1xf32>
    %312 = arith.mulf %245, %269 : vector<2x128xf32>
    %313 = arith.mulf %246, %269 : vector<2x128xf32>
    %314 = arith.addf %247, %248 : vector<2x1xf32>
    %cst_82 = arith.constant 0.000000e+00 : f32
    %cst_83 = arith.constant 1.000000e+00 : f32
    %315 = vector.broadcast %cst_82 : f32 to vector<2x1xf32>
    %316 = arith.maximumf %315, %314 : vector<2x1xf32>
    %317 = vector.broadcast %cst_83 : f32 to vector<2x1xf32>
    %318 = arith.minimumf %317, %316 : vector<2x1xf32>
    %cst_84 = arith.constant 1.000000e+00 : f32
    %319 = vector.broadcast %cst_84 : f32 to vector<2x1xf32>
    %320 = arith.subf %319, %265 : vector<2x1xf32>
    %321 = arith.mulf %318, %320 : vector<2x1xf32>
    %cst_85 = arith.constant 5.000000e-01 : f32
    %322 = vector.broadcast %cst_85 : f32 to vector<2x1xf32>
    %323 = arith.cmpf ogt, %252, %322 : vector<2x1xf32>
    %324 = vector.shape_cast %323 : vector<2x1xi1> to vector<2x1xi1>
    %325 = vector.broadcast %324 : vector<2x1xi1> to vector<2x128xi1>
    %326 = arith.select %325, %312, %299 : vector<2x128xi1>, vector<2x128xf32>
    %327 = arith.select %325, %313, %300 : vector<2x128xi1>, vector<2x128xf32>
    %328 = arith.select %323, %321, %311 : vector<2x1xi1>, vector<2x1xf32>
    %329 = arith.select %323, %248, %310 : vector<2x1xi1>, vector<2x1xf32>
    %cst_86 = arith.constant 5.000000e-01 : f32
    %330 = vector.broadcast %cst_86 : f32 to vector<2x1xf32>
    %331 = arith.cmpf olt, %328, %330 : vector<2x1xf32>
    %332 = arith.extui %331 : vector<2x1xi1> to vector<2x1xi32>
    %333 = arith.sitofp %332 : vector<2x1xi32> to vector<2x1xf32>
    %334 = arith.index_cast %c3_i32 : i32 to index
    %c0_87 = arith.constant 0 : index
    %c0_88 = arith.constant 0 : index
    %335 = vector.load %arg12[%334, %c0_87, %c0_88] : memref<8x2x128xf32, #tpu.memory_space<vmem>>, vector<1x2x128xf32>
    %336 = vector.shape_cast %335 : vector<1x2x128xf32> to vector<2x128xf32>
    %337 = vector.shape_cast %326 : vector<2x128xf32> to vector<1x2x128xf32>
    tpu.vector_store %arg12[%334, %c0_87, %c0_88], %337 {strides = array<i32>} : memref<8x2x128xf32, #tpu.memory_space<vmem>>, vector<1x2x128xf32>,
    %338 = vector.broadcast %c3_i32 : i32 to vector<2x8xi32>
    %339 = arith.cmpi eq, %12, %338 : vector<2x8xi32>
    %340 = vector.shape_cast %265 : vector<2x1xf32> to vector<2x1xf32>
    %341 = vector.broadcast %340 : vector<2x1xf32> to vector<2x8xf32>
    %342 = arith.select %339, %341, %261 : vector<2x8xi1>, vector<2x8xf32>
    %c4_i32 = arith.constant 4 : i32
    %343 = arith.index_cast %c4_i32 : i32 to index
    %c0_89 = arith.constant 0 : index
    %c0_90 = arith.constant 0 : index
    %344 = vector.load %arg2[%343, %c0_89, %c0_90] : memref<8x2x4xf32, #tpu.memory_space<vmem>>, vector<1x2x4xf32>
    %345 = vector.shape_cast %344 : vector<1x2x4xf32> to vector<2x4xf32>
    %346 = math.roundeven %328 : vector<2x1xf32>
    %347 = vector.shape_cast %346 : vector<2x1xf32> to vector<2x1xf32>
    %348 = vector.broadcast %347 : vector<2x1xf32> to vector<2x128xf32>
    %cst_91 = arith.constant 1.000000e+00 : f32
    %349 = vector.broadcast %cst_91 : f32 to vector<2x128xf32>
    %350 = arith.subf %349, %348 : vector<2x128xf32>
    %cst_92 = arith.constant dense<0.000000e+00> : vector<2x512xf32>
    %351 = tpu.matmul %345, %3, %cst_92 {dimension_numbers = #tpu.dot_dimension_numbers<[1], [0], [0], [1], [0, 0, 1, 1], [], []>} : vector<2x4xf32>, vector<4x512xf32>, vector<2x512xf32> -> vector<2x512xf32>
    %cst_93 = arith.constant dense<0.000000e+00> : vector<2x512xf32>
    %352 = tpu.matmul %326, %4, %cst_93 {dimension_numbers = #tpu.dot_dimension_numbers<[1], [0], [0], [1], [0, 0, 1, 1], [], []>} : vector<2x128xf32>, vector<128x512xf32>, vector<2x512xf32> -> vector<2x512xf32>
    %353 = arith.addf %351, %352 : vector<2x512xf32>
    %354 = arith.addf %353, %7 : vector<2x512xf32>
    %355 = vector.extract_strided_slice %354 {offsets = [0, 0], sizes = [2, 128], strides = [1, 1]} : vector<2x512xf32> to vector<2x128xf32>
    %356 = arith.negf %355 : vector<2x128xf32>
    %357 = math.exp %356 : vector<2x128xf32>
    %cst_94 = arith.constant 1.000000e+00 : f32
    %358 = vector.broadcast %cst_94 : f32 to vector<2x128xf32>
    %359 = arith.addf %358, %357 : vector<2x128xf32>
    %360 = arith.divf %358, %359 : vector<2x128xf32>
    %361 = vector.extract_strided_slice %354 {offsets = [0, 128], sizes = [2, 128], strides = [1, 1]} : vector<2x512xf32> to vector<2x128xf32>
    %362 = arith.negf %361 : vector<2x128xf32>
    %363 = math.exp %362 : vector<2x128xf32>
    %cst_95 = arith.constant 1.000000e+00 : f32
    %364 = vector.broadcast %cst_95 : f32 to vector<2x128xf32>
    %365 = arith.addf %364, %363 : vector<2x128xf32>
    %366 = arith.divf %364, %365 : vector<2x128xf32>
    %367 = vector.extract_strided_slice %354 {offsets = [0, 256], sizes = [2, 128], strides = [1, 1]} : vector<2x512xf32> to vector<2x128xf32>
    %368 = math.tanh %367 : vector<2x128xf32>
    %369 = vector.extract_strided_slice %354 {offsets = [0, 384], sizes = [2, 128], strides = [1, 1]} : vector<2x512xf32> to vector<2x128xf32>
    %370 = arith.negf %369 : vector<2x128xf32>
    %371 = math.exp %370 : vector<2x128xf32>
    %cst_96 = arith.constant 1.000000e+00 : f32
    %372 = vector.broadcast %cst_96 : f32 to vector<2x128xf32>
    %373 = arith.addf %372, %371 : vector<2x128xf32>
    %374 = arith.divf %372, %373 : vector<2x128xf32>
    %375 = arith.mulf %366, %327 : vector<2x128xf32>
    %376 = arith.mulf %360, %368 : vector<2x128xf32>
    %377 = arith.addf %375, %376 : vector<2x128xf32>
    %378 = math.tanh %377 : vector<2x128xf32>
    %379 = arith.mulf %374, %378 : vector<2x128xf32>
    %380 = arith.mulf %379, %348 : vector<2x128xf32>
    %381 = arith.mulf %377, %348 : vector<2x128xf32>
    %382 = arith.mulf %381, %10 : vector<2x128xf32>
    %cst_97 = arith.constant dense<0.000000e+00> : vector<2xf32>
    %383 = vector.multi_reduction <add>, %382, %cst_97 [1] : vector<2x128xf32> to vector<2xf32>
    %384 = vector.shape_cast %383 : vector<2xf32> to vector<2x1xf32>
    %385 = vector.broadcast %11 : vector<1x1xf32> to vector<2x1xf32>
    %386 = arith.addf %384, %385 : vector<2x1xf32>
    %387 = arith.negf %386 : vector<2x1xf32>
    %388 = math.exp %387 : vector<2x1xf32>
    %cst_98 = arith.constant 1.000000e+00 : f32
    %389 = vector.broadcast %cst_98 : f32 to vector<2x1xf32>
    %390 = arith.addf %389, %388 : vector<2x1xf32>
    %391 = arith.divf %389, %390 : vector<2x1xf32>
    %392 = arith.mulf %391, %346 : vector<2x1xf32>
    %393 = arith.mulf %326, %350 : vector<2x128xf32>
    %394 = arith.mulf %327, %350 : vector<2x128xf32>
    %395 = arith.addf %328, %329 : vector<2x1xf32>
    %cst_99 = arith.constant 0.000000e+00 : f32
    %cst_100 = arith.constant 1.000000e+00 : f32
    %396 = vector.broadcast %cst_99 : f32 to vector<2x1xf32>
    %397 = arith.maximumf %396, %395 : vector<2x1xf32>
    %398 = vector.broadcast %cst_100 : f32 to vector<2x1xf32>
    %399 = arith.minimumf %398, %397 : vector<2x1xf32>
    %cst_101 = arith.constant 1.000000e+00 : f32
    %400 = vector.broadcast %cst_101 : f32 to vector<2x1xf32>
    %401 = arith.subf %400, %346 : vector<2x1xf32>
    %402 = arith.mulf %399, %401 : vector<2x1xf32>
    %cst_102 = arith.constant 5.000000e-01 : f32
    %403 = vector.broadcast %cst_102 : f32 to vector<2x1xf32>
    %404 = arith.cmpf ogt, %333, %403 : vector<2x1xf32>
    %405 = vector.shape_cast %404 : vector<2x1xi1> to vector<2x1xi1>
    %406 = vector.broadcast %405 : vector<2x1xi1> to vector<2x128xi1>
    %407 = arith.select %406, %393, %380 : vector<2x128xi1>, vector<2x128xf32>
    %408 = arith.select %406, %394, %381 : vector<2x128xi1>, vector<2x128xf32>
    %409 = arith.select %404, %402, %392 : vector<2x1xi1>, vector<2x1xf32>
    %410 = arith.select %404, %329, %391 : vector<2x1xi1>, vector<2x1xf32>
    %cst_103 = arith.constant 5.000000e-01 : f32
    %411 = vector.broadcast %cst_103 : f32 to vector<2x1xf32>
    %412 = arith.cmpf olt, %409, %411 : vector<2x1xf32>
    %413 = arith.extui %412 : vector<2x1xi1> to vector<2x1xi32>
    %414 = arith.sitofp %413 : vector<2x1xi32> to vector<2x1xf32>
    %415 = arith.index_cast %c4_i32 : i32 to index
    %c0_104 = arith.constant 0 : index
    %c0_105 = arith.constant 0 : index
    %416 = vector.load %arg12[%415, %c0_104, %c0_105] : memref<8x2x128xf32, #tpu.memory_space<vmem>>, vector<1x2x128xf32>
    %417 = vector.shape_cast %416 : vector<1x2x128xf32> to vector<2x128xf32>
    %418 = vector.shape_cast %407 : vector<2x128xf32> to vector<1x2x128xf32>
    tpu.vector_store %arg12[%415, %c0_104, %c0_105], %418 {strides = array<i32>} : memref<8x2x128xf32, #tpu.memory_space<vmem>>, vector<1x2x128xf32>,
    %419 = vector.broadcast %c4_i32 : i32 to vector<2x8xi32>
    %420 = arith.cmpi eq, %12, %419 : vector<2x8xi32>
    %421 = vector.shape_cast %346 : vector<2x1xf32> to vector<2x1xf32>
    %422 = vector.broadcast %421 : vector<2x1xf32> to vector<2x8xf32>
    %423 = arith.select %420, %422, %342 : vector<2x8xi1>, vector<2x8xf32>
    %c5_i32 = arith.constant 5 : i32
    %424 = arith.index_cast %c5_i32 : i32 to index
    %c0_106 = arith.constant 0 : index
    %c0_107 = arith.constant 0 : index
    %425 = vector.load %arg2[%424, %c0_106, %c0_107] : memref<8x2x4xf32, #tpu.memory_space<vmem>>, vector<1x2x4xf32>
    %426 = vector.shape_cast %425 : vector<1x2x4xf32> to vector<2x4xf32>
    %427 = math.roundeven %409 : vector<2x1xf32>
    %428 = vector.shape_cast %427 : vector<2x1xf32> to vector<2x1xf32>
    %429 = vector.broadcast %428 : vector<2x1xf32> to vector<2x128xf32>
    %cst_108 = arith.constant 1.000000e+00 : f32
    %430 = vector.broadcast %cst_108 : f32 to vector<2x128xf32>
    %431 = arith.subf %430, %429 : vector<2x128xf32>
    %cst_109 = arith.constant dense<0.000000e+00> : vector<2x512xf32>
    %432 = tpu.matmul %426, %3, %cst_109 {dimension_numbers = #tpu.dot_dimension_numbers<[1], [0], [0], [1], [0, 0, 1, 1], [], []>} : vector<2x4xf32>, vector<4x512xf32>, vector<2x512xf32> -> vector<2x512xf32>
    %cst_110 = arith.constant dense<0.000000e+00> : vector<2x512xf32>
    %433 = tpu.matmul %407, %4, %cst_110 {dimension_numbers = #tpu.dot_dimension_numbers<[1], [0], [0], [1], [0, 0, 1, 1], [], []>} : vector<2x128xf32>, vector<128x512xf32>, vector<2x512xf32> -> vector<2x512xf32>
    %434 = arith.addf %432, %433 : vector<2x512xf32>
    %435 = arith.addf %434, %7 : vector<2x512xf32>
    %436 = vector.extract_strided_slice %435 {offsets = [0, 0], sizes = [2, 128], strides = [1, 1]} : vector<2x512xf32> to vector<2x128xf32>
    %437 = arith.negf %436 : vector<2x128xf32>
    %438 = math.exp %437 : vector<2x128xf32>
    %cst_111 = arith.constant 1.000000e+00 : f32
    %439 = vector.broadcast %cst_111 : f32 to vector<2x128xf32>
    %440 = arith.addf %439, %438 : vector<2x128xf32>
    %441 = arith.divf %439, %440 : vector<2x128xf32>
    %442 = vector.extract_strided_slice %435 {offsets = [0, 128], sizes = [2, 128], strides = [1, 1]} : vector<2x512xf32> to vector<2x128xf32>
    %443 = arith.negf %442 : vector<2x128xf32>
    %444 = math.exp %443 : vector<2x128xf32>
    %cst_112 = arith.constant 1.000000e+00 : f32
    %445 = vector.broadcast %cst_112 : f32 to vector<2x128xf32>
    %446 = arith.addf %445, %444 : vector<2x128xf32>
    %447 = arith.divf %445, %446 : vector<2x128xf32>
    %448 = vector.extract_strided_slice %435 {offsets = [0, 256], sizes = [2, 128], strides = [1, 1]} : vector<2x512xf32> to vector<2x128xf32>
    %449 = math.tanh %448 : vector<2x128xf32>
    %450 = vector.extract_strided_slice %435 {offsets = [0, 384], sizes = [2, 128], strides = [1, 1]} : vector<2x512xf32> to vector<2x128xf32>
    %451 = arith.negf %450 : vector<2x128xf32>
    %452 = math.exp %451 : vector<2x128xf32>
    %cst_113 = arith.constant 1.000000e+00 : f32
    %453 = vector.broadcast %cst_113 : f32 to vector<2x128xf32>
    %454 = arith.addf %453, %452 : vector<2x128xf32>
    %455 = arith.divf %453, %454 : vector<2x128xf32>
    %456 = arith.mulf %447, %408 : vector<2x128xf32>
    %457 = arith.mulf %441, %449 : vector<2x128xf32>
    %458 = arith.addf %456, %457 : vector<2x128xf32>
    %459 = math.tanh %458 : vector<2x128xf32>
    %460 = arith.mulf %455, %459 : vector<2x128xf32>
    %461 = arith.mulf %460, %429 : vector<2x128xf32>
    %462 = arith.mulf %458, %429 : vector<2x128xf32>
    %463 = arith.mulf %462, %10 : vector<2x128xf32>
    %cst_114 = arith.constant dense<0.000000e+00> : vector<2xf32>
    %464 = vector.multi_reduction <add>, %463, %cst_114 [1] : vector<2x128xf32> to vector<2xf32>
    %465 = vector.shape_cast %464 : vector<2xf32> to vector<2x1xf32>
    %466 = vector.broadcast %11 : vector<1x1xf32> to vector<2x1xf32>
    %467 = arith.addf %465, %466 : vector<2x1xf32>
    %468 = arith.negf %467 : vector<2x1xf32>
    %469 = math.exp %468 : vector<2x1xf32>
    %cst_115 = arith.constant 1.000000e+00 : f32
    %470 = vector.broadcast %cst_115 : f32 to vector<2x1xf32>
    %471 = arith.addf %470, %469 : vector<2x1xf32>
    %472 = arith.divf %470, %471 : vector<2x1xf32>
    %473 = arith.mulf %472, %427 : vector<2x1xf32>
    %474 = arith.mulf %407, %431 : vector<2x128xf32>
    %475 = arith.mulf %408, %431 : vector<2x128xf32>
    %476 = arith.addf %409, %410 : vector<2x1xf32>
    %cst_116 = arith.constant 0.000000e+00 : f32
    %cst_117 = arith.constant 1.000000e+00 : f32
    %477 = vector.broadcast %cst_116 : f32 to vector<2x1xf32>
    %478 = arith.maximumf %477, %476 : vector<2x1xf32>
    %479 = vector.broadcast %cst_117 : f32 to vector<2x1xf32>
    %480 = arith.minimumf %479, %478 : vector<2x1xf32>
    %cst_118 = arith.constant 1.000000e+00 : f32
    %481 = vector.broadcast %cst_118 : f32 to vector<2x1xf32>
    %482 = arith.subf %481, %427 : vector<2x1xf32>
    %483 = arith.mulf %480, %482 : vector<2x1xf32>
    %cst_119 = arith.constant 5.000000e-01 : f32
    %484 = vector.broadcast %cst_119 : f32 to vector<2x1xf32>
    %485 = arith.cmpf ogt, %414, %484 : vector<2x1xf32>
    %486 = vector.shape_cast %485 : vector<2x1xi1> to vector<2x1xi1>
    %487 = vector.broadcast %486 : vector<2x1xi1> to vector<2x128xi1>
    %488 = arith.select %487, %474, %461 : vector<2x128xi1>, vector<2x128xf32>
    %489 = arith.select %487, %475, %462 : vector<2x128xi1>, vector<2x128xf32>
    %490 = arith.select %485, %483, %473 : vector<2x1xi1>, vector<2x1xf32>
    %491 = arith.select %485, %410, %472 : vector<2x1xi1>, vector<2x1xf32>
    %cst_120 = arith.constant 5.000000e-01 : f32
    %492 = vector.broadcast %cst_120 : f32 to vector<2x1xf32>
    %493 = arith.cmpf olt, %490, %492 : vector<2x1xf32>
    %494 = arith.extui %493 : vector<2x1xi1> to vector<2x1xi32>
    %495 = arith.sitofp %494 : vector<2x1xi32> to vector<2x1xf32>
    %496 = arith.index_cast %c5_i32 : i32 to index
    %c0_121 = arith.constant 0 : index
    %c0_122 = arith.constant 0 : index
    %497 = vector.load %arg12[%496, %c0_121, %c0_122] : memref<8x2x128xf32, #tpu.memory_space<vmem>>, vector<1x2x128xf32>
    %498 = vector.shape_cast %497 : vector<1x2x128xf32> to vector<2x128xf32>
    %499 = vector.shape_cast %488 : vector<2x128xf32> to vector<1x2x128xf32>
    tpu.vector_store %arg12[%496, %c0_121, %c0_122], %499 {strides = array<i32>} : memref<8x2x128xf32, #tpu.memory_space<vmem>>, vector<1x2x128xf32>,
    %500 = vector.broadcast %c5_i32 : i32 to vector<2x8xi32>
    %501 = arith.cmpi eq, %12, %500 : vector<2x8xi32>
    %502 = vector.shape_cast %427 : vector<2x1xf32> to vector<2x1xf32>
    %503 = vector.broadcast %502 : vector<2x1xf32> to vector<2x8xf32>
    %504 = arith.select %501, %503, %423 : vector<2x8xi1>, vector<2x8xf32>
    %c6_i32 = arith.constant 6 : i32
    %505 = arith.index_cast %c6_i32 : i32 to index
    %c0_123 = arith.constant 0 : index
    %c0_124 = arith.constant 0 : index
    %506 = vector.load %arg2[%505, %c0_123, %c0_124] : memref<8x2x4xf32, #tpu.memory_space<vmem>>, vector<1x2x4xf32>
    %507 = vector.shape_cast %506 : vector<1x2x4xf32> to vector<2x4xf32>
    %508 = math.roundeven %490 : vector<2x1xf32>
    %509 = vector.shape_cast %508 : vector<2x1xf32> to vector<2x1xf32>
    %510 = vector.broadcast %509 : vector<2x1xf32> to vector<2x128xf32>
    %cst_125 = arith.constant 1.000000e+00 : f32
    %511 = vector.broadcast %cst_125 : f32 to vector<2x128xf32>
    %512 = arith.subf %511, %510 : vector<2x128xf32>
    %cst_126 = arith.constant dense<0.000000e+00> : vector<2x512xf32>
    %513 = tpu.matmul %507, %3, %cst_126 {dimension_numbers = #tpu.dot_dimension_numbers<[1], [0], [0], [1], [0, 0, 1, 1], [], []>} : vector<2x4xf32>, vector<4x512xf32>, vector<2x512xf32> -> vector<2x512xf32>
    %cst_127 = arith.constant dense<0.000000e+00> : vector<2x512xf32>
    %514 = tpu.matmul %488, %4, %cst_127 {dimension_numbers = #tpu.dot_dimension_numbers<[1], [0], [0], [1], [0, 0, 1, 1], [], []>} : vector<2x128xf32>, vector<128x512xf32>, vector<2x512xf32> -> vector<2x512xf32>
    %515 = arith.addf %513, %514 : vector<2x512xf32>
    %516 = arith.addf %515, %7 : vector<2x512xf32>
    %517 = vector.extract_strided_slice %516 {offsets = [0, 0], sizes = [2, 128], strides = [1, 1]} : vector<2x512xf32> to vector<2x128xf32>
    %518 = arith.negf %517 : vector<2x128xf32>
    %519 = math.exp %518 : vector<2x128xf32>
    %cst_128 = arith.constant 1.000000e+00 : f32
    %520 = vector.broadcast %cst_128 : f32 to vector<2x128xf32>
    %521 = arith.addf %520, %519 : vector<2x128xf32>
    %522 = arith.divf %520, %521 : vector<2x128xf32>
    %523 = vector.extract_strided_slice %516 {offsets = [0, 128], sizes = [2, 128], strides = [1, 1]} : vector<2x512xf32> to vector<2x128xf32>
    %524 = arith.negf %523 : vector<2x128xf32>
    %525 = math.exp %524 : vector<2x128xf32>
    %cst_129 = arith.constant 1.000000e+00 : f32
    %526 = vector.broadcast %cst_129 : f32 to vector<2x128xf32>
    %527 = arith.addf %526, %525 : vector<2x128xf32>
    %528 = arith.divf %526, %527 : vector<2x128xf32>
    %529 = vector.extract_strided_slice %516 {offsets = [0, 256], sizes = [2, 128], strides = [1, 1]} : vector<2x512xf32> to vector<2x128xf32>
    %530 = math.tanh %529 : vector<2x128xf32>
    %531 = vector.extract_strided_slice %516 {offsets = [0, 384], sizes = [2, 128], strides = [1, 1]} : vector<2x512xf32> to vector<2x128xf32>
    %532 = arith.negf %531 : vector<2x128xf32>
    %533 = math.exp %532 : vector<2x128xf32>
    %cst_130 = arith.constant 1.000000e+00 : f32
    %534 = vector.broadcast %cst_130 : f32 to vector<2x128xf32>
    %535 = arith.addf %534, %533 : vector<2x128xf32>
    %536 = arith.divf %534, %535 : vector<2x128xf32>
    %537 = arith.mulf %528, %489 : vector<2x128xf32>
    %538 = arith.mulf %522, %530 : vector<2x128xf32>
    %539 = arith.addf %537, %538 : vector<2x128xf32>
    %540 = math.tanh %539 : vector<2x128xf32>
    %541 = arith.mulf %536, %540 : vector<2x128xf32>
    %542 = arith.mulf %541, %510 : vector<2x128xf32>
    %543 = arith.mulf %539, %510 : vector<2x128xf32>
    %544 = arith.mulf %543, %10 : vector<2x128xf32>
    %cst_131 = arith.constant dense<0.000000e+00> : vector<2xf32>
    %545 = vector.multi_reduction <add>, %544, %cst_131 [1] : vector<2x128xf32> to vector<2xf32>
    %546 = vector.shape_cast %545 : vector<2xf32> to vector<2x1xf32>
    %547 = vector.broadcast %11 : vector<1x1xf32> to vector<2x1xf32>
    %548 = arith.addf %546, %547 : vector<2x1xf32>
    %549 = arith.negf %548 : vector<2x1xf32>
    %550 = math.exp %549 : vector<2x1xf32>
    %cst_132 = arith.constant 1.000000e+00 : f32
    %551 = vector.broadcast %cst_132 : f32 to vector<2x1xf32>
    %552 = arith.addf %551, %550 : vector<2x1xf32>
    %553 = arith.divf %551, %552 : vector<2x1xf32>
    %554 = arith.mulf %553, %508 : vector<2x1xf32>
    %555 = arith.mulf %488, %512 : vector<2x128xf32>
    %556 = arith.mulf %489, %512 : vector<2x128xf32>
    %557 = arith.addf %490, %491 : vector<2x1xf32>
    %cst_133 = arith.constant 0.000000e+00 : f32
    %cst_134 = arith.constant 1.000000e+00 : f32
    %558 = vector.broadcast %cst_133 : f32 to vector<2x1xf32>
    %559 = arith.maximumf %558, %557 : vector<2x1xf32>
    %560 = vector.broadcast %cst_134 : f32 to vector<2x1xf32>
    %561 = arith.minimumf %560, %559 : vector<2x1xf32>
    %cst_135 = arith.constant 1.000000e+00 : f32
    %562 = vector.broadcast %cst_135 : f32 to vector<2x1xf32>
    %563 = arith.subf %562, %508 : vector<2x1xf32>
    %564 = arith.mulf %561, %563 : vector<2x1xf32>
    %cst_136 = arith.constant 5.000000e-01 : f32
    %565 = vector.broadcast %cst_136 : f32 to vector<2x1xf32>
    %566 = arith.cmpf ogt, %495, %565 : vector<2x1xf32>
    %567 = vector.shape_cast %566 : vector<2x1xi1> to vector<2x1xi1>
    %568 = vector.broadcast %567 : vector<2x1xi1> to vector<2x128xi1>
    %569 = arith.select %568, %555, %542 : vector<2x128xi1>, vector<2x128xf32>
    %570 = arith.select %568, %556, %543 : vector<2x128xi1>, vector<2x128xf32>
    %571 = arith.select %566, %564, %554 : vector<2x1xi1>, vector<2x1xf32>
    %572 = arith.select %566, %491, %553 : vector<2x1xi1>, vector<2x1xf32>
    %cst_137 = arith.constant 5.000000e-01 : f32
    %573 = vector.broadcast %cst_137 : f32 to vector<2x1xf32>
    %574 = arith.cmpf olt, %571, %573 : vector<2x1xf32>
    %575 = arith.extui %574 : vector<2x1xi1> to vector<2x1xi32>
    %576 = arith.sitofp %575 : vector<2x1xi32> to vector<2x1xf32>
    %577 = arith.index_cast %c6_i32 : i32 to index
    %c0_138 = arith.constant 0 : index
    %c0_139 = arith.constant 0 : index
    %578 = vector.load %arg12[%577, %c0_138, %c0_139] : memref<8x2x128xf32, #tpu.memory_space<vmem>>, vector<1x2x128xf32>
    %579 = vector.shape_cast %578 : vector<1x2x128xf32> to vector<2x128xf32>
    %580 = vector.shape_cast %569 : vector<2x128xf32> to vector<1x2x128xf32>
    tpu.vector_store %arg12[%577, %c0_138, %c0_139], %580 {strides = array<i32>} : memref<8x2x128xf32, #tpu.memory_space<vmem>>, vector<1x2x128xf32>,
    %581 = vector.broadcast %c6_i32 : i32 to vector<2x8xi32>
    %582 = arith.cmpi eq, %12, %581 : vector<2x8xi32>
    %583 = vector.shape_cast %508 : vector<2x1xf32> to vector<2x1xf32>
    %584 = vector.broadcast %583 : vector<2x1xf32> to vector<2x8xf32>
    %585 = arith.select %582, %584, %504 : vector<2x8xi1>, vector<2x8xf32>
    %c7_i32 = arith.constant 7 : i32
    %586 = arith.index_cast %c7_i32 : i32 to index
    %c0_140 = arith.constant 0 : index
    %c0_141 = arith.constant 0 : index
    %587 = vector.load %arg2[%586, %c0_140, %c0_141] : memref<8x2x4xf32, #tpu.memory_space<vmem>>, vector<1x2x4xf32>
    %588 = vector.shape_cast %587 : vector<1x2x4xf32> to vector<2x4xf32>
    %589 = math.roundeven %571 : vector<2x1xf32>
    %590 = vector.shape_cast %589 : vector<2x1xf32> to vector<2x1xf32>
    %591 = vector.broadcast %590 : vector<2x1xf32> to vector<2x128xf32>
    %cst_142 = arith.constant 1.000000e+00 : f32
    %592 = vector.broadcast %cst_142 : f32 to vector<2x128xf32>
    %593 = arith.subf %592, %591 : vector<2x128xf32>
    %cst_143 = arith.constant dense<0.000000e+00> : vector<2x512xf32>
    %594 = tpu.matmul %588, %3, %cst_143 {dimension_numbers = #tpu.dot_dimension_numbers<[1], [0], [0], [1], [0, 0, 1, 1], [], []>} : vector<2x4xf32>, vector<4x512xf32>, vector<2x512xf32> -> vector<2x512xf32>
    %cst_144 = arith.constant dense<0.000000e+00> : vector<2x512xf32>
    %595 = tpu.matmul %569, %4, %cst_144 {dimension_numbers = #tpu.dot_dimension_numbers<[1], [0], [0], [1], [0, 0, 1, 1], [], []>} : vector<2x128xf32>, vector<128x512xf32>, vector<2x512xf32> -> vector<2x512xf32>
    %596 = arith.addf %594, %595 : vector<2x512xf32>
    %597 = arith.addf %596, %7 : vector<2x512xf32>
    %598 = vector.extract_strided_slice %597 {offsets = [0, 0], sizes = [2, 128], strides = [1, 1]} : vector<2x512xf32> to vector<2x128xf32>
    %599 = arith.negf %598 : vector<2x128xf32>
    %600 = math.exp %599 : vector<2x128xf32>
    %cst_145 = arith.constant 1.000000e+00 : f32
    %601 = vector.broadcast %cst_145 : f32 to vector<2x128xf32>
    %602 = arith.addf %601, %600 : vector<2x128xf32>
    %603 = arith.divf %601, %602 : vector<2x128xf32>
    %604 = vector.extract_strided_slice %597 {offsets = [0, 128], sizes = [2, 128], strides = [1, 1]} : vector<2x512xf32> to vector<2x128xf32>
    %605 = arith.negf %604 : vector<2x128xf32>
    %606 = math.exp %605 : vector<2x128xf32>
    %cst_146 = arith.constant 1.000000e+00 : f32
    %607 = vector.broadcast %cst_146 : f32 to vector<2x128xf32>
    %608 = arith.addf %607, %606 : vector<2x128xf32>
    %609 = arith.divf %607, %608 : vector<2x128xf32>
    %610 = vector.extract_strided_slice %597 {offsets = [0, 256], sizes = [2, 128], strides = [1, 1]} : vector<2x512xf32> to vector<2x128xf32>
    %611 = math.tanh %610 : vector<2x128xf32>
    %612 = vector.extract_strided_slice %597 {offsets = [0, 384], sizes = [2, 128], strides = [1, 1]} : vector<2x512xf32> to vector<2x128xf32>
    %613 = arith.negf %612 : vector<2x128xf32>
    %614 = math.exp %613 : vector<2x128xf32>
    %cst_147 = arith.constant 1.000000e+00 : f32
    %615 = vector.broadcast %cst_147 : f32 to vector<2x128xf32>
    %616 = arith.addf %615, %614 : vector<2x128xf32>
    %617 = arith.divf %615, %616 : vector<2x128xf32>
    %618 = arith.mulf %609, %570 : vector<2x128xf32>
    %619 = arith.mulf %603, %611 : vector<2x128xf32>
    %620 = arith.addf %618, %619 : vector<2x128xf32>
    %621 = math.tanh %620 : vector<2x128xf32>
    %622 = arith.mulf %617, %621 : vector<2x128xf32>
    %623 = arith.mulf %622, %591 : vector<2x128xf32>
    %624 = arith.mulf %620, %591 : vector<2x128xf32>
    %625 = arith.mulf %624, %10 : vector<2x128xf32>
    %cst_148 = arith.constant dense<0.000000e+00> : vector<2xf32>
    %626 = vector.multi_reduction <add>, %625, %cst_148 [1] : vector<2x128xf32> to vector<2xf32>
    %627 = vector.shape_cast %626 : vector<2xf32> to vector<2x1xf32>
    %628 = vector.broadcast %11 : vector<1x1xf32> to vector<2x1xf32>
    %629 = arith.addf %627, %628 : vector<2x1xf32>
    %630 = arith.negf %629 : vector<2x1xf32>
    %631 = math.exp %630 : vector<2x1xf32>
    %cst_149 = arith.constant 1.000000e+00 : f32
    %632 = vector.broadcast %cst_149 : f32 to vector<2x1xf32>
    %633 = arith.addf %632, %631 : vector<2x1xf32>
    %634 = arith.divf %632, %633 : vector<2x1xf32>
    %635 = arith.mulf %634, %589 : vector<2x1xf32>
    %636 = arith.mulf %569, %593 : vector<2x128xf32>
    %637 = arith.mulf %570, %593 : vector<2x128xf32>
    %638 = arith.addf %571, %572 : vector<2x1xf32>
    %cst_150 = arith.constant 0.000000e+00 : f32
    %cst_151 = arith.constant 1.000000e+00 : f32
    %639 = vector.broadcast %cst_150 : f32 to vector<2x1xf32>
    %640 = arith.maximumf %639, %638 : vector<2x1xf32>
    %641 = vector.broadcast %cst_151 : f32 to vector<2x1xf32>
    %642 = arith.minimumf %641, %640 : vector<2x1xf32>
    %cst_152 = arith.constant 1.000000e+00 : f32
    %643 = vector.broadcast %cst_152 : f32 to vector<2x1xf32>
    %644 = arith.subf %643, %589 : vector<2x1xf32>
    %645 = arith.mulf %642, %644 : vector<2x1xf32>
    %cst_153 = arith.constant 5.000000e-01 : f32
    %646 = vector.broadcast %cst_153 : f32 to vector<2x1xf32>
    %647 = arith.cmpf ogt, %576, %646 : vector<2x1xf32>
    %648 = vector.shape_cast %647 : vector<2x1xi1> to vector<2x1xi1>
    %649 = vector.broadcast %648 : vector<2x1xi1> to vector<2x128xi1>
    %650 = arith.select %649, %636, %623 : vector<2x128xi1>, vector<2x128xf32>
    %651 = arith.select %649, %637, %624 : vector<2x128xi1>, vector<2x128xf32>
    %652 = arith.select %647, %645, %635 : vector<2x1xi1>, vector<2x1xf32>
    %653 = arith.select %647, %572, %634 : vector<2x1xi1>, vector<2x1xf32>
    %cst_154 = arith.constant 5.000000e-01 : f32
    %654 = vector.broadcast %cst_154 : f32 to vector<2x1xf32>
    %655 = arith.cmpf olt, %652, %654 : vector<2x1xf32>
    %656 = arith.extui %655 : vector<2x1xi1> to vector<2x1xi32>
    %657 = arith.sitofp %656 : vector<2x1xi32> to vector<2x1xf32>
    %658 = arith.index_cast %c7_i32 : i32 to index
    %c0_155 = arith.constant 0 : index
    %c0_156 = arith.constant 0 : index
    %659 = vector.load %arg12[%658, %c0_155, %c0_156] : memref<8x2x128xf32, #tpu.memory_space<vmem>>, vector<1x2x128xf32>
    %660 = vector.shape_cast %659 : vector<1x2x128xf32> to vector<2x128xf32>
    %661 = vector.shape_cast %650 : vector<2x128xf32> to vector<1x2x128xf32>
    tpu.vector_store %arg12[%658, %c0_155, %c0_156], %661 {strides = array<i32>} : memref<8x2x128xf32, #tpu.memory_space<vmem>>, vector<1x2x128xf32>,
    %662 = vector.broadcast %c7_i32 : i32 to vector<2x8xi32>
    %663 = arith.cmpi eq, %12, %662 : vector<2x8xi32>
    %664 = vector.shape_cast %589 : vector<2x1xf32> to vector<2x1xf32>
    %665 = vector.broadcast %664 : vector<2x1xf32> to vector<2x8xf32>
    %666 = arith.select %663, %665, %585 : vector<2x8xi1>, vector<2x8xf32>
    %c8_i32 = arith.constant 8 : i32
    %c0_157 = arith.constant 0 : index
    %c0_158 = arith.constant 0 : index
    %c0_159 = arith.constant 0 : index
    %667 = vector.load %arg13[%c0_157, %c0_158, %c0_159] : memref<1x2x8xf32, #tpu.memory_space<vmem>>, vector<1x2x8xf32>
    %668 = vector.shape_cast %667 : vector<1x2x8xf32> to vector<2x8xf32>
    %669 = vector.shape_cast %666 : vector<2x8xf32> to vector<1x2x8xf32>
    tpu.vector_store %arg13[%c0_157, %c0_158, %c0_159], %669 {strides = array<i32>} : memref<1x2x8xf32, #tpu.memory_space<vmem>>, vector<1x2x8xf32>,
    %c0_160 = arith.constant 0 : index
    %c0_161 = arith.constant 0 : index
    %670 = vector.load %arg18[%c0_160, %c0_161] : memref<2x128xf32, #tpu.memory_space<vmem>>, vector<2x128xf32>
    tpu.vector_store %arg18[%c0_160, %c0_161], %650 {strides = array<i32>} : memref<2x128xf32, #tpu.memory_space<vmem>>, vector<2x128xf32>,
    %c0_162 = arith.constant 0 : index
    %c0_163 = arith.constant 0 : index
    %671 = vector.load %arg19[%c0_162, %c0_163] : memref<2x128xf32, #tpu.memory_space<vmem>>, vector<2x128xf32>
    tpu.vector_store %arg19[%c0_162, %c0_163], %651 {strides = array<i32>} : memref<2x128xf32, #tpu.memory_space<vmem>>, vector<2x128xf32>,
    %c0_164 = arith.constant 0 : index
    %c0_165 = arith.constant 0 : index
    %672 = vector.load %arg20[%c0_164, %c0_165] : memref<2x1xf32, #tpu.memory_space<vmem>>, vector<2x1xf32>
    tpu.vector_store %arg20[%c0_164, %c0_165], %652 {strides = array<i32>} : memref<2x1xf32, #tpu.memory_space<vmem>>, vector<2x1xf32>,
    %c0_166 = arith.constant 0 : index
    %c0_167 = arith.constant 0 : index
    %673 = vector.load %arg21[%c0_166, %c0_167] : memref<2x1xf32, #tpu.memory_space<vmem>>, vector<2x1xf32>
    tpu.vector_store %arg21[%c0_166, %c0_167], %657 {strides = array<i32>} : memref<2x1xf32, #tpu.memory_space<vmem>>, vector<2x1xf32>,
    %c0_168 = arith.constant 0 : index
    %c0_169 = arith.constant 0 : index
    %674 = vector.load %arg22[%c0_168, %c0_169] : memref<2x1xf32, #tpu.memory_space<vmem>>, vector<2x1xf32>
    tpu.vector_store %arg22[%c0_168, %c0_169], %653 {strides = array<i32>} : memref<2x1xf32, #tpu.memory_space<vmem>>, vector<2x1xf32>,
    %c0_i32_170 = arith.constant 0 : i32
    %675 = arith.cmpi eq, %arg1, %c0_i32_170 : i32
    %676 = arith.extui %675 : i1 to i32
    %c0_i32_171 = arith.constant 0 : i32
    %677 = arith.cmpi ne, %676, %c0_i32_171 : i32
    scf.if %677 {
      %c0_172 = arith.constant 0 : index
      %c0_173 = arith.constant 0 : index
      %678 = vector.load %arg14[%c0_172, %c0_173] : memref<2x128xf32, #tpu.memory_space<vmem>>, vector<2x128xf32>
      tpu.vector_store %arg14[%c0_172, %c0_173], %650 {strides = array<i32>} : memref<2x128xf32, #tpu.memory_space<vmem>>, vector<2x128xf32>,
      %c0_174 = arith.constant 0 : index
      %c0_175 = arith.constant 0 : index
      %679 = vector.load %arg15[%c0_174, %c0_175] : memref<2x128xf32, #tpu.memory_space<vmem>>, vector<2x128xf32>
      tpu.vector_store %arg15[%c0_174, %c0_175], %651 {strides = array<i32>} : memref<2x128xf32, #tpu.memory_space<vmem>>, vector<2x128xf32>,
      %c0_176 = arith.constant 0 : index
      %c0_177 = arith.constant 0 : index
      %680 = vector.load %arg16[%c0_176, %c0_177] : memref<2x1xf32, #tpu.memory_space<vmem>>, vector<2x1xf32>
      tpu.vector_store %arg16[%c0_176, %c0_177], %657 {strides = array<i32>} : memref<2x1xf32, #tpu.memory_space<vmem>>, vector<2x1xf32>,
      %c0_178 = arith.constant 0 : index
      %c0_179 = arith.constant 0 : index
      %681 = vector.load %arg17[%c0_178, %c0_179] : memref<2x1xf32, #tpu.memory_space<vmem>>, vector<2x1xf32>
      tpu.vector_store %arg17[%c0_178, %c0_179], %653 {strides = array<i32>} : memref<2x1xf32, #tpu.memory_space<vmem>>, vector<2x1xf32>,
    } else {
    }
    return
  }
  func.func @transform_0(%arg0: i32, %arg1: i32) -> (i32, i32, i32) {
    %c0_i32 = arith.constant 0 : i32
    %c0_i32_0 = arith.constant 0 : i32
    return %arg1, %arg0, %c0_i32 : i32, i32, i32
  }
  func.func @transform_1(%arg0: i32, %arg1: i32) -> (i32, i32) {
    %c0_i32 = arith.constant 0 : i32
    %c0_i32_0 = arith.constant 0 : i32
    return %arg0, %c0_i32 : i32, i32
  }
  func.func @transform_2(%arg0: i32, %arg1: i32) -> (i32, i32) {
    %c0_i32 = arith.constant 0 : i32
    %c0_i32_0 = arith.constant 0 : i32
    return %arg0, %c0_i32 : i32, i32
  }
  func.func @transform_3(%arg0: i32, %arg1: i32) -> (i32, i32) {
    %c0_i32 = arith.constant 0 : i32
    %c0_i32_0 = arith.constant 0 : i32
    return %arg0, %c0_i32 : i32, i32
  }
  func.func @transform_4(%arg0: i32, %arg1: i32) -> (i32, i32) {
    %c0_i32 = arith.constant 0 : i32
    %c0_i32_0 = arith.constant 0 : i32
    return %arg0, %c0_i32 : i32, i32
  }
  func.func @transform_5(%arg0: i32, %arg1: i32) -> (i32, i32) {
    %c0_i32 = arith.constant 0 : i32
    %c0_i32_0 = arith.constant 0 : i32
    %c0_i32_1 = arith.constant 0 : i32
    return %c0_i32, %c0_i32_0 : i32, i32
  }
  func.func @transform_6(%arg0: i32, %arg1: i32) -> (i32, i32) {
    %c0_i32 = arith.constant 0 : i32
    %c0_i32_0 = arith.constant 0 : i32
    %c0_i32_1 = arith.constant 0 : i32
    return %c0_i32, %c0_i32_0 : i32, i32
  }
  func.func @transform_7(%arg0: i32, %arg1: i32) -> (i32, i32) {
    %c0_i32 = arith.constant 0 : i32
    %c0_i32_0 = arith.constant 0 : i32
    %c0_i32_1 = arith.constant 0 : i32
    return %c0_i32, %c0_i32_0 : i32, i32
  }
  func.func @transform_8(%arg0: i32, %arg1: i32) -> (i32, i32) {
    %c0_i32 = arith.constant 0 : i32
    %c0_i32_0 = arith.constant 0 : i32
    %c0_i32_1 = arith.constant 0 : i32
    return %c0_i32, %c0_i32_0 : i32, i32
  }
  func.func @transform_9(%arg0: i32, %arg1: i32) -> (i32, i32) {
    %c0_i32 = arith.constant 0 : i32
    %c0_i32_0 = arith.constant 0 : i32
    %c0_i32_1 = arith.constant 0 : i32
    return %c0_i32, %c0_i32_0 : i32, i32
  }
  func.func @transform_10(%arg0: i32, %arg1: i32) -> (i32, i32, i32) {
    %c0_i32 = arith.constant 0 : i32
    %c0_i32_0 = arith.constant 0 : i32
    return %arg1, %arg0, %c0_i32 : i32, i32, i32
  }
  func.func @transform_11(%arg0: i32, %arg1: i32) -> (i32, i32, i32) {
    %c0_i32 = arith.constant 0 : i32
    %c0_i32_0 = arith.constant 0 : i32
    return %arg1, %arg0, %c0_i32 : i32, i32, i32
  }
  func.func @transform_12(%arg0: i32, %arg1: i32) -> (i32, i32) {
    %c0_i32 = arith.constant 0 : i32
    %c0_i32_0 = arith.constant 0 : i32
    return %arg0, %c0_i32 : i32, i32
  }
  func.func @transform_13(%arg0: i32, %arg1: i32) -> (i32, i32) {
    %c0_i32 = arith.constant 0 : i32
    %c0_i32_0 = arith.constant 0 : i32
    return %arg0, %c0_i32 : i32, i32
  }
  func.func @transform_14(%arg0: i32, %arg1: i32) -> (i32, i32) {
    %c0_i32 = arith.constant 0 : i32
    %c0_i32_0 = arith.constant 0 : i32
    return %arg0, %c0_i32 : i32, i32
  }
  func.func @transform_15(%arg0: i32, %arg1: i32) -> (i32, i32) {
    %c0_i32 = arith.constant 0 : i32
    %c0_i32_0 = arith.constant 0 : i32
    return %arg0, %c0_i32 : i32, i32
  }
}

</mosaic_0001>

<bundles_post_ra>
// kernel: tpu_custom_call.1
= control target key start
LH: loop header
LB: loop body
LE: loop exit
PB: predicated region body
PF: predicated region fallthrough
CT: control target
= control target key end

     0   :  { %s5193_s0 = inlined_call_operand.vmem [shape: f32[8,2,4], index: 0, kind: input, shape index: {}]   ;;  %s5194_s1 = inlined_call_operand.vmem [shape: f32[2,128], index: 1, kind: input, shape index: {}]   ;;  %s5195_s2 = inlined_call_operand.vmem [shape: f32[2,128], index: 2, kind: input, shape index: {}]   ;;  %s5196_s3 = inlined_call_operand.vmem [shape: f32[2,1], index: 3, kind: input, shape index: {}]   ;;  %s5197_s4 = inlined_call_operand.vmem [shape: f32[2,1], index: 4, kind: input, shape index: {}]   ;;  %s5198_s5 = inlined_call_operand.vmem [shape: f32[4,512], index: 5, kind: input, shape index: {}]   ;;  %s5199_s6 = inlined_call_operand.hbm [shape: f32[128,512], index: 6, kind: input, shape index: {}]   ;;  %s5200_s7 = inlined_call_operand.vmem [shape: f32[1,512], index: 7, kind: input, shape index: {}]   ;;  %s5201_s8 = inlined_call_operand.vmem [shape: f32[1,128], index: 8, kind: input, shape index: {}]   ;;  %s5202_s9 = inlined_call_operand.<no memory space> [shape: f32[1,1], index: 9, kind: input, shape index: {}]   ;;  %s5203_s10 = inlined_call_operand.hbm [shape: f32[8,2,128], index: 10, kind: output, shape index: {0}]   ;;  %s5204_s11 = inlined_call_operand.hbm [shape: f32[1,2,8], index: 11, kind: output, shape index: {1}]   ;;  %s5205_s12 = inlined_call_operand.hbm [shape: f32[2,128], index: 12, kind: output, shape index: {2}]   ;;  %s5206_s13 = inlined_call_operand.hbm [shape: f32[2,128], index: 13, kind: output, shape index: {3}]   ;;  %s5207_s14 = inlined_call_operand.vmem [shape: f32[2,1], index: 14, kind: output, shape index: {4}]   ;;  %s5208_s15 = inlined_call_operand.vmem [shape: f32[2,1], index: 15, kind: output, shape index: {5}]  }
   0x1   :  { %v21_v0 = vstv %s5202_s9 }
   0x2   :  { %22 = vst [vmem:[#allocation7] sm:$0x1] %v21_v0 }
   0x3   :  { %23 = vsyncpa [#allocation9], 0 }
   0x4   :  { %24 = vsyncpa [#allocation10], 0 }
   0x5   :  { %25 = vsyncpa [#allocation13], 0 }
   0x6   :  { %26 = vsyncpa [#allocation16], 0  ;;  %s3686_s20 = smov [#allocation8]  }
   0x7   :  { %s44_s21 = sshll.u32 %s3686_s20, 4  ;;  %s45_s21 = int_to_ptr.vmem [resolvable:$true] %s44_s21 }
   0x8   :  { %s3586_s22 = scalar_lea.vmem %s45_s21, 8192  ;;  %p3591_p1 = scmp.lt.s32.totalorder %s45_s21, %s45_s21 }
   0x9   :  { %p3587_p0 = scmp.ne.s32.totalorder %s45_s21, %s3586_s22  ;;  %p3592_p2 = scmp.lt.s32.totalorder %s3586_s22, %s3586_s22 }
   0xb   :  { %p3593_p3 = por %p3592_p2, %p3591_p1 }
   0xd   :  { %p3594_p4 = pnand %p3593_p3, %p3587_p0 }
   0xf   :  { %3597 = shalt.err (!%p3594_p4)
}
  0x10   :  { %s3687_s23 = smov 512   ;;  %s3688_s24 = smov 32  }
  0x11   :  { %50 = dma.hbm_to_vmem [thread:$0]  %s5199_s6, 8192, %s45_s21, [#allocation9], %s3687_s23, %s3687_s23, %s3688_s24  }
  0x12   :  { %3678 = dma.done.wait [#allocation9], 8192  }
  0x13   :  { %3679 = vsyncadd [#allocation9], 4294959104  ;;  %v5211_v1 = vmov 0.0   ;;  %vm68_vm0 = vcmask 1024   ;;  %v5209_v2 = vmov 0   ;;  %v3691_v3 = vmov 1.0  }
  0x14   :  { %249 = vmatprep.mubr.f32.mxu0 %v5211_v1  ;;  %320 = vmatprep.mubr.f32.mxu1 %v5211_v1  ;;  %69 = vst.msk [vmem:[#allocation4] sm:$0x3] %vm68_vm0, %v3691_v3  ;;  %v3789_v4 = vld [vmem:[#allocation8 + $0x1e8] sm:$0xff]  ;;  %v3791_v5 = vld [vmem:[#allocation8 + $0x1e0] sm:$0xff]  ;;  %v3810_v12 = vld [vmem:[#allocation8 + $0x1f8] sm:$0xff]  ;;  %vm335_vm2 = vcmask 1043456  }
  0x15   :  { %3345 = vset.pattern.permute.xlu0 %v5209_v2  ;;  %3346 = vset.pattern.permute.xlu1 %v5209_v2  ;;  %v3793_v6 = vld [vmem:[#allocation8 + $0x1c8] sm:$0xff]  ;;  %v3796_v7 = vld [vmem:[#allocation8 + $0x1c0] sm:$0xff]  ;;  %v3816_v14 = vld [vmem:[#allocation8 + $0x1f0] sm:$0xff]  ;;  %vm331_vm4 = vcmask 31744   ;;  %vm517_vm6 = vcmask 1041408   ;;  %s3693_s23 = smov [#allocation11]  }
  0x16   :  { %185 = vmatprep.subr.mxu0 %v3789_v4  ;;  %v3799_v8 = vld [vmem:[#allocation8 + $0x1a8] sm:$0xff]  ;;  %v3802_v9 = vld [vmem:[#allocation8 + $0x1a0] sm:$0xff]  ;;  %256 = vmatprep.subr.mxu1 %v3810_v12  ;;  %v3818_v15 = vld [vmem:[#allocation8 + $0x1d8] sm:$0xff]  ;;  %s3112_s25 = sshll.u32 %s3693_s23, 4  ;;  %s3113_s25 = int_to_ptr.vmem [resolvable:$true] %s3112_s25 }
  0x17   :  { %186 = vmatpush1.msra.mxu0 %v3791_v5  ;;  %v3805_v10 = vld [vmem:[#allocation8 + $0x188] sm:$0xff]  ;;  %v3808_v11 = vld [vmem:[#allocation8 + $0x180] sm:$0xff]  ;;  %257 = vmatpush1.msra.mxu1 %v3816_v14  ;;  %v3824_v17 = vld [vmem:[#allocation8 + $0x1d0] sm:$0xff] }
  0x18   :  { %187 = vmatprep.subr.mxu0 %v3793_v6  ;;  %v3813_v13 = vld [vmem:[#allocation8 + $0x168] sm:$0xff]  ;;  %v3821_v16 = vld [vmem:[#allocation8 + $0x160] sm:$0xff]  ;;  %258 = vmatprep.subr.mxu1 %v3818_v15  ;;  %v3830_v19 = vld [vmem:[#allocation8 + $0x1b8] sm:$0xff] }
  0x19   :  { %188 = vmatpush1.msra.mxu0 %v3796_v7  ;;  %v3827_v18 = vld [vmem:[#allocation8 + $0x148] sm:$0xff]  ;;  %v3832_v20 = vld [vmem:[#allocation8 + $0x1b0] sm:$0xff]  ;;  %v3835_v21 = vld [vmem:[#allocation8 + $0x140] sm:$0xff]  ;;  %259 = vmatpush1.msra.mxu1 %v3824_v17 }
  0x1a   :  { %189 = vmatprep.subr.mxu0 %v3799_v8  ;;  %v3838_v22 = vld [vmem:[#allocation8 + $0x198] sm:$0xff]  ;;  %v3841_v23 = vld [vmem:[#allocation8 + $0x128] sm:$0xff]  ;;  %260 = vmatprep.subr.mxu1 %v3830_v19  ;;  %v3844_v24 = vld [vmem:[#allocation8 + $0x190] sm:$0xff] }
  0x1b   :  { %190 = vmatpush1.msra.mxu0 %v3802_v9  ;;  %v3847_v25 = vld [vmem:[#allocation8 + $0x120] sm:$0xff]  ;;  %261 = vmatpush1.msra.mxu1 %v3832_v20  ;;  %v3850_v26 = vld [vmem:[#allocation8 + $0x178] sm:$0xff]  ;;  %v3853_v27 = vld [vmem:[#allocation8 + $0x108] sm:$0xff] }
  0x1c   :  { %191 = vmatprep.subr.mxu0 %v3805_v10  ;;  %262 = vmatprep.subr.mxu1 %v3838_v22  ;;  %v3856_v28 = vld [vmem:[#allocation8 + $0x170] sm:$0xff]  ;;  %v3859_v29 = vld [vmem:[#allocation8 + $0x100] sm:$0xff]  ;;  %v3862_v30 = vld [vmem:[#allocation8 + $0x158] sm:$0xff] }
  0x1d   :  { %192 = vmatpush1.msra.mxu0 %v3808_v11  ;;  %263 = vmatpush1.msra.mxu1 %v3844_v24  ;;  %v3865_v31 = vld [vmem:[#allocation8 + $0xe8] sm:$0xff]  ;;  %v3868_v32 = vld [vmem:[#allocation8 + $0x150] sm:$0xff]  ;;  %v3871_v33 = vld [vmem:[#allocation8 + $0xe0] sm:$0xff] }
  0x1e   :  { %193 = vmatprep.subr.mxu0 %v3813_v13  ;;  %264 = vmatprep.subr.mxu1 %v3850_v26  ;;  %5383 = vst [vmem:[#allocation21_spill] sm:$0xff] %v3871_v33  ;;  %v3874_v34 = vld [vmem:[#allocation8 + $0x138] sm:$0xff]  ;;  %v3877_v35 = vld [vmem:[#allocation8 + $0xc8] sm:$0xff]  ;;  %v3880_v36 = vld [vmem:[#allocation8 + $0x130] sm:$0xff] }
  0x1f   :  { %194 = vmatpush1.msra.mxu0 %v3821_v16  ;;  %265 = vmatpush1.msra.mxu1 %v3856_v28  ;;  %5384 = vst [vmem:[#allocation22_spill] sm:$0xff] %v3877_v35  ;;  %v64_v37 = vld [vmem:[%s5194_s1] sm:$0x3]  ;;  %v3886_v38 = vld [vmem:[#allocation8 + $0xc0] sm:$0xff]  ;;  %v3889_v39 = vld [vmem:[#allocation8 + $0x118] sm:$0xff] }
  0x20   :  { %195 = vmatprep.subr.mxu0 %v3827_v18  ;;  %266 = vmatprep.subr.mxu1 %v3862_v30  ;;  %5385 = vst [vmem:[#allocation23_spill] sm:$0xff] %v3886_v38  ;;  %65 = vst [vmem:[#allocation2] sm:$0x3] %v64_v37  ;;  %v3892_v40 = vld [vmem:[#allocation8 + $0xa8] sm:$0xff]  ;;  %v3895_v41 = vld [vmem:[#allocation8 + $0x110] sm:$0xff] }
  0x21   :  { %196 = vmatpush1.msra.mxu0 %v3835_v21  ;;  %267 = vmatpush1.msra.mxu1 %v3868_v32  ;;  %5386 = vst [vmem:[#allocation24_spill] sm:$0xff] %v3892_v40  ;;  %v3898_v42 = vld [vmem:[#allocation8 + $0xa0] sm:$0xff]  ;;  %v3901_v43 = vld [vmem:[#allocation8 + $0xf8] sm:$0xff]  ;;  %v3904_v44 = vld [vmem:[#allocation8 + $0x88] sm:$0xff] }
  0x22   :  { %197 = vmatprep.subr.mxu0 %v3841_v23  ;;  %268 = vmatprep.subr.mxu1 %v3874_v34  ;;  %5387 = vst [vmem:[#allocation25_spill] sm:$0xff] %v3898_v42  ;;  %5388 = vst [vmem:[#allocation26_spill] sm:$0xff] %v3904_v44  ;;  %v3907_v45 = vld [vmem:[#allocation8 + $0xf0] sm:$0xff]  ;;  %v3910_v46 = vld [vmem:[#allocation8 + $0x80] sm:$0xff] }
  0x23   :  { %198 = vmatpush1.msra.mxu0 %v3847_v25  ;;  %269 = vmatpush1.msra.mxu1 %v3880_v36  ;;  %5389 = vst [vmem:[#allocation27_spill] sm:$0xff] %v3907_v45  ;;  %5390 = vst [vmem:[#allocation28_spill] sm:$0xff] %v3910_v46  ;;  %v3912_v47 = vld [vmem:[#allocation8 + $0x68] sm:$0xff]  ;;  %v3915_v48 = vld [vmem:[#allocation8 + $0xd8] sm:$0xff] }
  0x24   :  { %199 = vmatprep.subr.mxu0 %v3853_v27  ;;  %270 = vmatprep.subr.mxu1 %v3889_v39  ;;  %5391 = vst [vmem:[#allocation29_spill] sm:$0xff] %v3912_v47  ;;  %5392 = vst [vmem:[#allocation30_spill] sm:$0xff] %v3915_v48  ;;  %v3918_v49 = vld [vmem:[#allocation8 + $0x60] sm:$0xff]  ;;  %v3921_v50 = vld [vmem:[#allocation8 + $0xd0] sm:$0xff] }
  0x25   :  { %200 = vmatpush1.msra.mxu0 %v3859_v29  ;;  %271 = vmatpush1.msra.mxu1 %v3895_v41  ;;  %5393 = vst [vmem:[#allocation31_spill] sm:$0xff] %v3918_v49  ;;  %5394 = vst [vmem:[#allocation32_spill] sm:$0xff] %v3921_v50  ;;  %v72_v51 = vld [vmem:[%s5197_s4] sm:$0x3]  ;;  %v3928_v52 = vld [vmem:[#allocation8 + $0xb8] sm:$0xff] }
  0x26   :  { %201 = vmatprep.subr.mxu0 %v3865_v31  ;;  %272 = vmatprep.subr.mxu1 %v3901_v43  ;;  %5395 = vst [vmem:[#allocation33_spill] sm:$0xff] %v3928_v52  ;;  %73 = vst.msk [vmem:[#allocation6] sm:$0x3] %vm68_vm0, %v72_v51  ;;  %v3931_v53 = vld [vmem:[#allocation4] sm:$0x3]  ;;  %v3937_v55 = vld [vmem:[#allocation8 + $0x48] sm:$0xff] }
  0x27   :  { %202 = vmatpush1.msra.mxu0 %v3871_v33  ;;  %273 = vmatpush1.msra.mxu1 %v3907_v45  ;;  %5396 = vst [vmem:[#allocation34_spill] sm:$0xff] %v3931_v53  ;;  %v70_v54 = vld [vmem:[%s5196_s3] sm:$0x3]  ;;  %5397 = vst [vmem:[#allocation35_spill] sm:$0xff] %v3937_v55  ;;  %v3272_v57 = vcvt.f32.s32 %v3931_v53  ;;  %v3945_v58 = vld [vmem:[#allocation8 + $0x40] sm:$0xff]  ;;  %v3275_v3 = vand.u32 2147483648, %v3931_v53 }
  0x28   :  { %203 = vmatprep.subr.mxu0 %v3877_v35  ;;  %274 = vmatprep.subr.mxu1 %v3915_v48  ;;  %v3940_v56 = vld [vmem:[#allocation8 + $0xb0] sm:$0xff]  ;;  %71 = vst.msk [vmem:[#allocation5] sm:$0x3] %vm68_vm0, %v70_v54  ;;  %5399 = vst [vmem:[#allocation37_spill] sm:$0xff] %v3945_v58  ;;  %v3948_v59 = vld [vmem:[#allocation8 + $0x98] sm:$0xff] }
  0x29   :  { %204 = vmatpush1.msra.mxu0 %v3886_v38  ;;  %5398 = vst [vmem:[#allocation36_spill] sm:$0xff] %v3940_v56  ;;  %275 = vmatpush1.msra.mxu1 %v3921_v50  ;;  %5400 = vst [vmem:[#allocation38_spill] sm:$0xff] %v3948_v59  ;;  %v3270_v60 = vand.u32 2147483647, %v3931_v53  ;;  %v3952_v61 = vld [vmem:[#allocation8 + $0x28] sm:$0xff]  ;;  %v3957_v62 = vld [vmem:[%s5198_s5] sm:$0xff]  ;;  %v3273_v0 = vcvt.s32.f32 %v3272_v57 }
  0x2a   :  { %205 = vmatprep.subr.mxu0 %v3892_v40  ;;  %5401 = vst [vmem:[#allocation39_spill] sm:$0xff] %v3952_v61  ;;  %5402 = vst [vmem:[#allocation40_spill] sm:$0xff] %v3957_v62  ;;  %276 = vmatprep.subr.mxu1 %v3928_v52  ;;  %v3960_v63 = vld [vmem:[#allocation8 + $0x90] sm:$0xff]  ;;  %v3964_v37 = vld [vmem:[#allocation8 + $0x20] sm:$0xff] }
  0x2b   :  { %206 = vmatpush1.msra.mxu0 %v3898_v42  ;;  %5403 = vst [vmem:[#allocation41_spill] sm:$0xff] %v3960_v63  ;;  %5404 = vst [vmem:[#allocation42_spill] sm:$0xff] %v3964_v37  ;;  %277 = vmatpush1.msra.mxu1 %v3940_v56  ;;  %v3967_v51 = vld [vmem:[#allocation8 + $0x78] sm:$0xff]  ;;  %v3970_v54 = vld [vmem:[#allocation8 + $0x8] sm:$0xff]  ;;  %v3274_v1 = vand.u32 2147483647, %v3273_v0 }
  0x2c   :  { %207 = vmatprep.subr.mxu0 %v3904_v44  ;;  %5405 = vst [vmem:[#allocation43_spill] sm:$0xff] %v3967_v51  ;;  %5406 = vst [vmem:[#allocation44_spill] sm:$0xff] %v3970_v54  ;;  %278 = vmatprep.subr.mxu1 %v3948_v59  ;;  %v3973_v2 = vld [vmem:[#allocation8 + $0x70] sm:$0xff]  ;;  %v3976_v57 = vld [vmem:[#allocation8] sm:$0xff]  ;;  %vm3271_vm1 = vcmp.lt.f32.partialorder %v3270_v60, 8388608.0 }
  0x2d   :  { %208 = vmatpush1.msra.mxu0 %v3910_v46  ;;  %5407 = vst [vmem:[#allocation45_spill] sm:$0xff] %v3973_v2  ;;  %5408 = vst [vmem:[#allocation46_spill] sm:$0xff] %v3976_v57  ;;  %279 = vmatpush1.msra.mxu1 %v3960_v63  ;;  %v3276_v0 = vor.u32 %v3275_v3, %v3274_v1  ;;  %v3995_v63 = vld [vmem:[#allocation8 + $0x50] sm:$0xff]  ;;  %v4003_v1 = vld [vmem:[#allocation8 + $0x38] sm:$0xff] }
  0x2e   :  { %209 = vmatprep.subr.mxu0 %v3912_v47  ;;  %280 = vmatprep.subr.mxu1 %v3967_v51  ;;  %5412 = vst [vmem:[#allocation50_spill] sm:$0xff] %v3995_v63  ;;  %5414 = vst [vmem:[#allocation52_spill] sm:$0xff] %v4003_v1  ;;  %v4008_v3 = vld [vmem:[%s5198_s5 + $0x8] sm:$0xff] }
  0x2f   :  { %210 = vmatpush1.msra.mxu0 %v3918_v49  ;;  %v3983_v49 = vld [vmem:[#allocation8 + $0x58] sm:$0xff]  ;;  %281 = vmatpush1.msra.mxu1 %v3973_v2  ;;  %v3998_v60 = vsel %vm3271_vm1, %v3276_v0, %v3931_v53  ;;  %v177_v0 = vld [vmem:[%s5193_s0] sm:$0x3] }
  0x30   :  { %211 = vmatprep.subr.mxu0 %v3937_v55  ;;  %v3980_v55 = vcombine.high %v3957_v62, %v3957_v62  ;;  %5410 = vst [vmem:[#allocation48_spill] sm:$0xff] %v3983_v49  ;;  %282 = vmatprep.subr.mxu1 %v3983_v49  ;;  %5413 = vst [vmem:[#allocation51_spill] sm:$0xff] %v3998_v60  ;;  %v4017_v53 = vld [vmem:[#allocation8 + $0x30] sm:$0xff]  ;;  %v5420_v49 = vmov 0  }
  0x31   :  { %212 = vmatpush1.msra.mxu0 %v3945_v58  ;;  %v3986_v58 = vld [vmem:[#allocation2] sm:$0x3]  ;;  %5416 = vst [vmem:[#allocation53_spill] sm:$0xff] %v4017_v53  ;;  %283 = vmatpush1.msra.mxu1 %v3995_v63 }
  0x32   :  { %213 = vmatprep.subr.mxu0 %v3952_v61  ;;  %5409 = vst [vmem:[#allocation47_spill] sm:$0xff] %v3980_v55  ;;  %v3991_v61 = vld [vmem:[#allocation5] sm:$0x3]  ;;  %181 = vperm.xlu0 %3345, %v3998_v60   ;;  %v5425_v60 = vld [vmem:[#allocation39_spill] sm:$0xff] }
  0x33   :  { %214 = vmatpush1.msra.mxu0 %v3964_v37  ;;  %5411 = vst [vmem:[#allocation49_spill] sm:$0xff] %v3991_v61  ;;  %vm542_vm3 = vcmp.gt.f32.partialorder %v3991_v61, 0.5  ;;  %284 = vmatprep.subr.mxu1 %v4003_v1  ;;  %v5424_v61 = vld [vmem:[#allocation37_spill] sm:$0xff] }
  0x34   :  { %215 = vmatprep.subr.mxu0 %v3970_v54  ;;  %v4024_v54 = vld [vmem:[#allocation8 + $0x10] sm:$0xff]  ;;  %v543_v37 = vsel %vm542_vm3, 1, %v5420_v49  ;;  %285 = vmatpush1.msra.mxu1 %v4017_v53 }
  0x35   :  { %216 = vmatpush1.msra.mxu0 %v3976_v57  ;;  %v5415_v57 = vmov 0.0   ;;  %5418 = vst [vmem:[#allocation55_spill] sm:$0xff] %v4024_v54  ;;  %v5423_v49 = vld [vmem:[#allocation41_spill] sm:$0xff] }
  0x36   :  { %250 = vmatmul.mubr.f32.vlgmr.msra.gmra.mxu0 %v3986_v58  ;;  %3174 = vmatprep.subr.msk.mxu0 %vm335_vm2, %v3980_v55  ;;  %v4020_v55 = vld [vmem:[#allocation8 + $0x18] sm:$0xff] }
  0x37   :  { %3175 = vmatpush1.msk.msra.mxu0 %vm335_vm2, %v3957_v62  ;;  %408 = vmatprep.mubr.f32.mxu0 %v5415_v57  ;;  %5417 = vst [vmem:[#allocation54_spill] sm:$0xff] %v4020_v55  ;;  %v4028_v62 = vcombine.high %v4008_v3, %v4008_v3 }
  0x38   :  { %567 = vmatprep.subr.mxu0 %v3789_v4  ;;  %286 = vmatprep.subr.mxu1 %v4020_v55 }
  0x39   :  { %5419 = vst [vmem:[#allocation56_spill] sm:$0xff] %v4028_v62  ;;  %287 = vmatpush1.msra.mxu1 %v4024_v54  ;;  %545 = vperm.xlu0 %3345, %v543_v37   ;;  %v5421_v37 = vld [vmem:[#allocation31_spill] sm:$0xff] }
  0x3a   :  { %3176 = vmatmul.mubr.msk.f32.vlgmr.msra.gmra.mxu0 %vm331_vm4, %v177_v0  ;;  %321 = vmatmul.mubr.f32.vlgmr.msra.gmra.mxu1 %v3986_v58 }
  0x3b   :  { %568 = vmatpush1.msra.mxu0 %v3791_v5  ;;  %3177 = vmatprep.subr.msk.mxu1 %vm335_vm2, %v4028_v62 }
  0x3c   :  { %3178 = vmatpush1.msk.msra.mxu1 %vm335_vm2, %v4008_v3  ;;  %479 = vmatprep.mubr.f32.mxu1 %v5415_v57 }
  0x3d   :  { %638 = vmatprep.subr.mxu1 %v3810_v12  ;;  %569 = vmatprep.subr.mxu0 %v3793_v6 }
  0x3e   :  { %570 = vmatpush1.msra.mxu0 %v3796_v7  ;;  %631 = vmatprep.mubr.f32.mxu0 %v5415_v57 }
  0x3f   :  { %3179 = vmatmul.mubr.msk.f32.vlgmr.msra.gmra.mxu1 %vm331_vm4, %v177_v0  ;;  %571 = vmatprep.subr.mxu0 %v3799_v8  ;;  %v5422_v0 = vld [vmem:[#allocation35_spill] sm:$0xff] }
  0x40   :  { %639 = vmatpush1.msra.mxu1 %v3816_v14  ;;  %572 = vmatpush1.msra.mxu0 %v3802_v9 }
  0x41   :  { %640 = vmatprep.subr.mxu1 %v3818_v15  ;;  %573 = vmatprep.subr.mxu0 %v3805_v10 }
  0x42   :  { %641 = vmatpush1.msra.mxu1 %v3824_v17  ;;  %574 = vmatpush1.msra.mxu0 %v3808_v11 }
  0x43   :  { %642 = vmatprep.subr.mxu1 %v3830_v19  ;;  %575 = vmatprep.subr.mxu0 %v3813_v13 }
  0x44   :  { %643 = vmatpush1.msra.mxu1 %v3832_v20  ;;  %576 = vmatpush1.msra.mxu0 %v3821_v16 }
  0x45   :  { %644 = vmatprep.subr.mxu1 %v3838_v22  ;;  %577 = vmatprep.subr.mxu0 %v3827_v18 }
  0x46   :  { %645 = vmatpush1.msra.mxu1 %v3844_v24  ;;  %578 = vmatpush1.msra.mxu0 %v3835_v21 }
  0x47   :  { %646 = vmatprep.subr.mxu1 %v3850_v26  ;;  %579 = vmatprep.subr.mxu0 %v3841_v23 }
  0x48   :  { %647 = vmatpush1.msra.mxu1 %v3856_v28  ;;  %580 = vmatpush1.msra.mxu0 %v3847_v25 }
  0x49   :  { %648 = vmatprep.subr.mxu1 %v3862_v30  ;;  %581 = vmatprep.subr.mxu0 %v3853_v27 }
  0x4a   :  { %649 = vmatpush1.msra.mxu1 %v3868_v32  ;;  %582 = vmatpush1.msra.mxu0 %v3859_v29 }
  0x4b   :  { %650 = vmatprep.subr.mxu1 %v3874_v34  ;;  %583 = vmatprep.subr.mxu0 %v3865_v31 }
  0x4c   :  { %651 = vmatpush1.msra.mxu1 %v3880_v36  ;;  %584 = vmatpush1.msra.mxu0 %v3871_v33 }
  0x4d   :  { %652 = vmatprep.subr.mxu1 %v3889_v39  ;;  %585 = vmatprep.subr.mxu0 %v3877_v35 }
  0x4e   :  { %653 = vmatpush1.msra.mxu1 %v3895_v41  ;;  %586 = vmatpush1.msra.mxu0 %v3886_v38 }
  0x4f   :  { %654 = vmatprep.subr.mxu1 %v3901_v43  ;;  %587 = vmatprep.subr.mxu0 %v3892_v40 }
  0x50   :  { %655 = vmatpush1.msra.mxu1 %v3907_v45  ;;  %588 = vmatpush1.msra.mxu0 %v3898_v42 }
  0x51   :  { %656 = vmatprep.subr.mxu1 %v3915_v48  ;;  %589 = vmatprep.subr.mxu0 %v3904_v44  ;;  %v5428_v44 = vld [vmem:[#allocation44_spill] sm:$0xff] }
  0x52   :  { %657 = vmatpush1.msra.mxu1 %v3921_v50  ;;  %590 = vmatpush1.msra.mxu0 %v3910_v46  ;;  %v5426_v46 = vld [vmem:[#allocation42_spill] sm:$0xff] }
  0x53   :  { %658 = vmatprep.subr.mxu1 %v3928_v52  ;;  %591 = vmatprep.subr.mxu0 %v3912_v47  ;;  %v5427_v47 = vld [vmem:[#allocation48_spill] sm:$0xff] }
  0x54   :  { %659 = vmatpush1.msra.mxu1 %v3940_v56  ;;  %592 = vmatpush1.msra.mxu0 %v5421_v37  ;;  %v5429_v37 = vld [vmem:[#allocation46_spill] sm:$0xff] }
  0x55   :  { %660 = vmatprep.subr.mxu1 %v3948_v59  ;;  %593 = vmatprep.subr.mxu0 %v5422_v0 }
  0x56   :  { %661 = vmatpush1.msra.mxu1 %v5423_v49  ;;  %594 = vmatpush1.msra.mxu0 %v5424_v61  ;;  %v5430_v61 = vld [vmem:[#allocation47_spill] sm:$0xff] }
  0x57   :  { %662 = vmatprep.subr.mxu1 %v3967_v51  ;;  %595 = vmatprep.subr.mxu0 %v5425_v60 }
  0x58   :  { %663 = vmatpush1.msra.mxu1 %v3973_v2  ;;  %596 = vmatpush1.msra.mxu0 %v5426_v46 }
  0x59   :  { %664 = vmatprep.subr.mxu1 %v5427_v47  ;;  %597 = vmatprep.subr.mxu0 %v5428_v44  ;;  %v5262_v44 = vlaneseq }
  0x5a   :  { %665 = vmatpush1.msra.mxu1 %v3995_v63  ;;  %598 = vmatpush1.msra.mxu0 %v5429_v37  ;;  %v66_v37 = vld [vmem:[%s5195_s2] sm:$0x3] }
  0x5b   :  { %666 = vmatprep.subr.mxu1 %v4003_v1  ;;  %702 = vmatprep.mubr.f32.mxu1 %v5415_v57  ;;  %67 = vst [vmem:[#allocation3] sm:$0x3] %v66_v37  ;;  %v143_v46 = vshrl.u32 %v5262_v44, 7 }
  0x5c   :  { %667 = vmatpush1.msra.mxu1 %v4017_v53  ;;  %3187 = vmatprep.subr.msk.mxu0 %vm335_vm2, %v5430_v61  ;;  %v140_v61 = vld [vmem:[%s5200_s7] sm:$0xf] }
  0x5d   :  { %668 = vmatprep.subr.mxu1 %v4020_v55  ;;  %v144_v1 = vsub.s32 0, %v143_v46  ;;  %v148_v55 = vsub.s32 1, %v143_v46  ;;  %v156_v56 = vsub.s32 3, %v143_v46 }
  0x5e   :  { %669 = vmatpush1.msra.mxu1 %v4024_v54 }
  0x5f   :  { %3190 = vmatprep.subr.msk.mxu1 %vm335_vm2, %v4028_v62  ;;  %v4121_v54 = vrot.slane %v140_v61, %v144_v1  ;;  %v4123_v47 = vrot.slane %v140_v61, %v148_v55  ;;  %v4127_v40 = vrot.slane %v140_v61, %v156_v56  ;;  %v152_v55 = vsub.s32 2, %v143_v46 }
  0x61   :  { %5431 = vst [vmem:[#allocation57_spill] sm:$0xff] %v4121_v54  ;;  %v4130_v50 = vrot.slane %v140_v61, %v152_v55 }
  0x62   :  { %v173_v56 = vld [vmem:[#allocation3] sm:$0x3] }
  0xf6   :  { %v251_v53 = vpop.f32.mrf.mxu0 }
  0xf8   :  { %v253_v60 = vpop.f32.mrf.mxu0 }
  0xfa   :  { %v410_v63 = vpop.f32.mrf.mxu0  ;;  %v322_v51 = vpop.f32.mrf.mxu1 }
  0xfb   :  { %v411_v62 = vadd.f32 %v410_v63, %v251_v53 }
  0xfc   :  { %v412_v0 = vpop.f32.mrf.mxu0  ;;  %v324_v59 = vpop.f32.mrf.mxu1 }
  0xfd   :  { %v486_v37 = vadd.f32 %v411_v62, %v4121_v54  ;;  %v413_v2 = vadd.f32 %v412_v0, %v253_v60 }
  0xff   :  { %v3180_v44 = vmul.f32 -1.442695, %v486_v37  ;;  %v487_v49 = vadd.f32 %v413_v2, %v4123_v47  ;;  %v481_v52 = vpop.f32.mrf.mxu1 }
 0x100   :  { %v482_v62 = vadd.f32 %v481_v52, %v322_v51 }
 0x101   :  { %3349 = vpow2.f32 %v3180_v44  ;;  %v3181_v42 = vmul.f32 -1.442695, %v487_v49  ;;  %v483_v1 = vpop.f32.mrf.mxu1 }
 0x102   :  { %v484_v53 = vadd.f32 %v483_v1, %v324_v59  ;;  %v488_v2 = vadd.f32 %v482_v62, %v4130_v50 }
 0x103   :  { %3351 = vpow2.f32 %v3181_v42  ;;  %v4133_v42 = vpop.permute.xlu0 %181 }
 0x104   :  { %v489_v63 = vadd.f32 %v484_v53, %v4127_v40  ;;  %5432 = vst [vmem:[#allocation58_spill] sm:$0xff] %v4133_v42  ;;  %v184_v61 = vsub.f32 1.0, %v4133_v42 }
 0x106   :  { %v3182_v60 = vmul.f32 -1.442695, %v489_v63  ;;  %v536_v62 = vmul.f32 %v184_v61, %v173_v56 }
 0x107   :  { %v546_v55 = vpop.permute.xlu0 %545 }
 0x108   :  { %3353 = vpow2.f32 %v3182_v60  ;;  %vm547_vm5 = vcmp.eq.s32.totalorder %v546_v55, 1  ;;  %v5437_v55 = vld [vmem:[#allocation25_spill] sm:$0xff] }
 0x10e   :  { %v3350_v0 = vpop.eup %3349 }
 0x10f   :  { %v493_v37 = vadd.f32 1.0, %v3350_v0 }
 0x110   :  { %v3352_v54 = vpop.eup %3351 }
 0x111   :  { %3355 = vrcp.f32 %v493_v37  ;;  %v499_v44 = vadd.f32 1.0, %v3352_v54  ;;  %v4139_v54 = vld [vmem:[%s5201_s8] ss:$0 sm:$0xff] }
 0x112   :  { %3357 = vtanh.f32 %v488_v2 }
 0x113   :  { %3359 = vrcp.f32 %v499_v44 }
 0x115   :  { %v3354_v49 = vpop.eup %3353 }
 0x116   :  { %v506_v51 = vadd.f32 1.0, %v3354_v49 }
 0x118   :  { %3361 = vrcp.f32 %v506_v51  ;;  %v5433_v51 = vld [vmem:[#allocation40_spill] sm:$0xff] }
 0x11e   :  { %v3356_v46 = vpop.eup %3355 }
 0x11f   :  { %v3358_v59 = vpop.eup %3357 }
 0x120   :  { %v3360_v52 = vpop.eup %3359  ;;  %v510_v53 = vmul.f32 %v3358_v59, %v3356_v46  ;;  %v535_v59 = vmul.f32 %v184_v61, %v3986_v58  ;;  %v5434_v58 = vld [vmem:[#allocation32_spill] sm:$0xff] }
 0x121   :  { %v509_v1 = vmul.f32 %v3360_v52, %v173_v56  ;;  %v5435_v61 = vld [vmem:[#allocation24_spill] sm:$0xff] }
 0x123   :  { %v511_v63 = vadd.f32 %v510_v53, %v509_v1  ;;  %v3186_v1 = vld [vmem:[%s5193_s0 + $0x2] sm:$0x3] }
 0x124   :  { %v5436_v53 = vld [vmem:[#allocation33_spill] sm:$0xff] }
 0x125   :  { %3363 = vtanh.f32 %v511_v63  ;;  %v515_v60 = vmul.f32 %v511_v63, %v4133_v42  ;;  %v3362_v44 = vpop.eup %3361  ;;  %v5438_v63 = vld [vmem:[#allocation36_spill] sm:$0xff] }
 0x127   :  { %v4142_v0 = vsel %vm547_vm5, %v536_v62, %v515_v60  ;;  %v516_v2 = vmul.f32 %v4139_v54, %v515_v60  ;;  %v5439_v62 = vld [vmem:[#allocation26_spill] sm:$0xff] }
 0x128   :  { %v5440_v60 = vld [vmem:[#allocation38_spill] sm:$0xff] }
 0x129   :  { %v518_v37 = vsel %vm517_vm6, %v516_v2, 0.0  ;;  %v5441_v2 = vld [vmem:[#allocation28_spill] sm:$0xff] }
 0x12a   :  { %519 = vadd.xlane.f32.xlu1 %v518_v37  ;;  %v5442_v37 = vld [vmem:[#allocation41_spill] sm:$0xff] }
 0x132   :  { %v3364_v49 = vpop.eup %3363 }
 0x133   :  { %v513_v46 = vmul.f32 %v3364_v49, %v3362_v44  ;;  %v5443_v44 = vld [vmem:[#allocation29_spill] sm:$0xff]  ;;  %v5444_v49 = vld [vmem:[#allocation43_spill] sm:$0xff] }
 0x135   :  { %v514_v56 = vmul.f32 %v513_v46, %v4133_v42  ;;  %v5445_v46 = vld [vmem:[#allocation31_spill] sm:$0xff]  ;;  %v5449_v42 = vld [vmem:[#allocation37_spill] sm:$0xff] }
 0x137   :  { %v4148_v52 = vsel %vm547_vm5, %v535_v59, %v514_v56  ;;  %v5446_v56 = vld [vmem:[#allocation45_spill] sm:$0xff]  ;;  %v5447_v59 = vld [vmem:[#allocation35_spill] sm:$0xff] }
 0x138   :  { %555 = vst [vmem:[#allocation11] sm:$0x3] %v4148_v52  ;;  %632 = vmatmul.mubr.f32.vlgmr.msra.gmra.mxu0 %v4148_v52  ;;  %703 = vmatmul.mubr.f32.vlgmr.msra.gmra.mxu1 %v4148_v52 }
 0x139   :  { %3188 = vmatpush1.msk.msra.mxu0 %vm335_vm2, %v5433_v51  ;;  %776 = vmatprep.mubr.f32.mxu0 %v5415_v57 }
 0x13a   :  { %3191 = vmatpush1.msk.msra.mxu1 %vm335_vm2, %v4008_v3  ;;  %847 = vmatprep.mubr.f32.mxu1 %v5415_v57 }
 0x13b   :  { %929 = vmatprep.subr.mxu0 %v3789_v4  ;;  %1000 = vmatprep.subr.mxu1 %v3810_v12 }
 0x13c   :  { %3189 = vmatmul.mubr.msk.f32.vlgmr.msra.gmra.mxu0 %vm331_vm4, %v3186_v1  ;;  %3192 = vmatmul.mubr.msk.f32.vlgmr.msra.gmra.mxu1 %vm331_vm4, %v3186_v1  ;;  %v5448_v1 = vld [vmem:[#allocation48_spill] sm:$0xff] }
 0x13d   :  { %930 = vmatpush1.msra.mxu0 %v3791_v5  ;;  %1001 = vmatpush1.msra.mxu1 %v3816_v14 }
 0x13e   :  { %931 = vmatprep.subr.mxu0 %v3793_v6  ;;  %1002 = vmatprep.subr.mxu1 %v3818_v15 }
 0x13f   :  { %932 = vmatpush1.msra.mxu0 %v3796_v7  ;;  %1003 = vmatpush1.msra.mxu1 %v3824_v17 }
 0x140   :  { %933 = vmatprep.subr.mxu0 %v3799_v8  ;;  %1004 = vmatprep.subr.mxu1 %v3830_v19 }
 0x141   :  { %934 = vmatpush1.msra.mxu0 %v3802_v9  ;;  %1005 = vmatpush1.msra.mxu1 %v3832_v20 }
 0x142   :  { %935 = vmatprep.subr.mxu0 %v3805_v10  ;;  %1006 = vmatprep.subr.mxu1 %v3838_v22 }
 0x143   :  { %936 = vmatpush1.msra.mxu0 %v3808_v11  ;;  %1007 = vmatpush1.msra.mxu1 %v3844_v24 }
 0x144   :  { %937 = vmatprep.subr.mxu0 %v3813_v13  ;;  %1008 = vmatprep.subr.mxu1 %v3850_v26 }
 0x145   :  { %938 = vmatpush1.msra.mxu0 %v3821_v16  ;;  %1009 = vmatpush1.msra.mxu1 %v3856_v28 }
 0x146   :  { %939 = vmatprep.subr.mxu0 %v3827_v18  ;;  %1010 = vmatprep.subr.mxu1 %v3862_v30 }
 0x147   :  { %940 = vmatpush1.msra.mxu0 %v3835_v21  ;;  %1011 = vmatpush1.msra.mxu1 %v3868_v32 }
 0x148   :  { %941 = vmatprep.subr.mxu0 %v3841_v23  ;;  %1012 = vmatprep.subr.mxu1 %v3874_v34 }
 0x149   :  { %942 = vmatpush1.msra.mxu0 %v3847_v25  ;;  %1013 = vmatpush1.msra.mxu1 %v3880_v36 }
 0x14a   :  { %943 = vmatprep.subr.mxu0 %v3853_v27  ;;  %1014 = vmatprep.subr.mxu1 %v3889_v39 }
 0x14b   :  { %944 = vmatpush1.msra.mxu0 %v3859_v29  ;;  %1015 = vmatpush1.msra.mxu1 %v3895_v41 }
 0x14c   :  { %945 = vmatprep.subr.mxu0 %v3865_v31  ;;  %1016 = vmatprep.subr.mxu1 %v3901_v43 }
 0x14d   :  { %946 = vmatpush1.msra.mxu0 %v3871_v33  ;;  %1017 = vmatpush1.msra.mxu1 %v3907_v45 }
 0x14e   :  { %947 = vmatprep.subr.mxu0 %v3877_v35  ;;  %1018 = vmatprep.subr.mxu1 %v3915_v48 }
 0x14f   :  { %948 = vmatpush1.msra.mxu0 %v3886_v38  ;;  %1019 = vmatpush1.msra.mxu1 %v5434_v58  ;;  %v5471_v58 = vld [vmem:[#allocation57_spill] sm:$0xff] }
 0x150   :  { %949 = vmatprep.subr.mxu0 %v5435_v61  ;;  %1020 = vmatprep.subr.mxu1 %v5436_v53 }
 0x151   :  { %950 = vmatpush1.msra.mxu0 %v5437_v55  ;;  %1021 = vmatpush1.msra.mxu1 %v5438_v63  ;;  %v5464_v55 = vld [vmem:[#allocation51_spill] sm:$0xff] }
 0x152   :  { %951 = vmatprep.subr.mxu0 %v5439_v62  ;;  %1022 = vmatprep.subr.mxu1 %v5440_v60  ;;  %v5450_v62 = vld [vmem:[#allocation50_spill] sm:$0xff]  ;;  %v5451_v60 = vld [vmem:[#allocation39_spill] sm:$0xff]  ;;  %v540_v53 = vsub.f32 1.0, %v5464_v55 }
 0x153   :  { %952 = vmatpush1.msra.mxu0 %v5441_v2  ;;  %1023 = vmatpush1.msra.mxu1 %v5442_v37  ;;  %v5452_v2 = vld [vmem:[#allocation52_spill] sm:$0xff]  ;;  %v5453_v37 = vld [vmem:[#allocation42_spill] sm:$0xff] }
 0x154   :  { %953 = vmatprep.subr.mxu0 %v5443_v44  ;;  %1024 = vmatprep.subr.mxu1 %v5444_v49  ;;  %v5454_v44 = vld [vmem:[#allocation53_spill] sm:$0xff]  ;;  %v5455_v49 = vld [vmem:[#allocation44_spill] sm:$0xff] }
 0x155   :  { %954 = vmatpush1.msra.mxu0 %v5445_v46  ;;  %1025 = vmatpush1.msra.mxu1 %v5446_v56  ;;  %v5456_v46 = vld [vmem:[#allocation54_spill] sm:$0xff] }
 0x156   :  { %955 = vmatprep.subr.mxu0 %v5447_v59  ;;  %1026 = vmatprep.subr.mxu1 %v5448_v1  ;;  %v5457_v56 = vld [vmem:[#allocation46_spill] sm:$0xff]  ;;  %v5458_v1 = vld [vmem:[#allocation55_spill] sm:$0xff] }
 0x157   :  { %956 = vmatpush1.msra.mxu0 %v5449_v42  ;;  %1027 = vmatpush1.msra.mxu1 %v5450_v62  ;;  %v5459_v62 = vld [vmem:[#allocation47_spill] sm:$0xff] }
 0x158   :  { %957 = vmatprep.subr.mxu0 %v5451_v60  ;;  %1028 = vmatprep.subr.mxu1 %v5452_v2  ;;  %v5460_v2 = vld [vmem:[#allocation56_spill] sm:$0xff]  ;;  %v4237_v60 = vld [vmem:[#allocation6] sm:$0x3] }
 0x159   :  { %958 = vmatpush1.msra.mxu0 %v5453_v37  ;;  %1029 = vmatpush1.msra.mxu1 %v5454_v44  ;;  %v4234_v37 = vld [vmem:[#allocation7] ss:$0 sm:$0xff]  ;;  %5462 = vst [vmem:[#allocation59_spill] sm:$0xff] %v4237_v60 }
 0x15a   :  { %959 = vmatprep.subr.mxu0 %v5455_v49  ;;  %1030 = vmatprep.subr.mxu1 %v5456_v46  ;;  %5461 = vst [vmem:[#allocation40_spill] sm:$0xff] %v4234_v37 }
 0x15b   :  { %960 = vmatpush1.msra.mxu0 %v5457_v56  ;;  %993 = vmatprep.mubr.f32.mxu0 %v5415_v57 }
 0x15c   :  { %1031 = vmatpush1.msra.mxu1 %v5458_v1  ;;  %1064 = vmatprep.mubr.f32.mxu1 %v5415_v57  ;;  %v5463_v1 = vld [vmem:[#allocation34_spill] sm:$0xff] }
 0x15d   :  { %3199 = vmatprep.subr.msk.mxu0 %vm335_vm2, %v5459_v62  ;;  %3202 = vmatprep.subr.msk.mxu1 %vm335_vm2, %v5460_v2  ;;  %v537_v59 = vadd.f32 %v4237_v60, %v5463_v1 }
 0x15f   :  { %v538_v63 = vmax.f32 %v537_v59, 0.0 }
 0x161   :  { %v539_v62 = vmin.f32 %v538_v63, 1.0 }
 0x163   :  { %v541_v2 = vmul.f32 %v540_v53, %v539_v62  ;;  %v5469_v53 = vmov 0  }
 0x1b3   :  { %v520_v44 = vpop.xlane.xlu1 %519 }
 0x1b4   :  { %v527_v49 = vadd.f32 %v4234_v37, %v520_v44 }
 0x1b6   :  { %v3184_v46 = vmul.f32 -1.442695, %v527_v49 }
 0x1b8   :  { %3365 = vpow2.f32 %v3184_v46 }
 0x1c5   :  { %v3366_v56 = vpop.eup %3365 }
 0x1c6   :  { %v531_v42 = vadd.f32 1.0, %v3366_v56 }
 0x1c8   :  { %3367 = vrcp.f32 %v531_v42 }
 0x1d5   :  { %v4242_v61 = vpop.eup %3367 }
 0x1d6   :  { %5465 = vst [vmem:[#allocation34_spill] sm:$0xff] %v4242_v61  ;;  %v534_v44 = vmul.f32 %v4242_v61, %v5464_v55 }
 0x1d8   :  { %v4248_v46 = vsel %vm542_vm3, %v541_v2, %v534_v44 }
 0x1d9   :  { %5467 = vst [vmem:[#allocation51_spill] sm:$0xff] %v4248_v46  ;;  %vm552_vm7 = vcmp.lt.f32.partialorder %v4248_v46, 0.5  ;;  %v3280_v56 = vcvt.f32.s32 %v4248_v46  ;;  %v3278_v55 = vand.u32 2147483647, %v4248_v46  ;;  %v3283_v2 = vand.u32 2147483648, %v4248_v46 }
 0x1da   :  { %v4253_v42 = vsel %vm552_vm7, 1.0, %v5415_v57 }
 0x1db   :  { %5468 = vst [vmem:[#allocation60_spill] sm:$0xff] %v4253_v42  ;;  %vm903_vm8 = vcmp.gt.f32.partialorder %v4253_v42, 0.5  ;;  %v3281_v63 = vcvt.s32.f32 %v3280_v56  ;;  %vm3279_vm9 = vcmp.lt.f32.partialorder %v3278_v55, 8388608.0 }
 0x1dc   :  { %v904_v62 = vsel %vm903_vm8, 1, %v5469_v53 }
 0x1dd   :  { %906 = vperm.xlu0 %3345, %v904_v62   ;;  %v3282_v59 = vand.u32 2147483647, %v3281_v63 }
 0x1df   :  { %v3284_v1 = vor.u32 %v3283_v2, %v3282_v59 }
 0x1e1   :  { %v4262_v44 = vsel %vm3279_vm9, %v3284_v1, %v4248_v46 }
 0x1e2   :  { %5470 = vst [vmem:[#allocation61_spill] sm:$0xff] %v4262_v44  ;;  %563 = vperm.xlu1 %3346, %v4262_v44  }
 0x1f8   :  { %v633_v49 = vpop.f32.mrf.mxu0  ;;  %v704_v48 = vpop.f32.mrf.mxu1 }
 0x1fa   :  { %v635_v60 = vpop.f32.mrf.mxu0  ;;  %v706_v55 = vpop.f32.mrf.mxu1 }
 0x1fc   :  { %v778_v56 = vpop.f32.mrf.mxu0  ;;  %v849_v59 = vpop.f32.mrf.mxu1 }
 0x1fd   :  { %v779_v42 = vadd.f32 %v778_v56, %v633_v49  ;;  %v850_v35 = vadd.f32 %v849_v59, %v704_v48 }
 0x1fe   :  { %v780_v61 = vpop.f32.mrf.mxu0  ;;  %v851_v2 = vpop.f32.mrf.mxu1 }
 0x1ff   :  { %v781_v37 = vadd.f32 %v780_v61, %v635_v60  ;;  %v854_v62 = vadd.f32 %v779_v42, %v5471_v58  ;;  %v852_v44 = vadd.f32 %v851_v2, %v706_v55  ;;  %v856_v60 = vadd.f32 %v850_v35, %v4130_v50 }
 0x201   :  { %v855_v53 = vadd.f32 %v781_v37, %v4123_v47  ;;  %v3193_v38 = vmul.f32 -1.442695, %v854_v62  ;;  %v857_v61 = vadd.f32 %v852_v44, %v4127_v40 }
 0x203   :  { %v3194_v63 = vmul.f32 -1.442695, %v855_v53  ;;  %v3195_v37 = vmul.f32 -1.442695, %v857_v61 }
 0x205   :  { %3369 = vpow2.f32 %v3194_v63 }
 0x206   :  { %3371 = vpow2.f32 %v3193_v38 }
 0x212   :  { %v3370_v1 = vpop.eup %3369 }
 0x213   :  { %v3372_v46 = vpop.eup %3371  ;;  %v867_v45 = vadd.f32 1.0, %v3370_v1 }
 0x214   :  { %v861_v33 = vadd.f32 1.0, %v3372_v46 }
 0x215   :  { %3373 = vrcp.f32 %v867_v45 }
 0x216   :  { %3375 = vrcp.f32 %v861_v33 }
 0x217   :  { %3377 = vtanh.f32 %v856_v60 }
 0x218   :  { %3379 = vpow2.f32 %v3195_v37 }
 0x222   :  { %v3374_v49 = vpop.eup %3373 }
 0x223   :  { %v3376_v38 = vpop.eup %3375  ;;  %v877_v42 = vmul.f32 %v3374_v49, %v4142_v0 }
 0x224   :  { %v3378_v53 = vpop.eup %3377 }
 0x225   :  { %v878_v56 = vmul.f32 %v3378_v53, %v3376_v38  ;;  %v3380_v62 = vpop.eup %3379 }
 0x226   :  { %v874_v48 = vadd.f32 1.0, %v3380_v62  ;;  %v5506_v62 = vld [vmem:[#allocation59_spill] sm:$0xff] }
 0x227   :  { %v879_v63 = vadd.f32 %v878_v56, %v877_v42  ;;  %v5505_v56 = vld [vmem:[#allocation34_spill] sm:$0xff] }
 0x229   :  { %3381 = vtanh.f32 %v879_v63 }
 0x22a   :  { %3383 = vrcp.f32 %v874_v48  ;;  %v4372_v48 = vsel %vm542_vm3, %v5506_v62, %v5505_v56 }
 0x236   :  { %v3382_v46 = vpop.eup %3381 }
 0x237   :  { %v3384_v44 = vpop.eup %3383 }
 0x238   :  { %v881_v45 = vmul.f32 %v3384_v44, %v3382_v46  ;;  %v5508_v46 = vld [vmem:[#allocation51_spill] sm:$0xff] }
 0x239   :  { %v898_v44 = vadd.f32 %v4372_v48, %v5508_v46 }
 0x258   :  { %v907_v35 = vpop.permute.xlu0 %906 }
 0x259   :  { %vm908_vm10 = vcmp.eq.s32.totalorder %v907_v35, 1  ;;  %v899_v35 = vmax.f32 %v898_v44, 0.0 }
 0x25d   :  { %v4270_v55 = vpop.permute.xlu1 %563 }
 0x25e   :  { %v566_v33 = vsub.f32 1.0, %v4270_v55  ;;  %v883_v59 = vmul.f32 %v879_v63, %v4270_v55  ;;  %v882_v2 = vmul.f32 %v881_v45, %v4270_v55 }
 0x260   :  { %v896_v1 = vmul.f32 %v566_v33, %v4148_v52  ;;  %v897_v61 = vmul.f32 %v566_v33, %v4142_v0  ;;  %v884_v60 = vmul.f32 %v4139_v54, %v883_v59  ;;  %v3198_v0 = vld [vmem:[%s5193_s0 + $0x4] sm:$0x3] }
 0x261   :  { %v5509_v33 = vld [vmem:[#allocation61_spill] sm:$0xff] }
 0x262   :  { %v885_v37 = vsel %vm517_vm6, %v884_v60, 0.0  ;;  %v4279_v49 = vsel %vm908_vm10, %v897_v61, %v883_v59  ;;  %v4281_v38 = vsel %vm908_vm10, %v896_v1, %v882_v2  ;;  %v901_v45 = vsub.f32 1.0, %v5509_v33 }
 0x263   :  { %886 = vadd.xlane.f32.xlu0 %v885_v37  ;;  %917 = vst [vmem:[#allocation11 + $0x2] sm:$0x3] %v4281_v38  ;;  %994 = vmatmul.mubr.f32.vlgmr.msra.gmra.mxu0 %v4281_v38  ;;  %v900_v59 = vmin.f32 %v899_v35, 1.0  ;;  %v5513_v35 = vlaneseq }
 0x264   :  { %1065 = vmatmul.mubr.f32.vlgmr.msra.gmra.mxu1 %v4281_v38  ;;  %3200 = vmatpush1.msk.msra.mxu0 %vm335_vm2, %v5433_v51 }
 0x265   :  { %1138 = vmatprep.mubr.f32.mxu0 %v5415_v57  ;;  %3203 = vmatpush1.msk.msra.mxu1 %vm335_vm2, %v4008_v3  ;;  %v902_v1 = vmul.f32 %v901_v45, %v900_v59  ;;  %v5514_v59 = vld [vmem:[#allocation58_spill] sm:$0xff] }
 0x266   :  { %1209 = vmatprep.mubr.f32.mxu1 %v5415_v57  ;;  %1291 = vmatprep.subr.mxu0 %v3789_v4  ;;  %v5472_v4 = vld [vmem:[#allocation21_spill] sm:$0xff] }
 0x267   :  { %3201 = vmatmul.mubr.msk.f32.vlgmr.msra.gmra.mxu0 %vm331_vm4, %v3198_v0  ;;  %1362 = vmatprep.subr.mxu1 %v3810_v12  ;;  %v5480_v12 = vld [vmem:[#allocation25_spill] sm:$0xff] }
 0x268   :  { %3204 = vmatmul.mubr.msk.f32.vlgmr.msra.gmra.mxu1 %vm331_vm4, %v3198_v0  ;;  %1292 = vmatpush1.msra.mxu0 %v3791_v5  ;;  %v5473_v5 = vld [vmem:[#allocation27_spill] sm:$0xff] }
 0x269   :  { %1363 = vmatpush1.msra.mxu1 %v3816_v14  ;;  %1293 = vmatprep.subr.mxu0 %v3793_v6  ;;  %v5474_v6 = vld [vmem:[#allocation22_spill] sm:$0xff] }
 0x26a   :  { %1364 = vmatprep.subr.mxu1 %v3818_v15  ;;  %1294 = vmatpush1.msra.mxu0 %v3796_v7  ;;  %v5475_v7 = vld [vmem:[#allocation30_spill] sm:$0xff] }
 0x26b   :  { %1365 = vmatpush1.msra.mxu1 %v3824_v17  ;;  %1295 = vmatprep.subr.mxu0 %v3799_v8  ;;  %v5476_v8 = vld [vmem:[#allocation23_spill] sm:$0xff]  ;;  %v5482_v14 = vld [vmem:[#allocation26_spill] sm:$0xff]  ;;  %v5485_v17 = vld [vmem:[#allocation41_spill] sm:$0xff] }
 0x26c   :  { %1366 = vmatprep.subr.mxu1 %v3830_v19  ;;  %1296 = vmatpush1.msra.mxu0 %v3802_v9  ;;  %v5477_v9 = vld [vmem:[#allocation32_spill] sm:$0xff]  ;;  %v5483_v15 = vld [vmem:[#allocation38_spill] sm:$0xff]  ;;  %v5487_v19 = vld [vmem:[#allocation43_spill] sm:$0xff] }
 0x26d   :  { %1367 = vmatpush1.msra.mxu1 %v3832_v20  ;;  %1297 = vmatprep.subr.mxu0 %v3805_v10  ;;  %v5478_v10 = vld [vmem:[#allocation24_spill] sm:$0xff]  ;;  %v5488_v20 = vld [vmem:[#allocation31_spill] sm:$0xff] }
 0x26e   :  { %1368 = vmatprep.subr.mxu1 %v3838_v22  ;;  %1298 = vmatpush1.msra.mxu0 %v3808_v11  ;;  %v5479_v11 = vld [vmem:[#allocation33_spill] sm:$0xff]  ;;  %v5490_v22 = vld [vmem:[#allocation35_spill] sm:$0xff] }
 0x26f   :  { %1369 = vmatpush1.msra.mxu1 %v3844_v24  ;;  %1299 = vmatprep.subr.mxu0 %v3813_v13  ;;  %v5481_v13 = vld [vmem:[#allocation36_spill] sm:$0xff]  ;;  %v5492_v24 = vld [vmem:[#allocation37_spill] sm:$0xff] }
 0x270   :  { %1370 = vmatprep.subr.mxu1 %v3850_v26  ;;  %1300 = vmatpush1.msra.mxu0 %v3821_v16  ;;  %v5484_v16 = vld [vmem:[#allocation28_spill] sm:$0xff]  ;;  %v5494_v26 = vld [vmem:[#allocation39_spill] sm:$0xff] }
 0x271   :  { %1371 = vmatpush1.msra.mxu1 %v3856_v28  ;;  %1301 = vmatprep.subr.mxu0 %v3827_v18  ;;  %v5486_v18 = vld [vmem:[#allocation29_spill] sm:$0xff]  ;;  %v5496_v28 = vld [vmem:[#allocation42_spill] sm:$0xff] }
 0x272   :  { %1372 = vmatprep.subr.mxu1 %v3862_v30  ;;  %1302 = vmatpush1.msra.mxu0 %v3835_v21  ;;  %v5489_v21 = vld [vmem:[#allocation45_spill] sm:$0xff]  ;;  %v5498_v30 = vld [vmem:[#allocation44_spill] sm:$0xff] }
 0x273   :  { %1373 = vmatpush1.msra.mxu1 %v3868_v32  ;;  %1303 = vmatprep.subr.mxu0 %v3841_v23  ;;  %v5491_v23 = vld [vmem:[#allocation48_spill] sm:$0xff]  ;;  %v5500_v32 = vld [vmem:[#allocation46_spill] sm:$0xff] }
 0x274   :  { %1374 = vmatprep.subr.mxu1 %v3874_v34  ;;  %1304 = vmatpush1.msra.mxu0 %v3847_v25  ;;  %v5493_v25 = vld [vmem:[#allocation50_spill] sm:$0xff]  ;;  %v5501_v34 = vld [vmem:[#allocation55_spill] sm:$0xff] }
 0x275   :  { %1375 = vmatpush1.msra.mxu1 %v3880_v36  ;;  %1305 = vmatprep.subr.mxu0 %v3853_v27  ;;  %v5495_v27 = vld [vmem:[#allocation52_spill] sm:$0xff]  ;;  %v5502_v36 = vld [vmem:[#allocation47_spill] sm:$0xff] }
 0x276   :  { %1376 = vmatprep.subr.mxu1 %v3889_v39  ;;  %1306 = vmatpush1.msra.mxu0 %v3859_v29  ;;  %v5497_v29 = vld [vmem:[#allocation53_spill] sm:$0xff]  ;;  %v5503_v39 = vld [vmem:[#allocation56_spill] sm:$0xff] }
 0x277   :  { %1377 = vmatpush1.msra.mxu1 %v3895_v41  ;;  %1307 = vmatprep.subr.mxu0 %v3865_v31  ;;  %v5499_v31 = vld [vmem:[#allocation54_spill] sm:$0xff] }
 0x278   :  { %1378 = vmatprep.subr.mxu1 %v3901_v43  ;;  %1308 = vmatpush1.msra.mxu0 %v5472_v4  ;;  %v5504_v43 = vld [vmem:[#allocation40_spill] sm:$0xff] }
 0x279   :  { %1379 = vmatpush1.msra.mxu1 %v5473_v5  ;;  %1309 = vmatprep.subr.mxu0 %v5474_v6 }
 0x27a   :  { %1380 = vmatprep.subr.mxu1 %v5475_v7  ;;  %1310 = vmatpush1.msra.mxu0 %v5476_v8 }
 0x27b   :  { %1381 = vmatpush1.msra.mxu1 %v5477_v9  ;;  %1311 = vmatprep.subr.mxu0 %v5478_v10 }
 0x27c   :  { %1382 = vmatprep.subr.mxu1 %v5479_v11  ;;  %1312 = vmatpush1.msra.mxu0 %v5480_v12  ;;  %v5512_v11 = vmov 0  }
 0x27d   :  { %1383 = vmatpush1.msra.mxu1 %v5481_v13  ;;  %1313 = vmatprep.subr.mxu0 %v5482_v14 }
 0x27e   :  { %1384 = vmatprep.subr.mxu1 %v5483_v15  ;;  %1314 = vmatpush1.msra.mxu0 %v5484_v16 }
 0x27f   :  { %1385 = vmatpush1.msra.mxu1 %v5485_v17  ;;  %1315 = vmatprep.subr.mxu0 %v5486_v18 }
 0x280   :  { %1386 = vmatprep.subr.mxu1 %v5487_v19  ;;  %1316 = vmatpush1.msra.mxu0 %v5488_v20 }
 0x281   :  { %1387 = vmatpush1.msra.mxu1 %v5489_v21  ;;  %1317 = vmatprep.subr.mxu0 %v5490_v22 }
 0x282   :  { %1388 = vmatprep.subr.mxu1 %v5491_v23  ;;  %1318 = vmatpush1.msra.mxu0 %v5492_v24 }
 0x283   :  { %1389 = vmatpush1.msra.mxu1 %v5493_v25  ;;  %1319 = vmatprep.subr.mxu0 %v5494_v26 }
 0x284   :  { %1390 = vmatprep.subr.mxu1 %v5495_v27  ;;  %1320 = vmatpush1.msra.mxu0 %v5496_v28 }
 0x285   :  { %1391 = vmatpush1.msra.mxu1 %v5497_v29  ;;  %1321 = vmatprep.subr.mxu0 %v5498_v30 }
 0x286   :  { %1392 = vmatprep.subr.mxu1 %v5499_v31  ;;  %1322 = vmatpush1.msra.mxu0 %v5500_v32 }
 0x287   :  { %1355 = vmatprep.mubr.f32.mxu0 %v5415_v57  ;;  %1393 = vmatpush1.msra.mxu1 %v5501_v34 }
 0x288   :  { %1426 = vmatprep.mubr.f32.mxu1 %v5415_v57  ;;  %3211 = vmatprep.subr.msk.mxu0 %vm335_vm2, %v5502_v36 }
 0x289   :  { %3214 = vmatprep.subr.msk.mxu1 %vm335_vm2, %v5503_v39 }
 0x2ec   :  { %v887_v41 = vpop.xlane.xlu0 %886 }
 0x2ed   :  { %v888_v52 = vadd.f32 %v5504_v43, %v887_v41 }
 0x2ef   :  { %v3196_v51 = vmul.f32 -1.442695, %v888_v52 }
 0x2f1   :  { %3385 = vpow2.f32 %v3196_v51 }
 0x2fe   :  { %v3386_v42 = vpop.eup %3385 }
 0x2ff   :  { %v892_v53 = vadd.f32 1.0, %v3386_v42 }
 0x301   :  { %3387 = vrcp.f32 %v892_v53 }
 0x30e   :  { %v4377_v2 = vpop.eup %3387 }
 0x30f   :  { %v895_v61 = vmul.f32 %v4377_v2, %v5509_v33  ;;  %v4406_v33 = vand.u32 127, %v5513_v35  ;;  %v4520_v35 = vld [vmem:[#allocation8 + $0x120] sm:$0xff] }
 0x311   :  { %v4383_v37 = vsel %vm903_vm8, %v902_v1, %v895_v61  ;;  %vm556_vm14 = vcmp.eq.s32.totalorder %v4406_v33, 0  ;;  %vm918_vm15 = vcmp.eq.s32.totalorder %v4406_v33, 1  ;;  %vm1280_vm1 = vcmp.eq.s32.totalorder %v4406_v33, 2 }
 0x312   :  { %v3288_v0 = vcvt.f32.s32 %v4383_v37  ;;  %v3286_v5 = vand.u32 2147483647, %v4383_v37  ;;  %vm913_vm11 = vcmp.lt.f32.partialorder %v4383_v37, 0.5  ;;  %v3291_v7 = vand.u32 2147483648, %v4383_v37 }
 0x313   :  { %v4390_v9 = vsel %vm913_vm11, 1.0, %v5415_v57  ;;  %v557_v1 = vsel %vm556_vm14, %v5514_v59, 0.0  ;;  %v4526_v59 = vld [vmem:[#allocation8 + $0x108] sm:$0xff]  ;;  %vm1642_vm9 = vcmp.eq.s32.totalorder %v4406_v33, 3  ;;  %vm2004_vm14 = vcmp.eq.s32.totalorder %v4406_v33, 4 }
 0x314   :  { %v3289_v4 = vcvt.s32.f32 %v3288_v0  ;;  %5511 = vst [vmem:[#allocation57_spill] sm:$0xff] %v4390_v9  ;;  %vm3287_vm12 = vcmp.lt.f32.partialorder %v3286_v5, 8388608.0  ;;  %vm1265_vm13 = vcmp.gt.f32.partialorder %v4390_v9, 0.5  ;;  %v919_v61 = vsel %vm918_vm15, %v4270_v55, %v557_v1  ;;  %v4529_v1 = vld [vmem:[#allocation8 + $0x118] sm:$0xff] }
 0x315   :  { %v1266_v12 = vsel %vm1265_vm13, 1, %v5512_v11 }
 0x316   :  { %v3290_v6 = vand.u32 2147483647, %v3289_v4 }
 0x318   :  { %v3292_v8 = vor.u32 %v3291_v7, %v3290_v6 }
 0x31a   :  { %v4393_v10 = vsel %vm3287_vm12, %v3292_v8, %v4383_v37 }
 0x31b   :  { %925 = vperm.xlu1 %3346, %v4393_v10  }
 0x31f   :  { %1268 = vperm.xlu1 %3346, %v1266_v12  }
 0x323   :  { %v995_v13 = vpop.f32.mrf.mxu0 }
 0x324   :  { %v1066_v23 = vpop.f32.mrf.mxu1 }
 0x325   :  { %v997_v14 = vpop.f32.mrf.mxu0 }
 0x326   :  { %v1068_v24 = vpop.f32.mrf.mxu1 }
 0x327   :  { %v1140_v15 = vpop.f32.mrf.mxu0 }
 0x328   :  { %v1141_v18 = vadd.f32 %v1140_v15, %v995_v13  ;;  %v1211_v25 = vpop.f32.mrf.mxu1 }
 0x329   :  { %v1142_v16 = vpop.f32.mrf.mxu0  ;;  %v1212_v30 = vadd.f32 %v1211_v25, %v1066_v23  ;;  %v4457_v23 = vld [vmem:[#allocation8 + $0x1d8] sm:$0xff]  ;;  %v4463_v25 = vld [vmem:[#allocation8 + $0x1d0] sm:$0xff] }
 0x32a   :  { %v1143_v17 = vadd.f32 %v1142_v16, %v997_v14  ;;  %v1216_v20 = vadd.f32 %v1141_v18, %v5471_v58  ;;  %v1213_v26 = vpop.f32.mrf.mxu1 }
 0x32b   :  { %v1214_v28 = vadd.f32 %v1213_v26, %v1068_v24  ;;  %v1218_v41 = vadd.f32 %v1212_v30, %v4130_v50  ;;  %v4460_v24 = vld [vmem:[#allocation8 + $0x1c0] sm:$0xff]  ;;  %v4466_v26 = vld [vmem:[#allocation8 + $0x1a8] sm:$0xff] }
 0x32c   :  { %v1217_v19 = vadd.f32 %v1143_v17, %v4123_v47  ;;  %v3205_v22 = vmul.f32 -1.442695, %v1216_v20  ;;  %v4443_v20 = vld [vmem:[#allocation8 + $0x1f8] sm:$0xff]  ;;  %v4478_v30 = vld [vmem:[#allocation8 + $0x188] sm:$0xff] }
 0x32d   :  { %v1219_v34 = vadd.f32 %v1214_v28, %v4127_v40  ;;  %v4472_v28 = vld [vmem:[#allocation8 + $0x1a0] sm:$0xff] }
 0x32e   :  { %v3206_v21 = vmul.f32 -1.442695, %v1217_v19  ;;  %v4440_v19 = vld [vmem:[#allocation8 + $0x1e8] sm:$0xff] }
 0x32f   :  { %v3207_v52 = vmul.f32 -1.442695, %v1219_v34  ;;  %v4487_v34 = vld [vmem:[#allocation8 + $0x190] sm:$0xff] }
 0x330   :  { %3389 = vpow2.f32 %v3206_v21  ;;  %v4448_v21 = vld [vmem:[#allocation8 + $0x1e0] sm:$0xff] }
 0x331   :  { %3391 = vpow2.f32 %v3205_v22  ;;  %v4451_v22 = vld [vmem:[#allocation8 + $0x1f0] sm:$0xff] }
 0x33d   :  { %v3390_v27 = vpop.eup %3389 }
 0x33e   :  { %v3392_v29 = vpop.eup %3391  ;;  %v1229_v31 = vadd.f32 1.0, %v3390_v27  ;;  %v4469_v27 = vld [vmem:[#allocation8 + $0x1b8] sm:$0xff] }
 0x33f   :  { %v1223_v32 = vadd.f32 1.0, %v3392_v29  ;;  %v4475_v29 = vld [vmem:[#allocation8 + $0x1b0] sm:$0xff] }
 0x340   :  { %3393 = vrcp.f32 %v1229_v31  ;;  %v4481_v31 = vld [vmem:[#allocation8 + $0x198] sm:$0xff] }
 0x341   :  { %3395 = vrcp.f32 %v1223_v32  ;;  %v4484_v32 = vld [vmem:[#allocation8 + $0x180] sm:$0xff] }
 0x342   :  { %3397 = vtanh.f32 %v1218_v41  ;;  %v4490_v41 = vld [vmem:[#allocation8 + $0x168] sm:$0xff] }
 0x343   :  { %3399 = vpow2.f32 %v3207_v52  ;;  %v4493_v52 = vld [vmem:[#allocation8 + $0x178] sm:$0xff] }
 0x34d   :  { %v3394_v51 = vpop.eup %3393 }
 0x34e   :  { %v3396_v42 = vpop.eup %3395  ;;  %v1239_v53 = vmul.f32 %v3394_v51, %v4279_v49  ;;  %v4496_v51 = vld [vmem:[#allocation8 + $0x160] sm:$0xff] }
 0x34f   :  { %v3398_v56 = vpop.eup %3397 }
 0x350   :  { %v1240_v62 = vmul.f32 %v3398_v56, %v3396_v42  ;;  %v3400_v63 = vpop.eup %3399  ;;  %v4499_v42 = vld [vmem:[#allocation8 + $0x170] sm:$0xff]  ;;  %v4505_v56 = vld [vmem:[#allocation8 + $0x158] sm:$0xff] }
 0x351   :  { %v1236_v44 = vadd.f32 1.0, %v3400_v63  ;;  %v4511_v63 = vld [vmem:[#allocation8 + $0x150] sm:$0xff] }
 0x352   :  { %v1241_v46 = vadd.f32 %v1240_v62, %v1239_v53  ;;  %v4502_v53 = vld [vmem:[#allocation8 + $0x148] sm:$0xff]  ;;  %v4508_v62 = vld [vmem:[#allocation8 + $0x140] sm:$0xff] }
 0x354   :  { %3401 = vtanh.f32 %v1241_v46 }
 0x355   :  { %3403 = vrcp.f32 %v1236_v44  ;;  %v4517_v44 = vld [vmem:[#allocation8 + $0x138] sm:$0xff] }
 0x361   :  { %v3402_v45 = vpop.eup %3401 }
 0x362   :  { %v3404_v4 = vpop.eup %3403 }
 0x363   :  { %v1243_v8 = vmul.f32 %v3404_v4, %v3402_v45  ;;  %v4523_v45 = vld [vmem:[#allocation8 + $0x130] sm:$0xff]  ;;  %v4538_v4 = vld [vmem:[#allocation8 + $0xe8] sm:$0xff] }
 0x364   :  { %5515 = vst [vmem:[#allocation21_spill] sm:$0xff] %v4538_v4 }
 0x396   :  { %v926_v0 = vpop.permute.xlu1 %925 }
 0x397   :  { %v928_v5 = vsub.f32 1.0, %v926_v0  ;;  %v1245_v6 = vmul.f32 %v1241_v46, %v926_v0  ;;  %v4413_v7 = vsel %vm1280_vm1, %v926_v0, %v919_v61  ;;  %v1244_v15 = vmul.f32 %v1243_v8, %v926_v0  ;;  %v4514_v46 = vld [vmem:[#allocation8 + $0x128] sm:$0xff]  ;;  %v4532_v61 = vld [vmem:[#allocation8 + $0x100] sm:$0xff]  ;;  %v4535_v0 = vld [vmem:[#allocation8 + $0x110] sm:$0xff] }
 0x398   :  { %v4547_v8 = vld [vmem:[#allocation8 + $0xf0] sm:$0xff] }
 0x399   :  { %v1259_v12 = vmul.f32 %v928_v5, %v4279_v49  ;;  %v1258_v13 = vmul.f32 %v928_v5, %v4281_v38  ;;  %v1246_v14 = vmul.f32 %v4139_v54, %v1245_v6  ;;  %v4429_v49 = vld [vmem:[%s5198_s5] sm:$0xff]  ;;  %5518 = vst [vmem:[#allocation30_spill] sm:$0xff] %v4547_v8 }
 0x39a   :  { %v1269_v16 = vpop.permute.xlu1 %1268  ;;  %v3210_v38 = vld [vmem:[%s5193_s0 + $0x6] sm:$0x3] }
 0x39b   :  { %vm1270_vm3 = vcmp.eq.s32.totalorder %v1269_v16, 1  ;;  %v1247_v17 = vsel %vm517_vm6, %v1246_v14, 0.0  ;;  %v4541_v5 = vld [vmem:[#allocation8 + $0xf8] sm:$0xff]  ;;  %v4556_v14 = vld [vmem:[#allocation8 + $0xc0] sm:$0xff]  ;;  %v4562_v16 = vld [vmem:[#allocation8 + $0xa8] sm:$0xff] }
 0x39c   :  { %v4419_v18 = vsel %vm1270_vm3, %v1258_v13, %v1244_v15  ;;  %v4421_v55 = vsel %vm1270_vm3, %v1259_v12, %v1245_v6  ;;  %1248 = vadd.xlane.f32.xlu1 %v1247_v17  ;;  %5516 = vst [vmem:[#allocation27_spill] sm:$0xff] %v4541_v5  ;;  %v4544_v6 = vld [vmem:[#allocation8 + $0xe0] sm:$0xff]  ;;  %v4550_v12 = vld [vmem:[#allocation8 + $0xc8] sm:$0xff]  ;;  %v4553_v13 = vld [vmem:[#allocation8 + $0xd8] sm:$0xff] }
 0x39d   :  { %1279 = vst [vmem:[#allocation11 + $0x4] sm:$0x3] %v4419_v18  ;;  %1356 = vmatmul.mubr.f32.vlgmr.msra.gmra.mxu0 %v4419_v18  ;;  %1427 = vmatmul.mubr.f32.vlgmr.msra.gmra.mxu1 %v4419_v18  ;;  %5517 = vst [vmem:[#allocation22_spill] sm:$0xff] %v4544_v6  ;;  %v4559_v15 = vld [vmem:[#allocation8 + $0xd0] sm:$0xff]  ;;  %v4565_v17 = vld [vmem:[#allocation8 + $0xb8] sm:$0xff] }
 0x39e   :  { %3212 = vmatpush1.msk.msra.mxu0 %vm335_vm2, %v4429_v49  ;;  %1500 = vmatprep.mubr.f32.mxu0 %v5415_v57  ;;  %5519 = vst [vmem:[#allocation23_spill] sm:$0xff] %v4550_v12  ;;  %5520 = vst [vmem:[#allocation32_spill] sm:$0xff] %v4553_v13 }
 0x39f   :  { %3215 = vmatpush1.msk.msra.mxu1 %vm335_vm2, %v4008_v3  ;;  %1571 = vmatprep.mubr.f32.mxu1 %v5415_v57  ;;  %v4454_v3 = vld [vmem:[#allocation8 + $0x1c8] sm:$0xff]  ;;  %5521 = vst [vmem:[#allocation24_spill] sm:$0xff] %v4556_v14  ;;  %5522 = vst [vmem:[#allocation33_spill] sm:$0xff] %v4559_v15 }
 0x3a0   :  { %1653 = vmatprep.subr.mxu0 %v4440_v19  ;;  %1724 = vmatprep.subr.mxu1 %v4443_v20  ;;  %5523 = vst [vmem:[#allocation25_spill] sm:$0xff] %v4562_v16  ;;  %5524 = vst [vmem:[#allocation36_spill] sm:$0xff] %v4565_v17 }
 0x3a1   :  { %3213 = vmatmul.mubr.msk.f32.vlgmr.msra.gmra.mxu0 %vm331_vm4, %v3210_v38  ;;  %3216 = vmatmul.mubr.msk.f32.vlgmr.msra.gmra.mxu1 %vm331_vm4, %v3210_v38  ;;  %v4568_v38 = vld [vmem:[#allocation8 + $0xa0] sm:$0xff] }
 0x3a2   :  { %1654 = vmatpush1.msra.mxu0 %v4448_v21  ;;  %1725 = vmatpush1.msra.mxu1 %v4451_v22  ;;  %5525 = vst [vmem:[#allocation26_spill] sm:$0xff] %v4568_v38 }
 0x3a3   :  { %1655 = vmatprep.subr.mxu0 %v4454_v3  ;;  %1726 = vmatprep.subr.mxu1 %v4457_v23 }
 0x3a4   :  { %1656 = vmatpush1.msra.mxu0 %v4460_v24  ;;  %1727 = vmatpush1.msra.mxu1 %v4463_v25 }
 0x3a5   :  { %1657 = vmatprep.subr.mxu0 %v4466_v26  ;;  %1728 = vmatprep.subr.mxu1 %v4469_v27 }
 0x3a6   :  { %1658 = vmatpush1.msra.mxu0 %v4472_v28  ;;  %1729 = vmatpush1.msra.mxu1 %v4475_v29 }
 0x3a7   :  { %1659 = vmatprep.subr.mxu0 %v4478_v30  ;;  %1730 = vmatprep.subr.mxu1 %v4481_v31 }
 0x3a8   :  { %1660 = vmatpush1.msra.mxu0 %v4484_v32  ;;  %1731 = vmatpush1.msra.mxu1 %v4487_v34 }
 0x3a9   :  { %1661 = vmatprep.subr.mxu0 %v4490_v41  ;;  %1732 = vmatprep.subr.mxu1 %v4493_v52 }
 0x3aa   :  { %1662 = vmatpush1.msra.mxu0 %v4496_v51  ;;  %1733 = vmatpush1.msra.mxu1 %v4499_v42 }
 0x3ab   :  { %1663 = vmatprep.subr.mxu0 %v4502_v53  ;;  %1734 = vmatprep.subr.mxu1 %v4505_v56 }
 0x3ac   :  { %1664 = vmatpush1.msra.mxu0 %v4508_v62  ;;  %1735 = vmatpush1.msra.mxu1 %v4511_v63 }
 0x3ad   :  { %1665 = vmatprep.subr.mxu0 %v4514_v46  ;;  %1736 = vmatprep.subr.mxu1 %v4517_v44 }
 0x3ae   :  { %1666 = vmatpush1.msra.mxu0 %v4520_v35  ;;  %1737 = vmatpush1.msra.mxu1 %v4523_v45 }
 0x3af   :  { %1667 = vmatprep.subr.mxu0 %v4526_v59  ;;  %1738 = vmatprep.subr.mxu1 %v4529_v1 }
 0x3b0   :  { %1668 = vmatpush1.msra.mxu0 %v4532_v61  ;;  %1739 = vmatpush1.msra.mxu1 %v4535_v0 }
 0x3b1   :  { %1669 = vmatprep.subr.mxu0 %v4538_v4  ;;  %1740 = vmatprep.subr.mxu1 %v4541_v5 }
 0x3b2   :  { %1670 = vmatpush1.msra.mxu0 %v4544_v6  ;;  %1741 = vmatpush1.msra.mxu1 %v4547_v8 }
 0x3b3   :  { %1671 = vmatprep.subr.mxu0 %v4550_v12  ;;  %1742 = vmatprep.subr.mxu1 %v4553_v13  ;;  %v4571_v13 = vld [vmem:[#allocation8 + $0xb0] sm:$0xff] }
 0x3b4   :  { %1672 = vmatpush1.msra.mxu0 %v4556_v14  ;;  %1743 = vmatpush1.msra.mxu1 %v4559_v15  ;;  %5526 = vst [vmem:[#allocation38_spill] sm:$0xff] %v4571_v13  ;;  %v4574_v14 = vld [vmem:[#allocation8 + $0x88] sm:$0xff]  ;;  %v4577_v15 = vld [vmem:[#allocation8 + $0x98] sm:$0xff] }
 0x3b5   :  { %1673 = vmatprep.subr.mxu0 %v4562_v16  ;;  %1744 = vmatprep.subr.mxu1 %v4565_v17  ;;  %5527 = vst [vmem:[#allocation28_spill] sm:$0xff] %v4574_v14  ;;  %5528 = vst [vmem:[#allocation41_spill] sm:$0xff] %v4577_v15  ;;  %v4580_v16 = vld [vmem:[#allocation8 + $0x80] sm:$0xff]  ;;  %v4583_v17 = vld [vmem:[#allocation8 + $0x90] sm:$0xff] }
 0x3b6   :  { %1674 = vmatpush1.msra.mxu0 %v4568_v38  ;;  %1745 = vmatpush1.msra.mxu1 %v4571_v13  ;;  %5529 = vst [vmem:[#allocation29_spill] sm:$0xff] %v4580_v16  ;;  %5530 = vst [vmem:[#allocation43_spill] sm:$0xff] %v4583_v17  ;;  %v4586_v38 = vld [vmem:[#allocation8 + $0x68] sm:$0xff]  ;;  %v4589_v13 = vld [vmem:[#allocation8 + $0x78] sm:$0xff] }
 0x3b7   :  { %1675 = vmatprep.subr.mxu0 %v4574_v14  ;;  %1746 = vmatprep.subr.mxu1 %v4577_v15  ;;  %5531 = vst [vmem:[#allocation31_spill] sm:$0xff] %v4586_v38  ;;  %5532 = vst [vmem:[#allocation45_spill] sm:$0xff] %v4589_v13  ;;  %v4592_v14 = vld [vmem:[#allocation8 + $0x60] sm:$0xff]  ;;  %v4595_v15 = vld [vmem:[#allocation8 + $0x70] sm:$0xff] }
 0x3b8   :  { %1676 = vmatpush1.msra.mxu0 %v4580_v16  ;;  %1747 = vmatpush1.msra.mxu1 %v4583_v17  ;;  %5533 = vst [vmem:[#allocation35_spill] sm:$0xff] %v4592_v14  ;;  %5534 = vst [vmem:[#allocation48_spill] sm:$0xff] %v4595_v15  ;;  %v4598_v16 = vld [vmem:[#allocation8 + $0x48] sm:$0xff]  ;;  %v4601_v17 = vld [vmem:[#allocation8 + $0x58] sm:$0xff] }
 0x3b9   :  { %1677 = vmatprep.subr.mxu0 %v4586_v38  ;;  %1748 = vmatprep.subr.mxu1 %v4589_v13  ;;  %5535 = vst [vmem:[#allocation37_spill] sm:$0xff] %v4598_v16  ;;  %5536 = vst [vmem:[#allocation50_spill] sm:$0xff] %v4601_v17  ;;  %v4604_v38 = vld [vmem:[#allocation8 + $0x40] sm:$0xff]  ;;  %v4607_v13 = vld [vmem:[#allocation8 + $0x50] sm:$0xff] }
 0x3ba   :  { %1678 = vmatpush1.msra.mxu0 %v4592_v14  ;;  %1749 = vmatpush1.msra.mxu1 %v4595_v15  ;;  %5537 = vst [vmem:[#allocation39_spill] sm:$0xff] %v4604_v38  ;;  %5538 = vst [vmem:[#allocation52_spill] sm:$0xff] %v4607_v13  ;;  %v4610_v14 = vld [vmem:[#allocation8 + $0x28] sm:$0xff]  ;;  %v4613_v15 = vld [vmem:[#allocation8 + $0x38] sm:$0xff] }
 0x3bb   :  { %1679 = vmatprep.subr.mxu0 %v4598_v16  ;;  %1750 = vmatprep.subr.mxu1 %v4601_v17  ;;  %5539 = vst [vmem:[#allocation42_spill] sm:$0xff] %v4610_v14  ;;  %5540 = vst [vmem:[#allocation53_spill] sm:$0xff] %v4613_v15  ;;  %v4616_v16 = vld [vmem:[#allocation8 + $0x20] sm:$0xff]  ;;  %v4619_v17 = vld [vmem:[#allocation8 + $0x30] sm:$0xff] }
 0x3bc   :  { %1680 = vmatpush1.msra.mxu0 %v4604_v38  ;;  %1751 = vmatpush1.msra.mxu1 %v4607_v13  ;;  %5541 = vst [vmem:[#allocation44_spill] sm:$0xff] %v4616_v16  ;;  %5542 = vst [vmem:[#allocation54_spill] sm:$0xff] %v4619_v17  ;;  %v4622_v38 = vld [vmem:[#allocation8 + $0x8] sm:$0xff]  ;;  %v4625_v13 = vld [vmem:[#allocation8 + $0x18] sm:$0xff] }
 0x3bd   :  { %1681 = vmatprep.subr.mxu0 %v4610_v14  ;;  %1752 = vmatprep.subr.mxu1 %v4613_v15  ;;  %5543 = vst [vmem:[#allocation46_spill] sm:$0xff] %v4622_v38  ;;  %5544 = vst [vmem:[#allocation55_spill] sm:$0xff] %v4625_v13  ;;  %v4628_v14 = vld [vmem:[#allocation8] sm:$0xff]  ;;  %v4632_v15 = vld [vmem:[#allocation8 + $0x10] sm:$0xff] }
 0x3be   :  { %1682 = vmatpush1.msra.mxu0 %v4616_v16  ;;  %1753 = vmatpush1.msra.mxu1 %v4619_v17  ;;  %5545 = vst [vmem:[#allocation34_spill] sm:$0xff] %v4628_v14  ;;  %5546 = vst [vmem:[#allocation59_spill] sm:$0xff] %v4632_v15 }
 0x3bf   :  { %1683 = vmatprep.subr.mxu0 %v4622_v38  ;;  %1754 = vmatprep.subr.mxu1 %v4625_v13 }
 0x3c0   :  { %1684 = vmatpush1.msra.mxu0 %v4628_v14  ;;  %1717 = vmatprep.mubr.f32.mxu0 %v5415_v57 }
 0x3c1   :  { %1755 = vmatpush1.msra.mxu1 %v4632_v15  ;;  %1788 = vmatprep.mubr.f32.mxu1 %v5415_v57  ;;  %v4645_v15 = vsel %vm903_vm8, %v4372_v48, %v4377_v2 }
 0x3c2   :  { %3223 = vmatprep.subr.msk.mxu0 %vm335_vm2, %v5502_v36  ;;  %3226 = vmatprep.subr.msk.mxu1 %vm335_vm2, %v5503_v39  ;;  %5547 = vst [vmem:[#allocation49_spill] sm:$0xff] %v4645_v15  ;;  %v1260_v36 = vadd.f32 %v4645_v15, %v4383_v37  ;;  %v1263_v39 = vsub.f32 1.0, %v4393_v10 }
 0x3c4   :  { %v1261_v12 = vmax.f32 %v1260_v36, 0.0 }
 0x3c6   :  { %v1262_v8 = vmin.f32 %v1261_v12, 1.0 }
 0x425   :  { %v1249_v38 = vpop.xlane.xlu1 %1248 }
 0x426   :  { %v1250_v13 = vadd.f32 %v5504_v43, %v1249_v38 }
 0x428   :  { %v3208_v17 = vmul.f32 -1.442695, %v1250_v13  ;;  %v1264_v13 = vmul.f32 %v1263_v39, %v1262_v8 }
 0x42a   :  { %3405 = vpow2.f32 %v3208_v17 }
 0x437   :  { %v3406_v14 = vpop.eup %3405 }
 0x438   :  { %v1254_v16 = vadd.f32 1.0, %v3406_v14 }
 0x43a   :  { %3407 = vrcp.f32 %v1254_v16 }
 0x447   :  { %v4650_v6 = vpop.eup %3407 }
 0x448   :  { %5548 = vst [vmem:[#allocation51_spill] sm:$0xff] %v4650_v6  ;;  %v1257_v14 = vmul.f32 %v4650_v6, %v4393_v10 }
 0x44a   :  { %v4656_v16 = vsel %vm1265_vm13, %v1264_v13, %v1257_v14 }
 0x44b   :  { %5549 = vst [vmem:[#allocation61_spill] sm:$0xff] %v4656_v16  ;;  %v3296_v48 = vcvt.f32.s32 %v4656_v16  ;;  %v3294_v60 = vand.u32 2147483647, %v4656_v16  ;;  %vm1275_vm5 = vcmp.lt.f32.partialorder %v4656_v16, 0.5  ;;  %v3299_v37 = vand.u32 2147483648, %v4656_v16 }
 0x44c   :  { %v4663_v39 = vsel %vm1275_vm5, 1.0, %v5415_v57 }
 0x44d   :  { %v3297_v2 = vcvt.s32.f32 %v3296_v48  ;;  %5550 = vst [vmem:[#allocation60_spill] sm:$0xff] %v4663_v39  ;;  %vm3295_vm7 = vcmp.lt.f32.partialorder %v3294_v60, 8388608.0  ;;  %vm1627_vm8 = vcmp.gt.f32.partialorder %v4663_v39, 0.5 }
 0x44e   :  { %v1628_v8 = vsel %vm1627_vm8, 1, %v5512_v11 }
 0x44f   :  { %v3298_v36 = vand.u32 2147483647, %v3297_v2 }
 0x451   :  { %v3300_v12 = vor.u32 %v3299_v37, %v3298_v36 }
 0x453   :  { %v4666_v10 = vsel %vm3295_vm7, %v3300_v12, %v4656_v16  ;;  %vm2366_vm7 = vcmp.eq.s32.totalorder %v4406_v33, 5 }
 0x454   :  { %5551 = vst [vmem:[#allocation58_spill] sm:$0xff] %v4666_v10  ;;  %1287 = vperm.xlu0 %3345, %v4666_v10  }
 0x458   :  { %1630 = vperm.xlu0 %3345, %v1628_v8  }
 0x45d   :  { %v1357_v17 = vpop.f32.mrf.mxu0  ;;  %v1428_v10 = vpop.f32.mrf.mxu1 }
 0x45f   :  { %v1359_v38 = vpop.f32.mrf.mxu0  ;;  %v1430_v16 = vpop.f32.mrf.mxu1 }
 0x461   :  { %v1502_v13 = vpop.f32.mrf.mxu0  ;;  %v1573_v9 = vpop.f32.mrf.mxu1 }
 0x462   :  { %v1503_v2 = vadd.f32 %v1502_v13, %v1357_v17  ;;  %v1574_v6 = vadd.f32 %v1573_v9, %v1428_v10 }
 0x463   :  { %v1504_v14 = vpop.f32.mrf.mxu0  ;;  %v1575_v39 = vpop.f32.mrf.mxu1 }
 0x464   :  { %v1505_v48 = vadd.f32 %v1504_v14, %v1359_v38  ;;  %v1578_v36 = vadd.f32 %v1503_v2, %v5471_v58  ;;  %v1576_v8 = vadd.f32 %v1575_v39, %v1430_v16  ;;  %v1580_v38 = vadd.f32 %v1574_v6, %v4130_v50 }
 0x466   :  { %v1579_v60 = vadd.f32 %v1505_v48, %v4123_v47  ;;  %v3217_v12 = vmul.f32 -1.442695, %v1578_v36  ;;  %v1581_v17 = vadd.f32 %v1576_v8, %v4127_v40 }
 0x468   :  { %v3218_v37 = vmul.f32 -1.442695, %v1579_v60  ;;  %v3219_v13 = vmul.f32 -1.442695, %v1581_v17 }
 0x46a   :  { %3409 = vpow2.f32 %v3218_v37 }
 0x46b   :  { %3411 = vpow2.f32 %v3217_v12 }
 0x477   :  { %v3410_v11 = vpop.eup %3409 }
 0x478   :  { %v3412_v15 = vpop.eup %3411  ;;  %v1591_v43 = vadd.f32 1.0, %v3410_v11 }
 0x479   :  { %v1585_v5 = vadd.f32 1.0, %v3412_v15 }
 0x47a   :  { %3413 = vrcp.f32 %v1591_v43 }
 0x47b   :  { %3415 = vrcp.f32 %v1585_v5 }
 0x47c   :  { %3417 = vtanh.f32 %v1580_v38 }
 0x47d   :  { %3419 = vpow2.f32 %v3219_v13 }
 0x487   :  { %v3414_v14 = vpop.eup %3413 }
 0x488   :  { %v3416_v48 = vpop.eup %3415  ;;  %v1601_v2 = vmul.f32 %v3414_v14, %v4421_v55 }
 0x489   :  { %v3418_v60 = vpop.eup %3417 }
 0x48a   :  { %v1602_v36 = vmul.f32 %v3418_v60, %v3416_v48  ;;  %v3420_v16 = vpop.eup %3419  ;;  %v5554_v60 = vld [vmem:[#allocation30_spill] sm:$0xff] }
 0x48b   :  { %v1598_v9 = vadd.f32 1.0, %v3420_v16  ;;  %v5556_v16 = vld [vmem:[#allocation32_spill] sm:$0xff] }
 0x48c   :  { %v1603_v39 = vadd.f32 %v1602_v36, %v1601_v2  ;;  %v5555_v36 = vld [vmem:[#allocation23_spill] sm:$0xff] }
 0x48e   :  { %3421 = vtanh.f32 %v1603_v39 }
 0x48f   :  { %3423 = vrcp.f32 %v1598_v9  ;;  %v5558_v9 = vld [vmem:[#allocation33_spill] sm:$0xff] }
 0x49b   :  { %v3422_v11 = vpop.eup %3421 }
 0x49c   :  { %v3424_v43 = vpop.eup %3423 }
 0x49d   :  { %v1605_v37 = vmul.f32 %v3424_v43, %v3422_v11  ;;  %v5559_v11 = vld [vmem:[#allocation25_spill] sm:$0xff]  ;;  %v5561_v43 = vld [vmem:[#allocation26_spill] sm:$0xff] }
 0x4cf   :  { %v1288_v6 = vpop.permute.xlu0 %1287 }
 0x4d0   :  { %v1290_v5 = vsub.f32 1.0, %v1288_v6  ;;  %v1607_v15 = vmul.f32 %v1603_v39, %v1288_v6  ;;  %v4680_v10 = vsel %vm1642_vm9, %v1288_v6, %v4413_v7  ;;  %v1606_v38 = vmul.f32 %v1605_v37, %v1288_v6  ;;  %v4702_v7 = vld [vmem:[%s5198_s5 + $0x8] sm:$0xff]  ;;  %v5557_v39 = vld [vmem:[#allocation24_spill] sm:$0xff] }
 0x4d1   :  { %v5560_v6 = vld [vmem:[#allocation36_spill] sm:$0xff]  ;;  %v5564_v37 = vld [vmem:[#allocation41_spill] sm:$0xff] }
 0x4d2   :  { %v1621_v12 = vmul.f32 %v1290_v5, %v4421_v55  ;;  %v1620_v8 = vmul.f32 %v1290_v5, %v4419_v18  ;;  %v1608_v17 = vmul.f32 %v4139_v54, %v1607_v15  ;;  %v3222_v54 = vld [vmem:[%s5193_s0 + $0x8] sm:$0x3]  ;;  %v5552_v18 = vld [vmem:[#allocation27_spill] sm:$0xff] }
 0x4d3   :  { %v1631_v13 = vpop.permute.xlu0 %1630  ;;  %v5553_v55 = vld [vmem:[#allocation22_spill] sm:$0xff] }
 0x4d4   :  { %vm1632_vm10 = vcmp.eq.s32.totalorder %v1631_v13, 1  ;;  %v1609_v14 = vsel %vm517_vm6, %v1608_v17, 0.0  ;;  %v5562_v5 = vld [vmem:[#allocation38_spill] sm:$0xff]  ;;  %v5567_v17 = vld [vmem:[#allocation31_spill] sm:$0xff] }
 0x4d5   :  { %v4686_v48 = vsel %vm1632_vm10, %v1620_v8, %v1606_v38  ;;  %v4688_v2 = vsel %vm1632_vm10, %v1621_v12, %v1607_v15  ;;  %1610 = vadd.xlane.f32.xlu1 %v1609_v14  ;;  %v5563_v15 = vld [vmem:[#allocation28_spill] sm:$0xff]  ;;  %v5565_v12 = vld [vmem:[#allocation29_spill] sm:$0xff]  ;;  %v5566_v8 = vld [vmem:[#allocation43_spill] sm:$0xff] }
 0x4d6   :  { %1641 = vst [vmem:[#allocation11 + $0x6] sm:$0x3] %v4686_v48  ;;  %1718 = vmatmul.mubr.f32.vlgmr.msra.gmra.mxu0 %v4686_v48  ;;  %1789 = vmatmul.mubr.f32.vlgmr.msra.gmra.mxu1 %v4686_v48  ;;  %v5568_v38 = vld [vmem:[#allocation45_spill] sm:$0xff]  ;;  %v5569_v13 = vld [vmem:[#allocation35_spill] sm:$0xff]  ;;  %v5570_v14 = vld [vmem:[#allocation48_spill] sm:$0xff] }
 0x4d7   :  { %3224 = vmatpush1.msk.msra.mxu0 %vm335_vm2, %v4429_v49  ;;  %1862 = vmatprep.mubr.f32.mxu0 %v5415_v57 }
 0x4d8   :  { %3227 = vmatpush1.msk.msra.mxu1 %vm335_vm2, %v4702_v7  ;;  %1933 = vmatprep.mubr.f32.mxu1 %v5415_v57 }
 0x4d9   :  { %2015 = vmatprep.subr.mxu0 %v4440_v19  ;;  %2086 = vmatprep.subr.mxu1 %v4443_v20 }
 0x4da   :  { %3225 = vmatmul.mubr.msk.f32.vlgmr.msra.gmra.mxu0 %vm331_vm4, %v3222_v54  ;;  %3228 = vmatmul.mubr.msk.f32.vlgmr.msra.gmra.mxu1 %vm331_vm4, %v3222_v54  ;;  %v5571_v54 = vld [vmem:[#allocation37_spill] sm:$0xff] }
 0x4db   :  { %2016 = vmatpush1.msra.mxu0 %v4448_v21  ;;  %2087 = vmatpush1.msra.mxu1 %v4451_v22 }
 0x4dc   :  { %2017 = vmatprep.subr.mxu0 %v4454_v3  ;;  %2088 = vmatprep.subr.mxu1 %v4457_v23 }
 0x4dd   :  { %2018 = vmatpush1.msra.mxu0 %v4460_v24  ;;  %2089 = vmatpush1.msra.mxu1 %v4463_v25 }
 0x4de   :  { %2019 = vmatprep.subr.mxu0 %v4466_v26  ;;  %2090 = vmatprep.subr.mxu1 %v4469_v27 }
 0x4df   :  { %2020 = vmatpush1.msra.mxu0 %v4472_v28  ;;  %2091 = vmatpush1.msra.mxu1 %v4475_v29 }
 0x4e0   :  { %2021 = vmatprep.subr.mxu0 %v4478_v30  ;;  %2092 = vmatprep.subr.mxu1 %v4481_v31 }
 0x4e1   :  { %2022 = vmatpush1.msra.mxu0 %v4484_v32  ;;  %2093 = vmatpush1.msra.mxu1 %v4487_v34 }
 0x4e2   :  { %2023 = vmatprep.subr.mxu0 %v4490_v41  ;;  %2094 = vmatprep.subr.mxu1 %v4493_v52 }
 0x4e3   :  { %2024 = vmatpush1.msra.mxu0 %v4496_v51  ;;  %2095 = vmatpush1.msra.mxu1 %v4499_v42 }
 0x4e4   :  { %2025 = vmatprep.subr.mxu0 %v4502_v53  ;;  %2096 = vmatprep.subr.mxu1 %v4505_v56 }
 0x4e5   :  { %2026 = vmatpush1.msra.mxu0 %v4508_v62  ;;  %2097 = vmatpush1.msra.mxu1 %v4511_v63 }
 0x4e6   :  { %2027 = vmatprep.subr.mxu0 %v4514_v46  ;;  %2098 = vmatprep.subr.mxu1 %v4517_v44 }
 0x4e7   :  { %2028 = vmatpush1.msra.mxu0 %v4520_v35  ;;  %2099 = vmatpush1.msra.mxu1 %v4523_v45 }
 0x4e8   :  { %2029 = vmatprep.subr.mxu0 %v4526_v59  ;;  %2100 = vmatprep.subr.mxu1 %v4529_v1 }
 0x4e9   :  { %2030 = vmatpush1.msra.mxu0 %v4532_v61  ;;  %2101 = vmatpush1.msra.mxu1 %v4535_v0 }
 0x4ea   :  { %2031 = vmatprep.subr.mxu0 %v4538_v4  ;;  %2102 = vmatprep.subr.mxu1 %v5552_v18 }
 0x4eb   :  { %2032 = vmatpush1.msra.mxu0 %v5553_v55  ;;  %2103 = vmatpush1.msra.mxu1 %v5554_v60 }
 0x4ec   :  { %2033 = vmatprep.subr.mxu0 %v5555_v36  ;;  %2104 = vmatprep.subr.mxu1 %v5556_v16 }
 0x4ed   :  { %2034 = vmatpush1.msra.mxu0 %v5557_v39  ;;  %2105 = vmatpush1.msra.mxu1 %v5558_v9  ;;  %v5591_v39 = vld [vmem:[#allocation58_spill] sm:$0xff] }
 0x4ee   :  { %2035 = vmatprep.subr.mxu0 %v5559_v11  ;;  %2106 = vmatprep.subr.mxu1 %v5560_v6  ;;  %v5590_v11 = vld [vmem:[#allocation61_spill] sm:$0xff] }
 0x4ef   :  { %2036 = vmatpush1.msra.mxu0 %v5561_v43  ;;  %2107 = vmatpush1.msra.mxu1 %v5562_v5  ;;  %v5572_v43 = vld [vmem:[#allocation50_spill] sm:$0xff]  ;;  %v5573_v5 = vld [vmem:[#allocation39_spill] sm:$0xff] }
 0x4f0   :  { %2037 = vmatprep.subr.mxu0 %v5563_v15  ;;  %2108 = vmatprep.subr.mxu1 %v5564_v37  ;;  %v5574_v15 = vld [vmem:[#allocation52_spill] sm:$0xff]  ;;  %v5575_v37 = vld [vmem:[#allocation42_spill] sm:$0xff] }
 0x4f1   :  { %2038 = vmatpush1.msra.mxu0 %v5565_v12  ;;  %2109 = vmatpush1.msra.mxu1 %v5566_v8  ;;  %v5576_v12 = vld [vmem:[#allocation53_spill] sm:$0xff]  ;;  %v5577_v8 = vld [vmem:[#allocation44_spill] sm:$0xff] }
 0x4f2   :  { %2039 = vmatprep.subr.mxu0 %v5567_v17  ;;  %2110 = vmatprep.subr.mxu1 %v5568_v38  ;;  %v5578_v17 = vld [vmem:[#allocation54_spill] sm:$0xff] }
 0x4f3   :  { %2040 = vmatpush1.msra.mxu0 %v5569_v13  ;;  %2111 = vmatpush1.msra.mxu1 %v5570_v14  ;;  %v5579_v38 = vld [vmem:[#allocation46_spill] sm:$0xff]  ;;  %v5580_v13 = vld [vmem:[#allocation55_spill] sm:$0xff] }
 0x4f4   :  { %2041 = vmatprep.subr.mxu0 %v5571_v54  ;;  %2112 = vmatprep.subr.mxu1 %v5572_v43  ;;  %v5581_v14 = vld [vmem:[#allocation34_spill] sm:$0xff]  ;;  %v5582_v43 = vld [vmem:[#allocation59_spill] sm:$0xff]  ;;  %v5587_v54 = vld [vmem:[#allocation49_spill] sm:$0xff] }
 0x4f5   :  { %2042 = vmatpush1.msra.mxu0 %v5573_v5  ;;  %2113 = vmatpush1.msra.mxu1 %v5574_v15  ;;  %v5583_v15 = vld [vmem:[#allocation47_spill] sm:$0xff] }
 0x4f6   :  { %2043 = vmatprep.subr.mxu0 %v5575_v37  ;;  %2114 = vmatprep.subr.mxu1 %v5576_v12  ;;  %v5584_v12 = vld [vmem:[#allocation56_spill] sm:$0xff] }
 0x4f7   :  { %2044 = vmatpush1.msra.mxu0 %v5577_v8  ;;  %2115 = vmatpush1.msra.mxu1 %v5578_v17  ;;  %v5585_v17 = vld [vmem:[#allocation40_spill] sm:$0xff] }
 0x4f8   :  { %2045 = vmatprep.subr.mxu0 %v5579_v38  ;;  %2116 = vmatprep.subr.mxu1 %v5580_v13 }
 0x4f9   :  { %2046 = vmatpush1.msra.mxu0 %v5581_v14  ;;  %2079 = vmatprep.mubr.f32.mxu0 %v5415_v57  ;;  %v5586_v14 = vld [vmem:[#allocation51_spill] sm:$0xff] }
 0x4fa   :  { %2117 = vmatpush1.msra.mxu1 %v5582_v43  ;;  %2150 = vmatprep.mubr.f32.mxu1 %v5415_v57  ;;  %v4784_v43 = vsel %vm1265_vm13, %v5587_v54, %v5586_v14 }
 0x4fb   :  { %3235 = vmatprep.subr.msk.mxu0 %vm335_vm2, %v5583_v15  ;;  %3238 = vmatprep.subr.msk.mxu1 %vm335_vm2, %v5584_v12  ;;  %5589 = vst [vmem:[#allocation40_spill] sm:$0xff] %v4784_v43  ;;  %v1622_v15 = vadd.f32 %v4784_v43, %v5590_v11  ;;  %v1625_v12 = vsub.f32 1.0, %v5591_v39 }
 0x4fd   :  { %v1623_v9 = vmax.f32 %v1622_v15, 0.0  ;;  %v5596_v15 = vmov 0  }
 0x4ff   :  { %v1624_v16 = vmin.f32 %v1623_v9, 1.0 }
 0x55e   :  { %v1611_v8 = vpop.xlane.xlu1 %1610 }
 0x55f   :  { %v1612_v37 = vadd.f32 %v5585_v17, %v1611_v8 }
 0x561   :  { %v3220_v38 = vmul.f32 -1.442695, %v1612_v37  ;;  %v1626_v37 = vmul.f32 %v1625_v12, %v1624_v16 }
 0x563   :  { %3425 = vpow2.f32 %v3220_v38 }
 0x570   :  { %v3426_v13 = vpop.eup %3425 }
 0x571   :  { %v1616_v5 = vadd.f32 1.0, %v3426_v13 }
 0x573   :  { %3427 = vrcp.f32 %v1616_v5 }
 0x580   :  { %v4789_v36 = vpop.eup %3427 }
 0x581   :  { %5592 = vst [vmem:[#allocation51_spill] sm:$0xff] %v4789_v36  ;;  %v1619_v8 = vmul.f32 %v4789_v36, %v5591_v39 }
 0x583   :  { %v4795_v17 = vsel %vm1627_vm8, %v1626_v37, %v1619_v8 }
 0x584   :  { %5594 = vst [vmem:[#allocation49_spill] sm:$0xff] %v4795_v17  ;;  %vm1637_vm11 = vcmp.lt.f32.partialorder %v4795_v17, 0.5  ;;  %v3304_v6 = vcvt.f32.s32 %v4795_v17  ;;  %v3302_v39 = vand.u32 2147483647, %v4795_v17  ;;  %v3307_v38 = vand.u32 2147483648, %v4795_v17 }
 0x585   :  { %v4800_v11 = vsel %vm1637_vm11, 1.0, %v5415_v57 }
 0x586   :  { %5595 = vst [vmem:[#allocation57_spill] sm:$0xff] %v4800_v11  ;;  %vm1989_vm12 = vcmp.gt.f32.partialorder %v4800_v11, 0.5  ;;  %v3305_v9 = vcvt.s32.f32 %v3304_v6  ;;  %vm3303_vm13 = vcmp.lt.f32.partialorder %v3302_v39, 8388608.0 }
 0x587   :  { %v1990_v16 = vsel %vm1989_vm12, 1, %v5596_v15 }
 0x588   :  { %1992 = vperm.xlu1 %3346, %v1990_v16   ;;  %v3306_v12 = vand.u32 2147483647, %v3305_v9 }
 0x58a   :  { %v3308_v13 = vor.u32 %v3307_v38, %v3306_v12 }
 0x58c   :  { %v4809_v14 = vsel %vm3303_vm13, %v3308_v13, %v4795_v17 }
 0x58d   :  { %5597 = vst [vmem:[#allocation61_spill] sm:$0xff] %v4809_v14  ;;  %1649 = vperm.xlu0 %3345, %v4809_v14  }
 0x596   :  { %v1719_v54 = vpop.f32.mrf.mxu0  ;;  %v1790_v36 = vpop.f32.mrf.mxu1 }
 0x598   :  { %v1721_v37 = vpop.f32.mrf.mxu0  ;;  %v1792_v39 = vpop.f32.mrf.mxu1 }
 0x59a   :  { %v1864_v8 = vpop.f32.mrf.mxu0  ;;  %v1935_v12 = vpop.f32.mrf.mxu1 }
 0x59b   :  { %v1865_v11 = vadd.f32 %v1864_v8, %v1719_v54  ;;  %v1936_v60 = vadd.f32 %v1935_v12, %v1790_v36 }
 0x59c   :  { %v1866_v6 = vpop.f32.mrf.mxu0  ;;  %v1937_v38 = vpop.f32.mrf.mxu1 }
 0x59d   :  { %v1867_v5 = vadd.f32 %v1866_v6, %v1721_v37  ;;  %v1940_v16 = vadd.f32 %v1865_v11, %v5471_v58  ;;  %v1938_v14 = vadd.f32 %v1937_v38, %v1792_v39 }
 0x59f   :  { %v1941_v15 = vadd.f32 %v1867_v5, %v4123_v47  ;;  %v3229_v43 = vmul.f32 -1.442695, %v1940_v16  ;;  %v1943_v54 = vadd.f32 %v1938_v14, %v4127_v40  ;;  %v1942_v5 = vadd.f32 %v1936_v60, %v4130_v50 }
 0x5a1   :  { %v3230_v9 = vmul.f32 -1.442695, %v1941_v15  ;;  %v3231_v11 = vmul.f32 -1.442695, %v1943_v54 }
 0x5a3   :  { %3429 = vpow2.f32 %v3230_v9 }
 0x5a4   :  { %3431 = vpow2.f32 %v3229_v43 }
 0x5b0   :  { %v3430_v13 = vpop.eup %3429 }
 0x5b1   :  { %v3432_v17 = vpop.eup %3431  ;;  %v1953_v55 = vadd.f32 1.0, %v3430_v13 }
 0x5b2   :  { %v1947_v18 = vadd.f32 1.0, %v3432_v17 }
 0x5b3   :  { %3433 = vrcp.f32 %v1953_v55 }
 0x5b4   :  { %3435 = vrcp.f32 %v1947_v18 }
 0x5b5   :  { %3437 = vtanh.f32 %v1942_v5 }
 0x5b6   :  { %3439 = vpow2.f32 %v3231_v11  ;;  %v4826_v11 = vld [vmem:[%s5201_s8] ss:$0 sm:$0xff] }
 0x5c0   :  { %v3434_v15 = vpop.eup %3433 }
 0x5c1   :  { %v3436_v43 = vpop.eup %3435  ;;  %v1963_v37 = vmul.f32 %v3434_v15, %v4688_v2 }
 0x5c2   :  { %v3438_v8 = vpop.eup %3437 }
 0x5c3   :  { %v1964_v6 = vmul.f32 %v3438_v8, %v3436_v43  ;;  %v3440_v16 = vpop.eup %3439  ;;  %v5599_v8 = vld [vmem:[#allocation22_spill] sm:$0xff] }
 0x5c4   :  { %v1960_v36 = vadd.f32 1.0, %v3440_v16  ;;  %v5601_v16 = vld [vmem:[#allocation23_spill] sm:$0xff] }
 0x5c5   :  { %v1965_v9 = vadd.f32 %v1964_v6, %v1963_v37  ;;  %v5600_v6 = vld [vmem:[#allocation30_spill] sm:$0xff] }
 0x5c7   :  { %3441 = vtanh.f32 %v1965_v9 }
 0x5c8   :  { %3443 = vrcp.f32 %v1960_v36  ;;  %v5603_v36 = vld [vmem:[#allocation24_spill] sm:$0xff] }
 0x5d4   :  { %v3442_v17 = vpop.eup %3441 }
 0x5d5   :  { %v3444_v60 = vpop.eup %3443 }
 0x5d6   :  { %v1967_v39 = vmul.f32 %v3444_v60, %v3442_v17  ;;  %v5604_v17 = vld [vmem:[#allocation33_spill] sm:$0xff] }
 0x5d7   :  { %v5605_v60 = vld [vmem:[#allocation25_spill] sm:$0xff] }
 0x603   :  { %v1993_v18 = vpop.permute.xlu1 %1992 }
 0x604   :  { %vm1994_vm15 = vcmp.eq.s32.totalorder %v1993_v18, 1  ;;  %v5607_v18 = vld [vmem:[#allocation26_spill] sm:$0xff] }
 0x608   :  { %v1650_v55 = vpop.permute.xlu0 %1649 }
 0x609   :  { %v1652_v14 = vsub.f32 1.0, %v1650_v55  ;;  %v4819_v12 = vsel %vm2004_vm14, %v1650_v55, %v4680_v10  ;;  %v1969_v38 = vmul.f32 %v1965_v9, %v1650_v55  ;;  %v1968_v13 = vmul.f32 %v1967_v39, %v1650_v55  ;;  %v5602_v9 = vld [vmem:[#allocation32_spill] sm:$0xff] }
 0x60a   :  { %v5606_v55 = vld [vmem:[#allocation36_spill] sm:$0xff] }
 0x60b   :  { %v1982_v54 = vmul.f32 %v1652_v14, %v4686_v48  ;;  %v1983_v5 = vmul.f32 %v1652_v14, %v4688_v2  ;;  %v1970_v15 = vmul.f32 %v4826_v11, %v1969_v38  ;;  %v3234_v48 = vld [vmem:[%s5193_s0 + $0xa] sm:$0x3]  ;;  %v5598_v2 = vld [vmem:[#allocation27_spill] sm:$0xff]  ;;  %v5609_v39 = vld [vmem:[#allocation28_spill] sm:$0xff] }
 0x60c   :  { %v5608_v14 = vld [vmem:[#allocation38_spill] sm:$0xff] }
 0x60d   :  { %v1971_v43 = vsel %vm517_vm6, %v1970_v15, 0.0  ;;  %v4830_v37 = vsel %vm1994_vm15, %v1983_v5, %v1969_v38  ;;  %v4832_v10 = vsel %vm1994_vm15, %v1982_v54, %v1968_v13  ;;  %v5610_v38 = vld [vmem:[#allocation41_spill] sm:$0xff]  ;;  %v5612_v54 = vld [vmem:[#allocation43_spill] sm:$0xff]  ;;  %vm3090_vm15 = vcmp.eq.s32.totalorder %v4406_v33, 7 }
 0x60e   :  { %1972 = vadd.xlane.f32.xlu0 %v1971_v43  ;;  %2003 = vst [vmem:[#allocation11 + $0x8] sm:$0x3] %v4832_v10  ;;  %2080 = vmatmul.mubr.f32.vlgmr.msra.gmra.mxu0 %v4832_v10  ;;  %v5611_v13 = vld [vmem:[#allocation29_spill] sm:$0xff]  ;;  %v5613_v5 = vld [vmem:[#allocation31_spill] sm:$0xff] }
 0x60f   :  { %2151 = vmatmul.mubr.f32.vlgmr.msra.gmra.mxu1 %v4832_v10  ;;  %3236 = vmatpush1.msk.msra.mxu0 %vm335_vm2, %v4429_v49  ;;  %v5614_v15 = vld [vmem:[#allocation45_spill] sm:$0xff]  ;;  %v5615_v43 = vld [vmem:[#allocation35_spill] sm:$0xff] }
 0x610   :  { %2224 = vmatprep.mubr.f32.mxu0 %v5415_v57  ;;  %3239 = vmatpush1.msk.msra.mxu1 %vm335_vm2, %v4702_v7 }
 0x611   :  { %2295 = vmatprep.mubr.f32.mxu1 %v5415_v57  ;;  %2377 = vmatprep.subr.mxu0 %v4440_v19 }
 0x612   :  { %3237 = vmatmul.mubr.msk.f32.vlgmr.msra.gmra.mxu0 %vm331_vm4, %v3234_v48  ;;  %2448 = vmatprep.subr.mxu1 %v4443_v20 }
 0x613   :  { %3240 = vmatmul.mubr.msk.f32.vlgmr.msra.gmra.mxu1 %vm331_vm4, %v3234_v48  ;;  %2378 = vmatpush1.msra.mxu0 %v4448_v21  ;;  %v5616_v48 = vld [vmem:[#allocation48_spill] sm:$0xff] }
 0x614   :  { %2449 = vmatpush1.msra.mxu1 %v4451_v22  ;;  %2379 = vmatprep.subr.mxu0 %v4454_v3 }
 0x615   :  { %2450 = vmatprep.subr.mxu1 %v4457_v23  ;;  %2380 = vmatpush1.msra.mxu0 %v4460_v24 }
 0x616   :  { %2451 = vmatpush1.msra.mxu1 %v4463_v25  ;;  %2381 = vmatprep.subr.mxu0 %v4466_v26 }
 0x617   :  { %2452 = vmatprep.subr.mxu1 %v4469_v27  ;;  %2382 = vmatpush1.msra.mxu0 %v4472_v28 }
 0x618   :  { %2453 = vmatpush1.msra.mxu1 %v4475_v29  ;;  %2383 = vmatprep.subr.mxu0 %v4478_v30 }
 0x619   :  { %2454 = vmatprep.subr.mxu1 %v4481_v31  ;;  %2384 = vmatpush1.msra.mxu0 %v4484_v32 }
 0x61a   :  { %2455 = vmatpush1.msra.mxu1 %v4487_v34  ;;  %2385 = vmatprep.subr.mxu0 %v4490_v41 }
 0x61b   :  { %2456 = vmatprep.subr.mxu1 %v4493_v52  ;;  %2386 = vmatpush1.msra.mxu0 %v4496_v51 }
 0x61c   :  { %2457 = vmatpush1.msra.mxu1 %v4499_v42  ;;  %2387 = vmatprep.subr.mxu0 %v4502_v53 }
 0x61d   :  { %2458 = vmatprep.subr.mxu1 %v4505_v56  ;;  %2388 = vmatpush1.msra.mxu0 %v4508_v62 }
 0x61e   :  { %2459 = vmatpush1.msra.mxu1 %v4511_v63  ;;  %2389 = vmatprep.subr.mxu0 %v4514_v46 }
 0x61f   :  { %2460 = vmatprep.subr.mxu1 %v4517_v44  ;;  %2390 = vmatpush1.msra.mxu0 %v4520_v35 }
 0x620   :  { %2461 = vmatpush1.msra.mxu1 %v4523_v45  ;;  %2391 = vmatprep.subr.mxu0 %v4526_v59 }
 0x621   :  { %2462 = vmatprep.subr.mxu1 %v4529_v1  ;;  %2392 = vmatpush1.msra.mxu0 %v4532_v61 }
 0x622   :  { %2463 = vmatpush1.msra.mxu1 %v4535_v0  ;;  %2393 = vmatprep.subr.mxu0 %v4538_v4 }
 0x623   :  { %2464 = vmatprep.subr.mxu1 %v5598_v2  ;;  %2394 = vmatpush1.msra.mxu0 %v5599_v8 }
 0x624   :  { %2465 = vmatpush1.msra.mxu1 %v5600_v6  ;;  %2395 = vmatprep.subr.mxu0 %v5601_v16 }
 0x625   :  { %2466 = vmatprep.subr.mxu1 %v5602_v9  ;;  %2396 = vmatpush1.msra.mxu0 %v5603_v36  ;;  %v5637_v36 = vld [vmem:[#allocation61_spill] sm:$0xff] }
 0x626   :  { %2467 = vmatpush1.msra.mxu1 %v5604_v17  ;;  %2397 = vmatprep.subr.mxu0 %v5605_v60  ;;  %v1987_v9 = vsub.f32 1.0, %v5637_v36 }
 0x627   :  { %2468 = vmatprep.subr.mxu1 %v5606_v55  ;;  %2398 = vmatpush1.msra.mxu0 %v5607_v18  ;;  %v5617_v55 = vld [vmem:[#allocation37_spill] sm:$0xff]  ;;  %v5618_v18 = vld [vmem:[#allocation50_spill] sm:$0xff] }
 0x628   :  { %2469 = vmatpush1.msra.mxu1 %v5608_v14  ;;  %2399 = vmatprep.subr.mxu0 %v5609_v39  ;;  %v5619_v14 = vld [vmem:[#allocation39_spill] sm:$0xff]  ;;  %v5620_v39 = vld [vmem:[#allocation52_spill] sm:$0xff] }
 0x629   :  { %2470 = vmatprep.subr.mxu1 %v5610_v38  ;;  %2400 = vmatpush1.msra.mxu0 %v5611_v13  ;;  %v5621_v38 = vld [vmem:[#allocation42_spill] sm:$0xff]  ;;  %v5622_v13 = vld [vmem:[#allocation53_spill] sm:$0xff] }
 0x62a   :  { %2471 = vmatpush1.msra.mxu1 %v5612_v54  ;;  %2401 = vmatprep.subr.mxu0 %v5613_v5  ;;  %v5623_v54 = vld [vmem:[#allocation44_spill] sm:$0xff]  ;;  %v5624_v5 = vld [vmem:[#allocation54_spill] sm:$0xff] }
 0x62b   :  { %2472 = vmatprep.subr.mxu1 %v5614_v15  ;;  %2402 = vmatpush1.msra.mxu0 %v5615_v43  ;;  %v5625_v15 = vld [vmem:[#allocation46_spill] sm:$0xff]  ;;  %v5626_v43 = vld [vmem:[#allocation55_spill] sm:$0xff] }
 0x62c   :  { %2473 = vmatpush1.msra.mxu1 %v5616_v48  ;;  %2403 = vmatprep.subr.mxu0 %v5617_v55  ;;  %v5627_v48 = vld [vmem:[#allocation34_spill] sm:$0xff] }
 0x62d   :  { %2474 = vmatprep.subr.mxu1 %v5618_v18  ;;  %2404 = vmatpush1.msra.mxu0 %v5619_v14  ;;  %v5628_v18 = vld [vmem:[#allocation59_spill] sm:$0xff] }
 0x62e   :  { %2475 = vmatpush1.msra.mxu1 %v5620_v39  ;;  %2405 = vmatprep.subr.mxu0 %v5621_v38  ;;  %v5629_v39 = vld [vmem:[#allocation47_spill] sm:$0xff] }
 0x62f   :  { %2476 = vmatprep.subr.mxu1 %v5622_v13  ;;  %2406 = vmatpush1.msra.mxu0 %v5623_v54  ;;  %v5630_v13 = vld [vmem:[#allocation56_spill] sm:$0xff]  ;;  %v5632_v14 = vld [vmem:[#allocation51_spill] sm:$0xff] }
 0x630   :  { %2477 = vmatpush1.msra.mxu1 %v5624_v5  ;;  %2407 = vmatprep.subr.mxu0 %v5625_v15  ;;  %v4918_v5 = vld [vmem:[#allocation7] ss:$0 sm:$0xff] }
 0x631   :  { %2478 = vmatprep.subr.mxu1 %v5626_v43  ;;  %2408 = vmatpush1.msra.mxu0 %v5627_v48  ;;  %5631 = vst [vmem:[#allocation58_spill] sm:$0xff] %v4918_v5 }
 0x632   :  { %2441 = vmatprep.mubr.f32.mxu0 %v5415_v57  ;;  %2479 = vmatpush1.msra.mxu1 %v5628_v18  ;;  %v5633_v18 = vld [vmem:[#allocation40_spill] sm:$0xff] }
 0x633   :  { %2512 = vmatprep.mubr.f32.mxu1 %v5415_v57  ;;  %3247 = vmatprep.subr.msk.mxu0 %vm335_vm2, %v5629_v39  ;;  %v4925_v60 = vsel %vm1627_vm8, %v5633_v18, %v5632_v14  ;;  %v5636_v39 = vld [vmem:[#allocation49_spill] sm:$0xff] }
 0x634   :  { %3250 = vmatprep.subr.msk.mxu1 %vm335_vm2, %v5630_v13  ;;  %5635 = vst [vmem:[#allocation51_spill] sm:$0xff] %v4925_v60  ;;  %v1984_v17 = vadd.f32 %v4925_v60, %v5636_v39 }
 0x636   :  { %v1985_v13 = vmax.f32 %v1984_v17, 0.0 }
 0x638   :  { %v1986_v16 = vmin.f32 %v1985_v13, 1.0 }
 0x697   :  { %v1973_v54 = vpop.xlane.xlu0 %1972 }
 0x698   :  { %v1974_v15 = vadd.f32 %v4918_v5, %v1973_v54  ;;  %v1988_v54 = vmul.f32 %v1987_v9, %v1986_v16 }
 0x69a   :  { %v3232_v43 = vmul.f32 -1.442695, %v1974_v15 }
 0x69c   :  { %3445 = vpow2.f32 %v3232_v43 }
 0x6a9   :  { %v3446_v48 = vpop.eup %3445 }
 0x6aa   :  { %v1978_v38 = vadd.f32 1.0, %v3446_v48 }
 0x6ac   :  { %3447 = vrcp.f32 %v1978_v38 }
 0x6b9   :  { %v4930_v6 = vpop.eup %3447 }
 0x6ba   :  { %5638 = vst [vmem:[#allocation40_spill] sm:$0xff] %v4930_v6  ;;  %v1981_v15 = vmul.f32 %v4930_v6, %v5637_v36  ;;  %v5643_v36 = vmov 0  }
 0x6bc   :  { %v4936_v43 = vsel %vm1989_vm12, %v1988_v54, %v1981_v15 }
 0x6bd   :  { %5640 = vst [vmem:[#allocation60_spill] sm:$0xff] %v4936_v43  ;;  %v3312_v55 = vcvt.f32.s32 %v4936_v43  ;;  %v3310_v14 = vand.u32 2147483647, %v4936_v43  ;;  %vm1999_vm1 = vcmp.lt.f32.partialorder %v4936_v43, 0.5  ;;  %v3315_v39 = vand.u32 2147483648, %v4936_v43 }
 0x6be   :  { %v4943_v16 = vsel %vm1999_vm1, 1.0, %v5415_v57  ;;  %vm3092_vm1 = vcmask 58368  }
 0x6bf   :  { %v3313_v18 = vcvt.s32.f32 %v3312_v55  ;;  %5641 = vst [vmem:[#allocation49_spill] sm:$0xff] %v4943_v16  ;;  %vm3311_vm3 = vcmp.lt.f32.partialorder %v3310_v14, 8388608.0  ;;  %vm2351_vm5 = vcmp.gt.f32.partialorder %v4943_v16, 0.5 }
 0x6c0   :  { %v2352_v48 = vsel %vm2351_vm5, 1, %v5643_v36 }
 0x6c1   :  { %v3314_v17 = vand.u32 2147483647, %v3313_v18 }
 0x6c3   :  { %v3316_v13 = vor.u32 %v3315_v39, %v3314_v17 }
 0x6c5   :  { %v4946_v9 = vsel %vm3311_vm3, %v3316_v13, %v4936_v43 }
 0x6c6   :  { %5642 = vst [vmem:[#allocation61_spill] sm:$0xff] %v4946_v9  ;;  %2011 = vperm.xlu1 %3346, %v4946_v9  }
 0x6ca   :  { %2354 = vperm.xlu1 %3346, %v2352_v48  }
 0x6ce   :  { %v2081_v54 = vpop.f32.mrf.mxu0 }
 0x6cf   :  { %v2152_v9 = vpop.f32.mrf.mxu1 }
 0x6d0   :  { %v2083_v15 = vpop.f32.mrf.mxu0 }
 0x6d1   :  { %v2154_v60 = vpop.f32.mrf.mxu1 }
 0x6d2   :  { %v2226_v55 = vpop.f32.mrf.mxu0 }
 0x6d3   :  { %v2227_v39 = vadd.f32 %v2226_v55, %v2081_v54  ;;  %v2297_v6 = vpop.f32.mrf.mxu1 }
 0x6d4   :  { %v2228_v18 = vpop.f32.mrf.mxu0  ;;  %v2298_v8 = vadd.f32 %v2297_v6, %v2152_v9 }
 0x6d5   :  { %v2229_v17 = vadd.f32 %v2228_v18, %v2083_v15  ;;  %v2302_v13 = vadd.f32 %v2227_v39, %v5471_v58  ;;  %v2299_v16 = vpop.f32.mrf.mxu1 }
 0x6d6   :  { %v2300_v48 = vadd.f32 %v2299_v16, %v2154_v60  ;;  %v2304_v15 = vadd.f32 %v2298_v8, %v4130_v50 }
 0x6d7   :  { %v2303_v14 = vadd.f32 %v2229_v17, %v4123_v47  ;;  %v3241_v38 = vmul.f32 -1.442695, %v2302_v13 }
 0x6d8   :  { %v2305_v54 = vadd.f32 %v2300_v48, %v4127_v40 }
 0x6d9   :  { %v3242_v43 = vmul.f32 -1.442695, %v2303_v14 }
 0x6da   :  { %v3243_v55 = vmul.f32 -1.442695, %v2305_v54 }
 0x6db   :  { %3449 = vpow2.f32 %v3242_v43 }
 0x6dc   :  { %3451 = vpow2.f32 %v3241_v38 }
 0x6e8   :  { %v3450_v36 = vpop.eup %3449 }
 0x6e9   :  { %v3452_v5 = vpop.eup %3451  ;;  %v2315_v2 = vadd.f32 1.0, %v3450_v36 }
 0x6ea   :  { %v2309_v4 = vadd.f32 1.0, %v3452_v5 }
 0x6eb   :  { %3453 = vrcp.f32 %v2315_v2 }
 0x6ec   :  { %3455 = vrcp.f32 %v2309_v4 }
 0x6ed   :  { %3457 = vtanh.f32 %v2304_v15 }
 0x6ee   :  { %3459 = vpow2.f32 %v3243_v55 }
 0x6f8   :  { %v3454_v43 = vpop.eup %3453 }
 0x6f9   :  { %v3456_v38 = vpop.eup %3455  ;;  %v2325_v18 = vmul.f32 %v3454_v43, %v4830_v37 }
 0x6fa   :  { %v3458_v17 = vpop.eup %3457 }
 0x6fb   :  { %v2326_v39 = vmul.f32 %v3458_v17, %v3456_v38  ;;  %v3460_v60 = vpop.eup %3459  ;;  %v5678_v17 = vld [vmem:[#allocation58_spill] sm:$0xff] }
 0x6fc   :  { %v2322_v6 = vadd.f32 1.0, %v3460_v60 }
 0x6fd   :  { %v2327_v16 = vadd.f32 %v2326_v39, %v2325_v18 }
 0x6ff   :  { %3461 = vtanh.f32 %v2327_v16 }
 0x700   :  { %3463 = vrcp.f32 %v2322_v6 }
 0x70c   :  { %v3462_v5 = vpop.eup %3461 }
 0x70d   :  { %v3464_v2 = vpop.eup %3463 }
 0x70e   :  { %v2329_v14 = vmul.f32 %v3464_v2, %v3462_v5  ;;  %v5679_v5 = vld [vmem:[#allocation40_spill] sm:$0xff] }
 0x741   :  { %v2012_v8 = vpop.permute.xlu1 %2011 }
 0x742   :  { %v2014_v4 = vsub.f32 1.0, %v2012_v8  ;;  %v2331_v9 = vmul.f32 %v2327_v16, %v2012_v8  ;;  %v4960_v36 = vsel %vm2366_vm7, %v2012_v8, %v4819_v12  ;;  %v2330_v15 = vmul.f32 %v2329_v14, %v2012_v8  ;;  %v3246_v12 = vld [vmem:[%s5193_s0 + $0xc] sm:$0x3]  ;;  %v5680_v8 = vld [vmem:[#allocation51_spill] sm:$0xff] }
 0x744   :  { %v2345_v13 = vmul.f32 %v2014_v4, %v4830_v37  ;;  %v2344_v48 = vmul.f32 %v2014_v4, %v4832_v10  ;;  %v2332_v54 = vmul.f32 %v4826_v11, %v2331_v9  ;;  %v5677_v37 = vld [vmem:[#allocation56_spill] sm:$0xff]  ;;  %v5059_v4 = vsel %vm1989_vm12, %v5680_v8, %v5679_v5 }
 0x745   :  { %v2355_v55 = vpop.permute.xlu1 %2354  ;;  %vm2728_vm12 = vcmp.eq.s32.totalorder %v4406_v33, 6 }
 0x746   :  { %vm2356_vm8 = vcmp.eq.s32.totalorder %v2355_v55, 1  ;;  %v2333_v43 = vsel %vm517_vm6, %v2332_v54, 0.0 }
 0x747   :  { %v4966_v38 = vsel %vm2356_vm8, %v2344_v48, %v2330_v15  ;;  %v4968_v18 = vsel %vm2356_vm8, %v2345_v13, %v2331_v9  ;;  %2334 = vadd.xlane.f32.xlu1 %v2333_v43  ;;  %v5682_v9 = vld [vmem:[#allocation60_spill] sm:$0xff]  ;;  %v5683_v48 = vld [vmem:[#allocation61_spill] sm:$0xff] }
 0x748   :  { %2365 = vst [vmem:[#allocation11 + $0xa] sm:$0x3] %v4966_v38  ;;  %2442 = vmatmul.mubr.f32.vlgmr.msra.gmra.mxu0 %v4966_v38  ;;  %2513 = vmatmul.mubr.f32.vlgmr.msra.gmra.mxu1 %v4966_v38  ;;  %v2346_v14 = vadd.f32 %v5059_v4, %v5682_v9  ;;  %v2349_v54 = vsub.f32 1.0, %v5683_v48 }
 0x749   :  { %3248 = vmatpush1.msk.msra.mxu0 %vm335_vm2, %v4429_v49  ;;  %2586 = vmatprep.mubr.f32.mxu0 %v5415_v57  ;;  %v5644_v49 = vld [vmem:[#allocation21_spill] sm:$0xff] }
 0x74a   :  { %3251 = vmatpush1.msk.msra.mxu1 %vm335_vm2, %v4702_v7  ;;  %2657 = vmatprep.mubr.f32.mxu1 %v5415_v57  ;;  %v2347_v13 = vmax.f32 %v2346_v14, 0.0 }
 0x74b   :  { %2739 = vmatprep.subr.mxu0 %v4440_v19  ;;  %2810 = vmatprep.subr.mxu1 %v4443_v20  ;;  %v5645_v19 = vld [vmem:[#allocation27_spill] sm:$0xff]  ;;  %v5646_v20 = vld [vmem:[#allocation22_spill] sm:$0xff] }
 0x74c   :  { %3249 = vmatmul.mubr.msk.f32.vlgmr.msra.gmra.mxu0 %vm331_vm4, %v3246_v12  ;;  %3252 = vmatmul.mubr.msk.f32.vlgmr.msra.gmra.mxu1 %vm331_vm4, %v3246_v12  ;;  %v2348_v15 = vmin.f32 %v2347_v13, 1.0 }
 0x74d   :  { %2740 = vmatpush1.msra.mxu0 %v4448_v21  ;;  %2811 = vmatpush1.msra.mxu1 %v4451_v22  ;;  %v5647_v21 = vld [vmem:[#allocation30_spill] sm:$0xff]  ;;  %v5648_v22 = vld [vmem:[#allocation23_spill] sm:$0xff] }
 0x74e   :  { %2741 = vmatprep.subr.mxu0 %v4454_v3  ;;  %2812 = vmatprep.subr.mxu1 %v4457_v23  ;;  %v5649_v3 = vld [vmem:[#allocation32_spill] sm:$0xff]  ;;  %v2350_v43 = vmul.f32 %v2349_v54, %v2348_v15 }
 0x74f   :  { %2742 = vmatpush1.msra.mxu0 %v4460_v24  ;;  %2813 = vmatpush1.msra.mxu1 %v4463_v25  ;;  %v5650_v23 = vld [vmem:[#allocation24_spill] sm:$0xff]  ;;  %v5651_v24 = vld [vmem:[#allocation33_spill] sm:$0xff] }
 0x750   :  { %2743 = vmatprep.subr.mxu0 %v4466_v26  ;;  %2814 = vmatprep.subr.mxu1 %v4469_v27  ;;  %v5652_v25 = vld [vmem:[#allocation25_spill] sm:$0xff]  ;;  %v5653_v26 = vld [vmem:[#allocation36_spill] sm:$0xff]  ;;  %v5654_v27 = vld [vmem:[#allocation26_spill] sm:$0xff] }
 0x751   :  { %2744 = vmatpush1.msra.mxu0 %v4472_v28  ;;  %2815 = vmatpush1.msra.mxu1 %v4475_v29  ;;  %v5655_v28 = vld [vmem:[#allocation38_spill] sm:$0xff]  ;;  %v5656_v29 = vld [vmem:[#allocation28_spill] sm:$0xff] }
 0x752   :  { %2745 = vmatprep.subr.mxu0 %v4478_v30  ;;  %2816 = vmatprep.subr.mxu1 %v4481_v31  ;;  %v5657_v30 = vld [vmem:[#allocation41_spill] sm:$0xff] }
 0x753   :  { %2746 = vmatpush1.msra.mxu0 %v4484_v32  ;;  %2817 = vmatpush1.msra.mxu1 %v4487_v34  ;;  %v5658_v31 = vld [vmem:[#allocation29_spill] sm:$0xff]  ;;  %v5659_v32 = vld [vmem:[#allocation43_spill] sm:$0xff] }
 0x754   :  { %2747 = vmatprep.subr.mxu0 %v4490_v41  ;;  %2818 = vmatprep.subr.mxu1 %v4493_v52  ;;  %v5660_v34 = vld [vmem:[#allocation31_spill] sm:$0xff]  ;;  %v5661_v41 = vld [vmem:[#allocation45_spill] sm:$0xff] }
 0x755   :  { %2748 = vmatpush1.msra.mxu0 %v4496_v51  ;;  %2819 = vmatpush1.msra.mxu1 %v4499_v42  ;;  %v5662_v52 = vld [vmem:[#allocation35_spill] sm:$0xff]  ;;  %v5663_v51 = vld [vmem:[#allocation48_spill] sm:$0xff]  ;;  %v5664_v42 = vld [vmem:[#allocation37_spill] sm:$0xff] }
 0x756   :  { %2749 = vmatprep.subr.mxu0 %v4502_v53  ;;  %2820 = vmatprep.subr.mxu1 %v4505_v56  ;;  %v5665_v53 = vld [vmem:[#allocation50_spill] sm:$0xff]  ;;  %v5666_v56 = vld [vmem:[#allocation39_spill] sm:$0xff] }
 0x757   :  { %2750 = vmatpush1.msra.mxu0 %v4508_v62  ;;  %2821 = vmatpush1.msra.mxu1 %v4511_v63  ;;  %v5667_v62 = vld [vmem:[#allocation52_spill] sm:$0xff]  ;;  %v5668_v63 = vld [vmem:[#allocation42_spill] sm:$0xff] }
 0x758   :  { %2751 = vmatprep.subr.mxu0 %v4514_v46  ;;  %2822 = vmatprep.subr.mxu1 %v4517_v44  ;;  %v5669_v46 = vld [vmem:[#allocation53_spill] sm:$0xff]  ;;  %v5670_v44 = vld [vmem:[#allocation44_spill] sm:$0xff] }
 0x759   :  { %2752 = vmatpush1.msra.mxu0 %v4520_v35  ;;  %2823 = vmatpush1.msra.mxu1 %v4523_v45  ;;  %v5671_v35 = vld [vmem:[#allocation54_spill] sm:$0xff] }
 0x75a   :  { %2753 = vmatprep.subr.mxu0 %v4526_v59  ;;  %2824 = vmatprep.subr.mxu1 %v4529_v1  ;;  %v5672_v45 = vld [vmem:[#allocation46_spill] sm:$0xff]  ;;  %v5673_v59 = vld [vmem:[#allocation55_spill] sm:$0xff] }
 0x75b   :  { %2754 = vmatpush1.msra.mxu0 %v4532_v61  ;;  %2825 = vmatpush1.msra.mxu1 %v4535_v0  ;;  %v5674_v1 = vld [vmem:[#allocation34_spill] sm:$0xff]  ;;  %v5675_v61 = vld [vmem:[#allocation59_spill] sm:$0xff] }
 0x75c   :  { %2755 = vmatprep.subr.mxu0 %v5644_v49  ;;  %2826 = vmatprep.subr.mxu1 %v5645_v19  ;;  %v5676_v0 = vld [vmem:[#allocation47_spill] sm:$0xff] }
 0x75d   :  { %2756 = vmatpush1.msra.mxu0 %v5646_v20  ;;  %2827 = vmatpush1.msra.mxu1 %v5647_v21 }
 0x75e   :  { %2757 = vmatprep.subr.mxu0 %v5648_v22  ;;  %2828 = vmatprep.subr.mxu1 %v5649_v3 }
 0x75f   :  { %2758 = vmatpush1.msra.mxu0 %v5650_v23  ;;  %2829 = vmatpush1.msra.mxu1 %v5651_v24 }
 0x760   :  { %2759 = vmatprep.subr.mxu0 %v5652_v25  ;;  %2830 = vmatprep.subr.mxu1 %v5653_v26 }
 0x761   :  { %2760 = vmatpush1.msra.mxu0 %v5654_v27  ;;  %2831 = vmatpush1.msra.mxu1 %v5655_v28  ;;  %v5685_v27 = vmov 0  }
 0x762   :  { %2761 = vmatprep.subr.mxu0 %v5656_v29  ;;  %2832 = vmatprep.subr.mxu1 %v5657_v30 }
 0x763   :  { %2762 = vmatpush1.msra.mxu0 %v5658_v31  ;;  %2833 = vmatpush1.msra.mxu1 %v5659_v32 }
 0x764   :  { %2763 = vmatprep.subr.mxu0 %v5660_v34  ;;  %2834 = vmatprep.subr.mxu1 %v5661_v41 }
 0x765   :  { %2764 = vmatpush1.msra.mxu0 %v5662_v52  ;;  %2835 = vmatpush1.msra.mxu1 %v5663_v51 }
 0x766   :  { %2765 = vmatprep.subr.mxu0 %v5664_v42  ;;  %2836 = vmatprep.subr.mxu1 %v5665_v53 }
 0x767   :  { %2766 = vmatpush1.msra.mxu0 %v5666_v56  ;;  %2837 = vmatpush1.msra.mxu1 %v5667_v62 }
 0x768   :  { %2767 = vmatprep.subr.mxu0 %v5668_v63  ;;  %2838 = vmatprep.subr.mxu1 %v5669_v46 }
 0x769   :  { %2768 = vmatpush1.msra.mxu0 %v5670_v44  ;;  %2839 = vmatpush1.msra.mxu1 %v5671_v35 }
 0x76a   :  { %2769 = vmatprep.subr.mxu0 %v5672_v45  ;;  %2840 = vmatprep.subr.mxu1 %v5673_v59 }
 0x76b   :  { %2770 = vmatpush1.msra.mxu0 %v5674_v1  ;;  %2803 = vmatprep.mubr.f32.mxu0 %v5415_v57 }
 0x76c   :  { %2841 = vmatpush1.msra.mxu1 %v5675_v61  ;;  %2874 = vmatprep.mubr.f32.mxu1 %v5415_v57 }
 0x76d   :  { %3259 = vmatprep.subr.msk.mxu0 %vm335_vm2, %v5676_v0  ;;  %3262 = vmatprep.subr.msk.mxu1 %vm335_vm2, %v5677_v37 }
 0x7d0   :  { %v2335_v10 = vpop.xlane.xlu1 %2334 }
 0x7d1   :  { %v2336_v39 = vadd.f32 %v5678_v17, %v2335_v10 }
 0x7d3   :  { %v3244_v60 = vmul.f32 -1.442695, %v2336_v39 }
 0x7d5   :  { %3465 = vpow2.f32 %v3244_v60 }
 0x7e2   :  { %v3466_v16 = vpop.eup %3465 }
 0x7e3   :  { %v2340_v6 = vadd.f32 1.0, %v3466_v16 }
 0x7e5   :  { %3467 = vrcp.f32 %v2340_v6 }
 0x7f2   :  { %v5064_v55 = vpop.eup %3467 }
 0x7f3   :  { %v2343_v12 = vmul.f32 %v5064_v55, %v5683_v48 }
 0x7f5   :  { %v5070_v19 = vsel %vm2351_vm5, %v2350_v43, %v2343_v12 }
 0x7f6   :  { %v3320_v20 = vcvt.f32.s32 %v5070_v19  ;;  %v3318_v22 = vand.u32 2147483647, %v5070_v19  ;;  %vm2361_vm9 = vcmp.lt.f32.partialorder %v5070_v19, 0.5  ;;  %v3323_v23 = vand.u32 2147483648, %v5070_v19 }
 0x7f7   :  { %v5077_v25 = vsel %vm2361_vm9, 1.0, %v5415_v57 }
 0x7f8   :  { %v3321_v21 = vcvt.s32.f32 %v3320_v20  ;;  %vm3319_vm10 = vcmp.lt.f32.partialorder %v3318_v22, 8388608.0  ;;  %vm2713_vm11 = vcmp.gt.f32.partialorder %v5077_v25, 0.5 }
 0x7f9   :  { %v2714_v28 = vsel %vm2713_vm11, 1, %v5685_v27 }
 0x7fa   :  { %v3322_v3 = vand.u32 2147483647, %v3321_v21 }
 0x7fc   :  { %v3324_v24 = vor.u32 %v3323_v23, %v3322_v3 }
 0x7fe   :  { %v5080_v26 = vsel %vm3319_vm10, %v3324_v24, %v5070_v19 }
 0x7ff   :  { %2373 = vperm.xlu0 %3345, %v5080_v26  }
 0x803   :  { %2716 = vperm.xlu0 %3345, %v2714_v28  }
 0x808   :  { %v2443_v29 = vpop.f32.mrf.mxu0  ;;  %v2514_v56 = vpop.f32.mrf.mxu1 }
 0x80a   :  { %v2445_v30 = vpop.f32.mrf.mxu0  ;;  %v2516_v62 = vpop.f32.mrf.mxu1 }
 0x80c   :  { %v2588_v31 = vpop.f32.mrf.mxu0  ;;  %v2659_v63 = vpop.f32.mrf.mxu1 }
 0x80d   :  { %v2589_v41 = vadd.f32 %v2588_v31, %v2443_v29  ;;  %v2660_v59 = vadd.f32 %v2659_v63, %v2514_v56 }
 0x80e   :  { %v2590_v32 = vpop.f32.mrf.mxu0  ;;  %v2661_v46 = vpop.f32.mrf.mxu1 }
 0x80f   :  { %v2591_v34 = vadd.f32 %v2590_v32, %v2445_v30  ;;  %v2664_v51 = vadd.f32 %v2589_v41, %v5471_v58  ;;  %v2662_v35 = vadd.f32 %v2661_v46, %v2516_v62  ;;  %v2666_v37 = vadd.f32 %v2660_v59, %v4130_v50 }
 0x810   :  { %v2360_v41 = vsel %vm2351_vm5, %v5059_v4, %v5064_v55 }
 0x811   :  { %v2665_v52 = vadd.f32 %v2591_v34, %v4123_v47  ;;  %v3253_v53 = vmul.f32 -1.442695, %v2664_v51  ;;  %v2667_v0 = vadd.f32 %v2662_v35, %v4127_v40  ;;  %v2711_v51 = vsub.f32 1.0, %v5080_v26 }
 0x813   :  { %v3254_v42 = vmul.f32 -1.442695, %v2665_v52  ;;  %v3255_v10 = vmul.f32 -1.442695, %v2667_v0 }
 0x815   :  { %3469 = vpow2.f32 %v3254_v42 }
 0x816   :  { %3471 = vpow2.f32 %v3253_v53 }
 0x822   :  { %v3470_v44 = vpop.eup %3469 }
 0x823   :  { %v3472_v45 = vpop.eup %3471  ;;  %v2677_v1 = vadd.f32 1.0, %v3470_v44 }
 0x824   :  { %v2671_v61 = vadd.f32 1.0, %v3472_v45 }
 0x825   :  { %3473 = vrcp.f32 %v2677_v1 }
 0x826   :  { %3475 = vrcp.f32 %v2671_v61 }
 0x827   :  { %3477 = vtanh.f32 %v2666_v37 }
 0x828   :  { %3479 = vpow2.f32 %v3255_v10 }
 0x832   :  { %v3474_v39 = vpop.eup %3473 }
 0x833   :  { %v3476_v60 = vpop.eup %3475  ;;  %v2687_v16 = vmul.f32 %v3474_v39, %v4968_v18 }
 0x834   :  { %v3478_v6 = vpop.eup %3477 }
 0x835   :  { %v2688_v5 = vmul.f32 %v3478_v6, %v3476_v60  ;;  %v3480_v8 = vpop.eup %3479 }
 0x836   :  { %v2684_v9 = vadd.f32 1.0, %v3480_v8 }
 0x837   :  { %v2689_v2 = vadd.f32 %v2688_v5, %v2687_v16 }
 0x839   :  { %3481 = vtanh.f32 %v2689_v2 }
 0x83a   :  { %3483 = vrcp.f32 %v2684_v9 }
 0x846   :  { %v3482_v14 = vpop.eup %3481 }
 0x847   :  { %v3484_v48 = vpop.eup %3483 }
 0x848   :  { %v2691_v12 = vmul.f32 %v3484_v48, %v3482_v14 }
 0x87a   :  { %v2374_v13 = vpop.permute.xlu0 %2373 }
 0x87b   :  { %v2376_v54 = vsub.f32 1.0, %v2374_v13  ;;  %v2693_v15 = vmul.f32 %v2689_v2, %v2374_v13  ;;  %v5094_v43 = vsel %vm2728_vm12, %v2374_v13, %v4960_v36  ;;  %v2692_v3 = vmul.f32 %v2691_v12, %v2374_v13  ;;  %v3577_v36 = vld [vmem:[%s5198_s5] sm:$0xff] }
 0x87d   :  { %v2707_v20 = vmul.f32 %v2376_v54, %v4968_v18  ;;  %v2706_v21 = vmul.f32 %v2376_v54, %v4966_v38  ;;  %v2694_v22 = vmul.f32 %v4826_v11, %v2693_v15  ;;  %v3258_v38 = vld [vmem:[%s5193_s0 + $0xe] sm:$0x3]  ;;  %s3692_s0 = smov [#allocation12]  }
 0x87e   :  { %v2717_v23 = vpop.permute.xlu0 %2716  ;;  %s3125_s5 = sshll.u32 %s3692_s0, 4  ;;  %s3126_s5 = int_to_ptr.vmem [resolvable:$true] %s3125_s5 }
 0x87f   :  { %vm2718_vm13 = vcmp.eq.s32.totalorder %v2717_v23, 1  ;;  %v2695_v24 = vsel %vm517_vm6, %v2694_v22, 0.0  ;;  %s3598_s9 = scalar_lea.vmem %s3126_s5, 32  ;;  %p3603_p6 = scmp.lt.s32.totalorder %s3126_s5, %s3126_s5 }
 0x880   :  { %v5100_v28 = vsel %vm2718_vm13, %v2706_v21, %v2692_v3  ;;  %v5102_v29 = vsel %vm2718_vm13, %v2707_v20, %v2693_v15  ;;  %2696 = vadd.xlane.f32.xlu0 %v2695_v24  ;;  %p3599_p5 = scmp.ne.s32.totalorder %s3126_s5, %s3598_s9  ;;  %p3604_p7 = scmp.lt.s32.totalorder %s3598_s9, %s3598_s9 }
 0x881   :  { %2727 = vst [vmem:[#allocation11 + $0xc] sm:$0x3] %v5100_v28  ;;  %2804 = vmatmul.mubr.f32.vlgmr.msra.gmra.mxu0 %v5100_v28  ;;  %2875 = vmatmul.mubr.f32.vlgmr.msra.gmra.mxu1 %v5100_v28 }
 0x882   :  { %3260 = vmatpush1.msk.msra.mxu0 %vm335_vm2, %v3577_v36  ;;  %2948 = vmatprep.mubr.f32.mxu0 %v5415_v57  ;;  %p3605_p8 = por %p3604_p7, %p3603_p6 }
 0x883   :  { %3263 = vmatpush1.msk.msra.mxu1 %vm335_vm2, %v4702_v7  ;;  %3019 = vmatprep.mubr.f32.mxu1 %v5415_v57  ;;  %v2708_v7 = vadd.f32 %v2360_v41, %v5070_v19 }
 0x884   :  { %p3606_p9 = pnand %p3605_p8, %p3599_p5 }
 0x885   :  { %3261 = vmatmul.mubr.msk.f32.vlgmr.msra.gmra.mxu0 %vm331_vm4, %v3258_v38  ;;  %3264 = vmatmul.mubr.msk.f32.vlgmr.msra.gmra.mxu1 %vm331_vm4, %v3258_v38  ;;  %v2709_v52 = vmax.f32 %v2708_v7, 0.0 }
 0x887   :  { %v2710_v42 = vmin.f32 %v2709_v52, 1.0 }
 0x889   :  { %v2712_v56 = vmul.f32 %v2711_v51, %v2710_v42 }
 0x909   :  { %v2697_v18 = vpop.xlane.xlu0 %2696 }
 0x90a   :  { %v2698_v30 = vadd.f32 %v5678_v17, %v2697_v18 }
 0x90c   :  { %v3256_v31 = vmul.f32 -1.442695, %v2698_v30 }
 0x90e   :  { %3485 = vpow2.f32 %v3256_v31 }
 0x91b   :  { %v3486_v32 = vpop.eup %3485 }
 0x91c   :  { %v2702_v34 = vadd.f32 1.0, %v3486_v32 }
 0x91e   :  { %3487 = vrcp.f32 %v2702_v34 }
 0x92b   :  { %v3488_v53 = vpop.eup %3487 }
 0x92c   :  { %v2705_v62 = vmul.f32 %v3488_v53, %v5080_v26  ;;  %v5132_v46 = vsel %vm2713_vm11, %v2360_v41, %v3488_v53 }
 0x92e   :  { %v2721_v63 = vsel %vm2713_vm11, %v2712_v56, %v2705_v62 }
 0x92f   :  { %vm2723_vm2 = vcmp.lt.f32.partialorder %v2721_v63, 0.5  ;;  %v3328_v49 = vcvt.f32.s32 %v2721_v63  ;;  %v5138_v55 = vadd.f32 %v5132_v46, %v2721_v63  ;;  %v3326_v44 = vand.u32 2147483647, %v2721_v63 }
 0x930   :  { %v5135_v4 = vsel %vm2723_vm2, 1.0, %v5415_v57  ;;  %v3331_v25 = vand.u32 2147483648, %v2721_v63 }
 0x931   :  { %vm3075_vm4 = vcmp.gt.f32.partialorder %v5135_v4, 0.5  ;;  %v3329_v19 = vcvt.s32.f32 %v3328_v49  ;;  %vm3327_vm14 = vcmp.lt.f32.partialorder %v3326_v44, 8388608.0 }
 0x932   :  { %v3076_v26 = vsel %vm3075_vm4, 1, %v5685_v27 }
 0x933   :  { %3078 = vperm.xlu0 %3345, %v3076_v26   ;;  %v3330_v35 = vand.u32 2147483647, %v3329_v19 }
 0x935   :  { %v3332_v45 = vor.u32 %v3331_v25, %v3330_v35 }
 0x937   :  { %v5144_v59 = vsel %vm3327_vm14, %v3332_v45, %v2721_v63 }
 0x938   :  { %2735 = vperm.xlu1 %3346, %v5144_v59  }
 0x941   :  { %v2805_v1 = vpop.f32.mrf.mxu0  ;;  %v2876_v5 = vpop.f32.mrf.mxu1 }
 0x943   :  { %v2807_v61 = vpop.f32.mrf.mxu0  ;;  %v2878_v8 = vpop.f32.mrf.mxu1 }
 0x945   :  { %v2950_v0 = vpop.f32.mrf.mxu0  ;;  %v3021_v2 = vpop.f32.mrf.mxu1 }
 0x946   :  { %v2951_v39 = vadd.f32 %v2950_v0, %v2805_v1  ;;  %v3022_v54 = vadd.f32 %v3021_v2, %v2876_v5 }
 0x947   :  { %v2952_v37 = vpop.f32.mrf.mxu0  ;;  %v3023_v9 = vpop.f32.mrf.mxu1 }
 0x948   :  { %v2953_v10 = vadd.f32 %v2952_v37, %v2807_v61  ;;  %v3026_v27 = vadd.f32 %v2951_v39, %v5471_v58  ;;  %v3024_v13 = vadd.f32 %v3023_v9, %v2878_v8 }
 0x94a   :  { %v3027_v60 = vadd.f32 %v2953_v10, %v4123_v47  ;;  %v3265_v6 = vmul.f32 -1.442695, %v3026_v27  ;;  %v3029_v20 = vadd.f32 %v3024_v13, %v4127_v40  ;;  %v3028_v47 = vadd.f32 %v3022_v54, %v4130_v50 }
 0x94c   :  { %v3266_v16 = vmul.f32 -1.442695, %v3027_v60  ;;  %v3267_v58 = vmul.f32 -1.442695, %v3029_v20 }
 0x94e   :  { %3489 = vpow2.f32 %v3266_v16 }
 0x94f   :  { %3491 = vpow2.f32 %v3265_v6 }
 0x95b   :  { %v3490_v14 = vpop.eup %3489 }
 0x95c   :  { %v3492_v48 = vpop.eup %3491  ;;  %v3039_v15 = vadd.f32 1.0, %v3490_v14 }
 0x95d   :  { %v3033_v12 = vadd.f32 1.0, %v3492_v48 }
 0x95e   :  { %3493 = vrcp.f32 %v3039_v15 }
 0x95f   :  { %3495 = vrcp.f32 %v3033_v12 }
 0x960   :  { %3497 = vtanh.f32 %v3028_v47 }
 0x961   :  { %3499 = vpow2.f32 %v3267_v58 }
 0x96b   :  { %v3494_v21 = vpop.eup %3493 }
 0x96c   :  { %v3496_v22 = vpop.eup %3495  ;;  %v3049_v3 = vmul.f32 %v3494_v21, %v5102_v29 }
 0x96d   :  { %v3498_v23 = vpop.eup %3497 }
 0x96e   :  { %v3050_v24 = vmul.f32 %v3498_v23, %v3496_v22  ;;  %v3500_v36 = vpop.eup %3499 }
 0x96f   :  { %v3046_v18 = vadd.f32 1.0, %v3500_v36 }
 0x970   :  { %v3051_v38 = vadd.f32 %v3050_v24, %v3049_v3 }
 0x972   :  { %3501 = vtanh.f32 %v3051_v38 }
 0x973   :  { %3503 = vrcp.f32 %v3046_v18 }
 0x97f   :  { %v3502_v30 = vpop.eup %3501 }
 0x980   :  { %v3504_v40 = vpop.eup %3503 }
 0x981   :  { %v3053_v34 = vmul.f32 %v3504_v40, %v3502_v30 }
 0x9ae   :  { %v3079_v31 = vpop.permute.xlu0 %3078 }
 0x9af   :  { %vm3080_vm3 = vcmp.eq.s32.totalorder %v3079_v31, 1 }
 0x9b3   :  { %v2736_v50 = vpop.permute.xlu1 %2735 }
 0x9b4   :  { %v2738_v32 = vsub.f32 1.0, %v2736_v50  ;;  %v3055_v41 = vmul.f32 %v3051_v38, %v2736_v50  ;;  %v3091_v7 = vsel %vm3090_vm15, %v2736_v50, %v5094_v43  ;;  %v3054_v52 = vmul.f32 %v3053_v34, %v2736_v50 }
 0x9b5   :  { %3093 = vst.msk [vmem:[#allocation12] sm:$0x3] %vm3092_vm1, %v3091_v7 }
 0x9b6   :  { %v3068_v51 = vmul.f32 %v2738_v32, %v5100_v28  ;;  %v3056_v42 = vmul.f32 %v4826_v11, %v3055_v41  ;;  %v3069_v53 = vmul.f32 %v2738_v32, %v5102_v29 }
 0x9b8   :  { %v3081_v56 = vsel %vm3080_vm3, %v3068_v51, %v3054_v52  ;;  %v3057_v33 = vsel %vm517_vm6, %v3056_v42, 0.0  ;;  %v3082_v62 = vsel %vm3080_vm3, %v3069_v53, %v3055_v41 }
 0x9b9   :  { %3089 = vst [vmem:[#allocation11 + $0xe] sm:$0x3] %v3081_v56  ;;  %3094 = vst [vmem:[#allocation2] sm:$0x3] %v3081_v56  ;;  %3058 = vadd.xlane.f32.xlu1 %v3057_v33 }
 0x9ba   :  { %3103 = vst [vmem:[#allocation14] sm:$0x3] %v3081_v56  ;;  %3095 = vst [vmem:[#allocation3] sm:$0x3] %v3082_v62 }
 0x9bb   :  { %3104 = vst [vmem:[#allocation15] sm:$0x3] %v3082_v62 }
 0x9bc   :  { %3609 = shalt.err (!%p3606_p9)
}
 0x9bd   :  { %3128 = dma.vmem_to_hbm [thread:$0]  %s3126_s5, 32, %s5204_s11, [#allocation13]  }
 0x9be   :  { %s3618_s1 = scalar_lea.vmem %s3113_s25, 256  ;;  %p3623_p11 = scmp.lt.s32.totalorder %s3113_s25, %s3113_s25 }
 0x9bf   :  { %p3619_p10 = scmp.ne.s32.totalorder %s3113_s25, %s3618_s1  ;;  %p3624_p12 = scmp.lt.s32.totalorder %s3618_s1, %s3618_s1 }
 0x9c1   :  { %p3625_p13 = por %p3624_p12, %p3623_p11 }
 0x9c3   :  { %p3626_p0 = pnand %p3625_p13, %p3619_p10 }
 0x9c5   :  { %3629 = shalt.err (!%p3626_p0)
}
 0x9c6   :  { %s3694_s27 = smov 2   ;;  %s3695_s3 = smov [#allocation14]  }
 0x9c7   :  { %3118 = dma.vmem_to_hbm [thread:$0]  %s3113_s25, 256, %s5203_s10, [#allocation10], %s3688_s24, %s3688_s24, %s3694_s27  }
 0x9c8   :  { %s3135_s4 = sshll.u32 %s3695_s3, 4  ;;  %s3696_s30 = smov [#allocation15]   ;;  %s3136_s4 = int_to_ptr.vmem [resolvable:$true] %s3135_s4 }
 0x9c9   :  { %s3145_s16 = sshll.u32 %s3696_s30, 4  ;;  %s3638_s11 = scalar_lea.vmem %s3136_s4, 32  ;;  %s3146_s16 = int_to_ptr.vmem [resolvable:$true] %s3145_s16 }
 0x9ca   :  { %p3639_p1 = scmp.ne.s32.totalorder %s3136_s4, %s3638_s11  ;;  %p3643_p2 = scmp.lt.s32.totalorder %s3136_s4, %s3136_s4 }
 0x9cb   :  { %p3644_p3 = scmp.lt.s32.totalorder %s3638_s11, %s3638_s11 }
 0x9cd   :  { %p3645_p4 = por %p3644_p3, %p3643_p2 }
 0x9cf   :  { %p3646_p5 = pnand %p3645_p4, %p3639_p1 }
 0x9d1   :  { %3649 = shalt.err (!%p3646_p5)
}
 0x9d2   :  { %3138 = dma.vmem_to_hbm [thread:$0]  %s3136_s4, 32, %s5205_s12, [#allocation13]  }
 0x9d3   :  { %s3658_s18 = scalar_lea.vmem %s3146_s16, 32  ;;  %p3663_p7 = scmp.lt.s32.totalorder %s3146_s16, %s3146_s16 }
 0x9d4   :  { %p3659_p6 = scmp.ne.s32.totalorder %s3146_s16, %s3658_s18  ;;  %p3664_p8 = scmp.lt.s32.totalorder %s3658_s18, %s3658_s18 }
 0x9d6   :  { %p3665_p9 = por %p3664_p8, %p3663_p7 }
 0x9d8   :  { %p3666_p10 = pnand %p3665_p9, %p3659_p6 }
 0x9da   :  { %3669 = shalt.err (!%p3666_p10)
}
 0x9db   :  { %3148 = dma.vmem_to_hbm [thread:$0]  %s3146_s16, 32, %s5206_s13, [#allocation16]   ;;  %v3071_v49 = vmax.f32 %v5138_v55, 0.0  ;;  %v3073_v19 = vsub.f32 1.0, %v5144_v59 }
 0x9dd   :  { %v3072_v26 = vmin.f32 %v3071_v49, 1.0 }
 0x9df   :  { %v3074_v35 = vmul.f32 %v3073_v19, %v3072_v26 }
 0xa42   :  { %v3059_v11 = vpop.xlane.xlu1 %3058 }
 0xa43   :  { %v3060_v43 = vadd.f32 %v5678_v17, %v3059_v11 }
 0xa45   :  { %v3268_v28 = vmul.f32 -1.442695, %v3060_v43 }
 0xa47   :  { %3505 = vpow2.f32 %v3268_v28 }
 0xa54   :  { %v3506_v29 = vpop.eup %3505 }
 0xa55   :  { %v3064_v63 = vadd.f32 1.0, %v3506_v29 }
 0xa57   :  { %3507 = vrcp.f32 %v3064_v63 }
 0xa64   :  { %v3508_v44 = vpop.eup %3507 }
 0xa65   :  { %v3067_v25 = vmul.f32 %v3508_v44, %v5144_v59  ;;  %v3084_v45 = vsel %vm3075_vm4, %v5132_v46, %v3508_v44 }
 0xa66   :  { %3099 = vst.msk [vmem:[#allocation6] sm:$0x3] %vm68_vm0, %v3084_v45  ;;  %3106 = vst.msk [vmem:[%s5208_s15] sm:$0x3] %vm68_vm0, %v3084_v45 }
 0xa67   :  { %v3083_v17 = vsel %vm3075_vm4, %v3074_v35, %v3067_v25 }
 0xa68   :  { %vm3085_vm6 = vcmp.lt.f32.partialorder %v3083_v17, 0.5  ;;  %3097 = vst.msk [vmem:[#allocation4] sm:$0x3] %vm68_vm0, %v3083_v17 }
 0xa69   :  { %v3269_v55 = vsel %vm3085_vm6, 1.0, %v5415_v57 }
 0xa6a   :  { %3098 = vst.msk [vmem:[#allocation5] sm:$0x3] %vm68_vm0, %v3269_v55  ;;  %3105 = vst.msk [vmem:[%s5207_s14] sm:$0x3] %vm68_vm0, %v3269_v55 }
 0xa6b   :  { %3680 = dma.done.wait [#allocation10], 256  }
 0xa6c   :  { %3681 = vsyncadd [#allocation10], 4294967040 }
 0xa6d   :  { %3682 = dma.done.wait [#allocation13], 64  }
 0xa6e   :  { %3683 = vsyncadd [#allocation13], 4294967232 }
 0xa6f   :  { %3684 = dma.done.wait [#allocation16], 32  }
 0xa70   :  { %3685 = vsyncadd [#allocation16], 4294967264 }
 0xa71   :  { %3169 = vsyncpa [#allocation9], 1 }
 0xa72   :  { %3170 = vsyncpa [#allocation10], 1 }
 0xa73   :  { %3171 = vsyncpa [#allocation13], 1 }
 0xa74   :  { %3172 = vsyncpa [#allocation16], 1 }

</bundles_post_ra>
